<compile_context>
chip_gen: v6e
topology: v6e:2x2x1
jax: 0.10.0
libtpu: 0.0.40
codegen_flags: <defaults>
</compile_context>

<pallas_src>
import functools

import jax
import jax.numpy as jnp
from jax.experimental import pallas as pl
from jax.experimental.pallas import tpu as pltpu  # noqa: F401  (TPU backend assumed)

# ---------------------------------------------------------------------------
# Synthetic vocabulary / cards (the original references global VOCABULARY and
# CARDS_LIST; we pick small deterministic sizes).
# ---------------------------------------------------------------------------
VOCAB_SIZE = 11   # len(VOCABULARY)
CARD_COUNT = 7    # len(CARDS_LIST)
LM_PAD = ((VOCAB_SIZE + 127) // 128) * 128   # lane-dense lm_head output width

CONFIG = dict(n_embed=32, n_heads=4, n_blocks=2, n_cont=6, dropout=0.0)

LN_EPS = 1e-5


def _layer_norm(v, g, b):
    mu = jnp.mean(v, axis=-1, keepdims=True)
    var = jnp.mean((v - mu) ** 2, axis=-1, keepdims=True)
    return (v - mu) * jax.lax.rsqrt(var + LN_EPS) * g + b


# ---------------------------------------------------------------------------
# One fused kernel: embed+assemble -> n_blocks transformer blocks -> LN -> sum
# over sequence -> lm_head (128-lane padded output).
# ---------------------------------------------------------------------------
def fused_forward_kernel(sel_ref, cont_ref,
                         state_emb_ref, cont_w_ref, cont_b_ref, choice_emb_ref,
                         ln1_g_ref, ln1_b_ref,
                         w_q_ref, w_k_ref, w_v_ref,
                         w_proj_ref, b_proj_ref,
                         ln2_g_ref, ln2_b_ref,
                         w_ff1_ref, b_ff1_ref, w_ff2_ref, b_ff2_ref,
                         lnf_g_ref, lnf_b_ref,
                         lmw_ref, lmb_ref,
                         o_ref, *, n_heads, n_blocks):
    M = sel_ref.shape[0]                 # B * T
    B = cont_ref.shape[0]
    T = M // B
    E = state_emb_ref.shape[-1]
    V = state_emb_ref.shape[0]
    C = choice_emb_ref.shape[0]
    hs = E // n_heads
    scale = E ** (-0.5)                  # reference scales by n_embed (C), not head_size

    # ---- embedding assembly: one-hot selection over [state_emb | cont rows | choice_emb]
    sel = sel_ref[...]                                                  # (M, 1) int32
    iota_v = jax.lax.broadcasted_iota(jnp.int32, (M, V), 1)
    iota_b = jax.lax.broadcasted_iota(jnp.int32, (M, B), 1)
    iota_c = jax.lax.broadcasted_iota(jnp.int32, (M, C), 1)
    oh_state = (sel == iota_v).astype(jnp.float32)                      # (M, V)
    oh_cont = ((sel - V) == iota_b).astype(jnp.float32)                 # (M, B)
    oh_choice = ((sel - (V + B)) == iota_c).astype(jnp.float32)         # (M, C)

    cont_emb = (jnp.dot(cont_ref[...], cont_w_ref[...],
                        preferred_element_type=jnp.float32)
                + cont_b_ref[...])                                      # (B, E)

    x = (jnp.dot(oh_state, state_emb_ref[...], preferred_element_type=jnp.float32)
         + jnp.dot(oh_cont, cont_emb, preferred_element_type=jnp.float32)
         + jnp.dot(oh_choice, choice_emb_ref[...],
                   preferred_element_type=jnp.float32))                 # (M, E)

    # ---- n_blocks transformer blocks, fully unrolled ----
    for i in range(n_blocks):
        h = _layer_norm(x, ln1_g_ref[i], ln1_b_ref[i])                  # (M, E)
        q = jnp.dot(h, w_q_ref[i], preferred_element_type=jnp.float32).reshape(B, T, E)
        k = jnp.dot(h, w_k_ref[i], preferred_element_type=jnp.float32).reshape(B, T, E)
        v = jnp.dot(h, w_v_ref[i], preferred_element_type=jnp.float32).reshape(B, T, E)
        wp = w_proj_ref[i]                                              # (E, E)

        sa = None
        for hd in range(n_heads):
            sl = slice(hd * hs, (hd + 1) * hs)
            qh, kh, vh = q[..., sl], k[..., sl], v[..., sl]             # (B, T, hs)
            s = jnp.einsum('bqd,bkd->bqk', qh, kh,
                           preferred_element_type=jnp.float32) * scale
            s = s - jnp.max(s, axis=-1, keepdims=True)
            p = jnp.exp(s)
            p = p * pl.reciprocal(jnp.sum(p, axis=-1, keepdims=True), approx=False)
            oh = jnp.einsum('bqk,bkd->bqd', p, vh,
                            preferred_element_type=jnp.float32)          # (B, T, hs)
            # Fold head output directly into the output projection (no concat):
            contrib = jnp.dot(oh.reshape(M, hs), wp[hd * hs:(hd + 1) * hs, :],
                              preferred_element_type=jnp.float32)        # (M, E)
            sa = contrib if sa is None else sa + contrib
        x = x + sa + b_proj_ref[i]

        h2 = _layer_norm(x, ln2_g_ref[i], ln2_b_ref[i])
        hid = jnp.maximum(
            jnp.dot(h2, w_ff1_ref[i], preferred_element_type=jnp.float32) + b_ff1_ref[i],
            0.0)
        x = x + jnp.dot(hid, w_ff2_ref[i], preferred_element_type=jnp.float32) + b_ff2_ref[i]

    # ---- final LayerNorm, sum over sequence, lm_head (lane-dense padded output)
    hf = _layer_norm(x, lnf_g_ref[...], lnf_b_ref[...])                 # (M, E)
    pooled = jnp.sum(hf.reshape(B, T, E), axis=1)                       # (B, E)
    o_ref[...] = (jnp.dot(pooled, lmw_ref[...], preferred_element_type=jnp.float32)
                  + lmb_ref[...])


# ---------------------------------------------------------------------------
# Forward wrapper: build the tiny int32 row-selector, launch ONE pallas_call.
# ---------------------------------------------------------------------------
def nq_transformer_forward(params, cat, cont, choice, config):
    H = config["n_heads"]
    nb = config["n_blocks"]
    V, C = VOCAB_SIZE, CARD_COUNT

    B, Tc = cat.shape
    Tch = choice.shape[1]
    T = Tc + 1 + Tch

    # Combined source-row selector: [cat tokens | per-batch cont row | choice tokens].
    cont_rows = V + jnp.arange(B, dtype=jnp.int32).reshape(B, 1)
    sel = jnp.concatenate([cat.astype(jnp.int32), cont_rows,
                           (V + B) + choice.astype(jnp.int32)], axis=1)  # (B, T)
    sel = sel.reshape(B * T, 1)

    kernel = functools.partial(fused_forward_kernel, n_heads=H, n_blocks=nb)
    logits_padded = pl.pallas_call(
        kernel,
        out_shape=jax.ShapeDtypeStruct((B, LM_PAD), jnp.float32),
    )(sel, cont,
      params["state_emb"], params["cont_w"], params["cont_b"], params["choice_emb"],
      params["ln1_g"], params["ln1_b"],
      params["w_q"], params["w_k"], params["w_v"],
      params["w_proj"], params["b_proj"],
      params["ln2_g"], params["ln2_b"],
      params["w_ff1"], params["b_ff1"], params["w_ff2"], params["b_ff2"],
      params["lnf_g"], params["lnf_b"],
      params["lm_w_pad"], params["lm_b_pad"])

    return logits_padded[:, :V]


# ---------------------------------------------------------------------------
# Parameters (deterministic synthetic init; block weights stacked over n_blocks;
# lm_head padded to 128 lanes ONCE here, not per forward call).
# ---------------------------------------------------------------------------
def init_params(key, config):
    E = config["n_embed"]
    n_cont = config["n_cont"]
    nb = config["n_blocks"]

    def nrm(k, shape, scale=0.02):
        return (scale * jax.random.normal(k, shape)).astype(jnp.float32)

    keys = jax.random.split(key, 14)
    lm_w = nrm(keys[10], (E, VOCAB_SIZE))
    lm_b = nrm(keys[11], (1, VOCAB_SIZE))
    return {
        "state_emb": nrm(keys[0], (VOCAB_SIZE, E)),
        "cont_w": nrm(keys[1], (n_cont, E)),
        "cont_b": nrm(keys[2], (1, E)),
        "choice_emb": nrm(keys[3], (CARD_COUNT, E)),
        "ln1_g": jnp.ones((nb, 1, E), jnp.float32),
        "ln1_b": jnp.zeros((nb, 1, E), jnp.float32),
        "w_q": nrm(keys[4], (nb, E, E)),
        "w_k": nrm(keys[5], (nb, E, E)),
        "w_v": nrm(keys[6], (nb, E, E)),
        "w_proj": nrm(keys[7], (nb, E, E)),
        "b_proj": nrm(keys[8], (nb, 1, E)),
        "ln2_g": jnp.ones((nb, 1, E), jnp.float32),
        "ln2_b": jnp.zeros((nb, 1, E), jnp.float32),
        "w_ff1": nrm(keys[9], (nb, E, 4 * E)),
        "b_ff1": nrm(keys[12], (nb, 1, 4 * E)),
        "w_ff2": nrm(keys[13], (nb, 4 * E, E)),
        "b_ff2": jnp.zeros((nb, 1, E), jnp.float32),
        "lnf_g": jnp.ones((1, E), jnp.float32),
        "lnf_b": jnp.zeros((1, E), jnp.float32),
        "lm_w": lm_w,
        "lm_b": lm_b,
        "lm_w_pad": jnp.pad(lm_w, ((0, 0), (0, LM_PAD - VOCAB_SIZE))),
        "lm_b_pad": jnp.pad(lm_b, ((0, 0), (0, LM_PAD - VOCAB_SIZE))),
    }


# Pure-JAX reference (same math, no Pallas) for the correctness check.
def reference_forward(params, cat, cont, choice, config):
    E = config["n_embed"]
    H = config["n_heads"]
    hs = E // H

    tok_emb = params["state_emb"][cat]
    cont_emb = (cont @ params["cont_w"] + params["cont_b"])[:, None, :]
    card_emb = params["choice_emb"][choice]
    x = jnp.concatenate([tok_emb, cont_emb, card_emb], axis=1)

    for i in range(config["n_blocks"]):
        h = _layer_norm(x, params["ln1_g"][i], params["ln1_b"][i])
        q, k, v = h @ params["w_q"][i], h @ params["w_k"][i], h @ params["w_v"][i]
        outs = []
        for hd in range(H):
            sl = slice(hd * hs, (hd + 1) * hs)
            s = (q[..., sl] @ jnp.swapaxes(k[..., sl], -1, -2)) * (E ** -0.5)
            p = jax.nn.softmax(s, axis=-1)
            outs.append(p @ v[..., sl])
        att = jnp.concatenate(outs, axis=-1)
        x = x + (att @ params["w_proj"][i] + params["b_proj"][i])
        h2 = _layer_norm(x, params["ln2_g"][i], params["ln2_b"][i])
        x = x + (jnp.maximum(h2 @ params["w_ff1"][i] + params["b_ff1"][i], 0.0)
                 @ params["w_ff2"][i] + params["b_ff2"][i])

    h = _layer_norm(x, params["lnf_g"], params["lnf_b"])
    pooled = jnp.sum(h, axis=1)
    return pooled @ params["lm_w"] + params["lm_b"]


if __name__ == "__main__":
    key = jax.random.PRNGKey(0)
    k_param, k_cat, k_cont, k_choice = jax.random.split(key, 4)

    B, T_CAT, T_CHOICE = 2, 5, 2   # total sequence length T = 5 + 1 + 2 = 8
    params = init_params(k_param, CONFIG)

    cat = jax.random.randint(k_cat, (B, T_CAT), 0, VOCAB_SIZE, dtype=jnp.int32)
    cont = jax.random.normal(k_cont, (B, CONFIG["n_cont"]), dtype=jnp.float32)
    choice = jax.random.randint(k_choice, (B, T_CHOICE), 0, CARD_COUNT, dtype=jnp.int32)

    @jax.jit
    def fwd(p, a, b, c):
        return nq_transformer_forward(p, a, b, c, CONFIG)

    logits = jax.block_until_ready(fwd(params, cat, cont, choice))

    ref = reference_forward(params, cat, cont, choice, CONFIG)
    assert logits.shape == (B, VOCAB_SIZE)
    assert jnp.allclose(logits, ref, atol=1e-4, rtol=1e-4), (logits, ref)

    print("KERNEL_OK")
</pallas_src>

<mosaic_0001>
module attributes {stable_mosaic.version = 11 : i64} {
  func.func @fused_forward_kernel(%arg0: memref<16x1xi32, #tpu.memory_space<vmem>>, %arg1: memref<2x6xf32, #tpu.memory_space<vmem>>, %arg2: memref<11x32xf32, #tpu.memory_space<vmem>>, %arg3: memref<6x32xf32, #tpu.memory_space<vmem>>, %arg4: memref<1x32xf32, #tpu.memory_space<vmem>>, %arg5: memref<7x32xf32, #tpu.memory_space<vmem>>, %arg6: memref<2x1x32xf32, #tpu.memory_space<vmem>>, %arg7: memref<2x1x32xf32, #tpu.memory_space<vmem>>, %arg8: memref<2x32x32xf32, #tpu.memory_space<vmem>>, %arg9: memref<2x32x32xf32, #tpu.memory_space<vmem>>, %arg10: memref<2x32x32xf32, #tpu.memory_space<vmem>>, %arg11: memref<2x32x32xf32, #tpu.memory_space<vmem>>, %arg12: memref<2x1x32xf32, #tpu.memory_space<vmem>>, %arg13: memref<2x1x32xf32, #tpu.memory_space<vmem>>, %arg14: memref<2x1x32xf32, #tpu.memory_space<vmem>>, %arg15: memref<2x32x128xf32, #tpu.memory_space<vmem>>, %arg16: memref<2x1x128xf32, #tpu.memory_space<vmem>>, %arg17: memref<2x128x32xf32, #tpu.memory_space<vmem>>, %arg18: memref<2x1x32xf32, #tpu.memory_space<vmem>>, %arg19: memref<1x32xf32, #tpu.memory_space<vmem>>, %arg20: memref<1x32xf32, #tpu.memory_space<vmem>>, %arg21: memref<32x128xf32, #tpu.memory_space<vmem>>, %arg22: memref<1x128xf32, #tpu.memory_space<vmem>>, %arg23: memref<2x128xf32, #tpu.memory_space<vmem>>) attributes {dimension_semantics = [], scalar_prefetch = 0 : i64, scratch_operands = 0 : i64, tpu.core_type = #tpu.core_type<tc>} {
    %c0 = arith.constant 0 : index
    %c0_0 = arith.constant 0 : index
    %0 = vector.load %arg0[%c0, %c0_0] : memref<16x1xi32, #tpu.memory_space<vmem>>, vector<16x1xi32>
    %1 = tpu.iota {dimensions = array<i32: 1>} : vector<16x11xi32>
    %2 = tpu.iota {dimensions = array<i32: 1>} : vector<16x2xi32>
    %3 = tpu.iota {dimensions = array<i32: 1>} : vector<16x7xi32>
    %4 = vector.broadcast %0 : vector<16x1xi32> to vector<16x11xi32>
    %5 = arith.cmpi eq, %4, %1 : vector<16x11xi32>
    %6 = arith.extui %5 : vector<16x11xi1> to vector<16x11xi32>
    %7 = arith.sitofp %6 : vector<16x11xi32> to vector<16x11xf32>
    %c11_i32 = arith.constant 11 : i32
    %8 = vector.broadcast %c11_i32 : i32 to vector<16x1xi32>
    %9 = arith.subi %0, %8 : vector<16x1xi32>
    %10 = vector.broadcast %9 : vector<16x1xi32> to vector<16x2xi32>
    %11 = arith.cmpi eq, %10, %2 : vector<16x2xi32>
    %12 = arith.extui %11 : vector<16x2xi1> to vector<16x2xi32>
    %13 = arith.sitofp %12 : vector<16x2xi32> to vector<16x2xf32>
    %c13_i32 = arith.constant 13 : i32
    %14 = vector.broadcast %c13_i32 : i32 to vector<16x1xi32>
    %15 = arith.subi %0, %14 : vector<16x1xi32>
    %16 = vector.broadcast %15 : vector<16x1xi32> to vector<16x7xi32>
    %17 = arith.cmpi eq, %16, %3 : vector<16x7xi32>
    %18 = arith.extui %17 : vector<16x7xi1> to vector<16x7xi32>
    %19 = arith.sitofp %18 : vector<16x7xi32> to vector<16x7xf32>
    %c0_1 = arith.constant 0 : index
    %c0_2 = arith.constant 0 : index
    %20 = vector.load %arg1[%c0_1, %c0_2] : memref<2x6xf32, #tpu.memory_space<vmem>>, vector<2x6xf32>
    %c0_3 = arith.constant 0 : index
    %c0_4 = arith.constant 0 : index
    %21 = vector.load %arg3[%c0_3, %c0_4] : memref<6x32xf32, #tpu.memory_space<vmem>>, vector<6x32xf32>
    %cst = arith.constant dense<0.000000e+00> : vector<2x32xf32>
    %22 = tpu.matmul %20, %21, %cst {dimension_numbers = #tpu.dot_dimension_numbers<[1], [0], [0], [1], [0, 0, 1, 1], [], []>} : vector<2x6xf32>, vector<6x32xf32>, vector<2x32xf32> -> vector<2x32xf32>
    %c0_5 = arith.constant 0 : index
    %c0_6 = arith.constant 0 : index
    %23 = vector.load %arg4[%c0_5, %c0_6] : memref<1x32xf32, #tpu.memory_space<vmem>>, vector<1x32xf32>
    %24 = vector.broadcast %23 : vector<1x32xf32> to vector<2x32xf32>
    %25 = arith.addf %22, %24 : vector<2x32xf32>
    %c0_7 = arith.constant 0 : index
    %c0_8 = arith.constant 0 : index
    %26 = vector.load %arg2[%c0_7, %c0_8] : memref<11x32xf32, #tpu.memory_space<vmem>>, vector<11x32xf32>
    %cst_9 = arith.constant dense<0.000000e+00> : vector<16x32xf32>
    %27 = tpu.matmul %7, %26, %cst_9 {dimension_numbers = #tpu.dot_dimension_numbers<[1], [0], [0], [1], [0, 0, 1, 1], [], []>} : vector<16x11xf32>, vector<11x32xf32>, vector<16x32xf32> -> vector<16x32xf32>
    %cst_10 = arith.constant dense<0.000000e+00> : vector<16x32xf32>
    %28 = tpu.matmul %13, %25, %cst_10 {dimension_numbers = #tpu.dot_dimension_numbers<[1], [0], [0], [1], [0, 0, 1, 1], [], []>} : vector<16x2xf32>, vector<2x32xf32>, vector<16x32xf32> -> vector<16x32xf32>
    %29 = arith.addf %27, %28 : vector<16x32xf32>
    %c0_11 = arith.constant 0 : index
    %c0_12 = arith.constant 0 : index
    %30 = vector.load %arg5[%c0_11, %c0_12] : memref<7x32xf32, #tpu.memory_space<vmem>>, vector<7x32xf32>
    %cst_13 = arith.constant dense<0.000000e+00> : vector<16x32xf32>
    %31 = tpu.matmul %19, %30, %cst_13 {dimension_numbers = #tpu.dot_dimension_numbers<[1], [0], [0], [1], [0, 0, 1, 1], [], []>} : vector<16x7xf32>, vector<7x32xf32>, vector<16x32xf32> -> vector<16x32xf32>
    %32 = arith.addf %29, %31 : vector<16x32xf32>
    %c0_14 = arith.constant 0 : index
    %c0_15 = arith.constant 0 : index
    %c0_16 = arith.constant 0 : index
    %33 = vector.load %arg6[%c0_14, %c0_15, %c0_16] : memref<2x1x32xf32, #tpu.memory_space<vmem>>, vector<1x1x32xf32>
    %34 = vector.shape_cast %33 : vector<1x1x32xf32> to vector<1x32xf32>
    %c0_17 = arith.constant 0 : index
    %c0_18 = arith.constant 0 : index
    %c0_19 = arith.constant 0 : index
    %35 = vector.load %arg7[%c0_17, %c0_18, %c0_19] : memref<2x1x32xf32, #tpu.memory_space<vmem>>, vector<1x1x32xf32>
    %36 = vector.shape_cast %35 : vector<1x1x32xf32> to vector<1x32xf32>
    %cst_20 = arith.constant dense<0.000000e+00> : vector<16xf32>
    %37 = vector.multi_reduction <add>, %32, %cst_20 [1] : vector<16x32xf32> to vector<16xf32>
    %38 = vector.shape_cast %37 : vector<16xf32> to vector<16x1xf32>
    %cst_21 = arith.constant 3.200000e+01 : f32
    %39 = vector.broadcast %cst_21 : f32 to vector<16x1xf32>
    %40 = arith.divf %38, %39 : vector<16x1xf32>
    %41 = vector.broadcast %40 : vector<16x1xf32> to vector<16x32xf32>
    %42 = arith.subf %32, %41 : vector<16x32xf32>
    %43 = arith.mulf %42, %42 : vector<16x32xf32>
    %cst_22 = arith.constant dense<0.000000e+00> : vector<16xf32>
    %44 = vector.multi_reduction <add>, %43, %cst_22 [1] : vector<16x32xf32> to vector<16xf32>
    %45 = vector.shape_cast %44 : vector<16xf32> to vector<16x1xf32>
    %cst_23 = arith.constant 3.200000e+01 : f32
    %46 = vector.broadcast %cst_23 : f32 to vector<16x1xf32>
    %47 = arith.divf %45, %46 : vector<16x1xf32>
    %48 = vector.broadcast %40 : vector<16x1xf32> to vector<16x32xf32>
    %49 = arith.subf %32, %48 : vector<16x32xf32>
    %cst_24 = arith.constant 9.99999974E-6 : f32
    %50 = vector.broadcast %cst_24 : f32 to vector<16x1xf32>
    %51 = arith.addf %47, %50 : vector<16x1xf32>
    %52 = math.rsqrt %51 : vector<16x1xf32>
    %53 = vector.broadcast %52 : vector<16x1xf32> to vector<16x32xf32>
    %54 = arith.mulf %49, %53 : vector<16x32xf32>
    %55 = vector.broadcast %34 : vector<1x32xf32> to vector<16x32xf32>
    %56 = arith.mulf %54, %55 : vector<16x32xf32>
    %57 = vector.broadcast %36 : vector<1x32xf32> to vector<16x32xf32>
    %58 = arith.addf %56, %57 : vector<16x32xf32>
    %c0_25 = arith.constant 0 : index
    %c0_26 = arith.constant 0 : index
    %c0_27 = arith.constant 0 : index
    %59 = vector.load %arg8[%c0_25, %c0_26, %c0_27] : memref<2x32x32xf32, #tpu.memory_space<vmem>>, vector<1x32x32xf32>
    %60 = vector.shape_cast %59 : vector<1x32x32xf32> to vector<32x32xf32>
    %cst_28 = arith.constant dense<0.000000e+00> : vector<16x32xf32>
    %61 = tpu.matmul %58, %60, %cst_28 {dimension_numbers = #tpu.dot_dimension_numbers<[1], [0], [0], [1], [0, 0, 1, 1], [], []>} : vector<16x32xf32>, vector<32x32xf32>, vector<16x32xf32> -> vector<16x32xf32>
    %62 = vector.shape_cast %61 : vector<16x32xf32> to vector<2x8x32xf32>
    %c0_29 = arith.constant 0 : index
    %c0_30 = arith.constant 0 : index
    %c0_31 = arith.constant 0 : index
    %63 = vector.load %arg9[%c0_29, %c0_30, %c0_31] : memref<2x32x32xf32, #tpu.memory_space<vmem>>, vector<1x32x32xf32>
    %64 = vector.shape_cast %63 : vector<1x32x32xf32> to vector<32x32xf32>
    %cst_32 = arith.constant dense<0.000000e+00> : vector<16x32xf32>
    %65 = tpu.matmul %58, %64, %cst_32 {dimension_numbers = #tpu.dot_dimension_numbers<[1], [0], [0], [1], [0, 0, 1, 1], [], []>} : vector<16x32xf32>, vector<32x32xf32>, vector<16x32xf32> -> vector<16x32xf32>
    %66 = vector.shape_cast %65 : vector<16x32xf32> to vector<2x8x32xf32>
    %c0_33 = arith.constant 0 : index
    %c0_34 = arith.constant 0 : index
    %c0_35 = arith.constant 0 : index
    %67 = vector.load %arg10[%c0_33, %c0_34, %c0_35] : memref<2x32x32xf32, #tpu.memory_space<vmem>>, vector<1x32x32xf32>
    %68 = vector.shape_cast %67 : vector<1x32x32xf32> to vector<32x32xf32>
    %cst_36 = arith.constant dense<0.000000e+00> : vector<16x32xf32>
    %69 = tpu.matmul %58, %68, %cst_36 {dimension_numbers = #tpu.dot_dimension_numbers<[1], [0], [0], [1], [0, 0, 1, 1], [], []>} : vector<16x32xf32>, vector<32x32xf32>, vector<16x32xf32> -> vector<16x32xf32>
    %70 = vector.shape_cast %69 : vector<16x32xf32> to vector<2x8x32xf32>
    %c0_37 = arith.constant 0 : index
    %c0_38 = arith.constant 0 : index
    %c0_39 = arith.constant 0 : index
    %71 = vector.load %arg11[%c0_37, %c0_38, %c0_39] : memref<2x32x32xf32, #tpu.memory_space<vmem>>, vector<1x32x32xf32>
    %72 = vector.shape_cast %71 : vector<1x32x32xf32> to vector<32x32xf32>
    %73 = vector.extract_strided_slice %62 {offsets = [0, 0, 0], sizes = [2, 8, 8], strides = [1, 1, 1]} : vector<2x8x32xf32> to vector<2x8x8xf32>
    %74 = vector.extract_strided_slice %66 {offsets = [0, 0, 0], sizes = [2, 8, 8], strides = [1, 1, 1]} : vector<2x8x32xf32> to vector<2x8x8xf32>
    %75 = vector.extract_strided_slice %70 {offsets = [0, 0, 0], sizes = [2, 8, 8], strides = [1, 1, 1]} : vector<2x8x32xf32> to vector<2x8x8xf32>
    "tpu.trace_start"() <{level = 10 : i32, message = "bqd,bkd->bqk"}> : () -> ()
    %cst_40 = arith.constant dense<0.000000e+00> : vector<2x8x8xf32>
    %76 = tpu.matmul %73, %74, %cst_40 {dimension_numbers = #tpu.dot_dimension_numbers<[2], [2], [1], [1], [0, 0, 0, 1, 1, 1], [0], [0]>} : vector<2x8x8xf32>, vector<2x8x8xf32>, vector<2x8x8xf32> -> vector<2x8x8xf32>
    "tpu.trace_stop"() : () -> ()
    %cst_41 = arith.constant 0.176776692 : f32
    %77 = vector.broadcast %cst_41 : f32 to vector<2x8x8xf32>
    %78 = arith.mulf %76, %77 : vector<2x8x8xf32>
    %cst_42 = arith.constant dense<0xFF800000> : vector<2x8xf32>
    %79 = vector.multi_reduction <maximumf>, %78, %cst_42 [2] : vector<2x8x8xf32> to vector<2x8xf32>
    %80 = vector.shape_cast %79 : vector<2x8xf32> to vector<2x8x1xf32>
    %81 = vector.broadcast %80 : vector<2x8x1xf32> to vector<2x8x8xf32>
    %82 = arith.subf %78, %81 : vector<2x8x8xf32>
    %83 = math.exp %82 : vector<2x8x8xf32>
    %cst_43 = arith.constant dense<0.000000e+00> : vector<2x8xf32>
    %84 = vector.multi_reduction <add>, %83, %cst_43 [2] : vector<2x8x8xf32> to vector<2x8xf32>
    %85 = vector.shape_cast %84 : vector<2x8xf32> to vector<2x8x1xf32>
    %86 = tpu.reciprocal %85 : vector<2x8x1xf32> -> vector<2x8x1xf32>
    %87 = vector.broadcast %86 : vector<2x8x1xf32> to vector<2x8x8xf32>
    %88 = arith.mulf %83, %87 : vector<2x8x8xf32>
    "tpu.trace_start"() <{level = 10 : i32, message = "bqk,bkd->bqd"}> : () -> ()
    %cst_44 = arith.constant dense<0.000000e+00> : vector<2x8x8xf32>
    %89 = tpu.matmul %88, %75, %cst_44 {dimension_numbers = #tpu.dot_dimension_numbers<[2], [1], [1], [2], [0, 0, 0, 1, 1, 2], [0], [0]>} : vector<2x8x8xf32>, vector<2x8x8xf32>, vector<2x8x8xf32> -> vector<2x8x8xf32>
    "tpu.trace_stop"() : () -> ()
    %90 = vector.shape_cast %89 : vector<2x8x8xf32> to vector<16x8xf32>
    %91 = vector.extract_strided_slice %72 {offsets = [0, 0], sizes = [8, 32], strides = [1, 1]} : vector<32x32xf32> to vector<8x32xf32>
    %cst_45 = arith.constant dense<0.000000e+00> : vector<16x32xf32>
    %92 = tpu.matmul %90, %91, %cst_45 {dimension_numbers = #tpu.dot_dimension_numbers<[1], [0], [0], [1], [0, 0, 1, 1], [], []>} : vector<16x8xf32>, vector<8x32xf32>, vector<16x32xf32> -> vector<16x32xf32>
    %93 = vector.extract_strided_slice %62 {offsets = [0, 0, 8], sizes = [2, 8, 8], strides = [1, 1, 1]} : vector<2x8x32xf32> to vector<2x8x8xf32>
    %94 = vector.extract_strided_slice %66 {offsets = [0, 0, 8], sizes = [2, 8, 8], strides = [1, 1, 1]} : vector<2x8x32xf32> to vector<2x8x8xf32>
    %95 = vector.extract_strided_slice %70 {offsets = [0, 0, 8], sizes = [2, 8, 8], strides = [1, 1, 1]} : vector<2x8x32xf32> to vector<2x8x8xf32>
    "tpu.trace_start"() <{level = 10 : i32, message = "bqd,bkd->bqk"}> : () -> ()
    %cst_46 = arith.constant dense<0.000000e+00> : vector<2x8x8xf32>
    %96 = tpu.matmul %93, %94, %cst_46 {dimension_numbers = #tpu.dot_dimension_numbers<[2], [2], [1], [1], [0, 0, 0, 1, 1, 1], [0], [0]>} : vector<2x8x8xf32>, vector<2x8x8xf32>, vector<2x8x8xf32> -> vector<2x8x8xf32>
    "tpu.trace_stop"() : () -> ()
    %cst_47 = arith.constant 0.176776692 : f32
    %97 = vector.broadcast %cst_47 : f32 to vector<2x8x8xf32>
    %98 = arith.mulf %96, %97 : vector<2x8x8xf32>
    %cst_48 = arith.constant dense<0xFF800000> : vector<2x8xf32>
    %99 = vector.multi_reduction <maximumf>, %98, %cst_48 [2] : vector<2x8x8xf32> to vector<2x8xf32>
    %100 = vector.shape_cast %99 : vector<2x8xf32> to vector<2x8x1xf32>
    %101 = vector.broadcast %100 : vector<2x8x1xf32> to vector<2x8x8xf32>
    %102 = arith.subf %98, %101 : vector<2x8x8xf32>
    %103 = math.exp %102 : vector<2x8x8xf32>
    %cst_49 = arith.constant dense<0.000000e+00> : vector<2x8xf32>
    %104 = vector.multi_reduction <add>, %103, %cst_49 [2] : vector<2x8x8xf32> to vector<2x8xf32>
    %105 = vector.shape_cast %104 : vector<2x8xf32> to vector<2x8x1xf32>
    %106 = tpu.reciprocal %105 : vector<2x8x1xf32> -> vector<2x8x1xf32>
    %107 = vector.broadcast %106 : vector<2x8x1xf32> to vector<2x8x8xf32>
    %108 = arith.mulf %103, %107 : vector<2x8x8xf32>
    "tpu.trace_start"() <{level = 10 : i32, message = "bqk,bkd->bqd"}> : () -> ()
    %cst_50 = arith.constant dense<0.000000e+00> : vector<2x8x8xf32>
    %109 = tpu.matmul %108, %95, %cst_50 {dimension_numbers = #tpu.dot_dimension_numbers<[2], [1], [1], [2], [0, 0, 0, 1, 1, 2], [0], [0]>} : vector<2x8x8xf32>, vector<2x8x8xf32>, vector<2x8x8xf32> -> vector<2x8x8xf32>
    "tpu.trace_stop"() : () -> ()
    %110 = vector.shape_cast %109 : vector<2x8x8xf32> to vector<16x8xf32>
    %111 = vector.extract_strided_slice %72 {offsets = [8, 0], sizes = [8, 32], strides = [1, 1]} : vector<32x32xf32> to vector<8x32xf32>
    %cst_51 = arith.constant dense<0.000000e+00> : vector<16x32xf32>
    %112 = tpu.matmul %110, %111, %cst_51 {dimension_numbers = #tpu.dot_dimension_numbers<[1], [0], [0], [1], [0, 0, 1, 1], [], []>} : vector<16x8xf32>, vector<8x32xf32>, vector<16x32xf32> -> vector<16x32xf32>
    %113 = arith.addf %92, %112 : vector<16x32xf32>
    %114 = vector.extract_strided_slice %62 {offsets = [0, 0, 16], sizes = [2, 8, 8], strides = [1, 1, 1]} : vector<2x8x32xf32> to vector<2x8x8xf32>
    %115 = vector.extract_strided_slice %66 {offsets = [0, 0, 16], sizes = [2, 8, 8], strides = [1, 1, 1]} : vector<2x8x32xf32> to vector<2x8x8xf32>
    %116 = vector.extract_strided_slice %70 {offsets = [0, 0, 16], sizes = [2, 8, 8], strides = [1, 1, 1]} : vector<2x8x32xf32> to vector<2x8x8xf32>
    "tpu.trace_start"() <{level = 10 : i32, message = "bqd,bkd->bqk"}> : () -> ()
    %cst_52 = arith.constant dense<0.000000e+00> : vector<2x8x8xf32>
    %117 = tpu.matmul %114, %115, %cst_52 {dimension_numbers = #tpu.dot_dimension_numbers<[2], [2], [1], [1], [0, 0, 0, 1, 1, 1], [0], [0]>} : vector<2x8x8xf32>, vector<2x8x8xf32>, vector<2x8x8xf32> -> vector<2x8x8xf32>
    "tpu.trace_stop"() : () -> ()
    %cst_53 = arith.constant 0.176776692 : f32
    %118 = vector.broadcast %cst_53 : f32 to vector<2x8x8xf32>
    %119 = arith.mulf %117, %118 : vector<2x8x8xf32>
    %cst_54 = arith.constant dense<0xFF800000> : vector<2x8xf32>
    %120 = vector.multi_reduction <maximumf>, %119, %cst_54 [2] : vector<2x8x8xf32> to vector<2x8xf32>
    %121 = vector.shape_cast %120 : vector<2x8xf32> to vector<2x8x1xf32>
    %122 = vector.broadcast %121 : vector<2x8x1xf32> to vector<2x8x8xf32>
    %123 = arith.subf %119, %122 : vector<2x8x8xf32>
    %124 = math.exp %123 : vector<2x8x8xf32>
    %cst_55 = arith.constant dense<0.000000e+00> : vector<2x8xf32>
    %125 = vector.multi_reduction <add>, %124, %cst_55 [2] : vector<2x8x8xf32> to vector<2x8xf32>
    %126 = vector.shape_cast %125 : vector<2x8xf32> to vector<2x8x1xf32>
    %127 = tpu.reciprocal %126 : vector<2x8x1xf32> -> vector<2x8x1xf32>
    %128 = vector.broadcast %127 : vector<2x8x1xf32> to vector<2x8x8xf32>
    %129 = arith.mulf %124, %128 : vector<2x8x8xf32>
    "tpu.trace_start"() <{level = 10 : i32, message = "bqk,bkd->bqd"}> : () -> ()
    %cst_56 = arith.constant dense<0.000000e+00> : vector<2x8x8xf32>
    %130 = tpu.matmul %129, %116, %cst_56 {dimension_numbers = #tpu.dot_dimension_numbers<[2], [1], [1], [2], [0, 0, 0, 1, 1, 2], [0], [0]>} : vector<2x8x8xf32>, vector<2x8x8xf32>, vector<2x8x8xf32> -> vector<2x8x8xf32>
    "tpu.trace_stop"() : () -> ()
    %131 = vector.shape_cast %130 : vector<2x8x8xf32> to vector<16x8xf32>
    %132 = vector.extract_strided_slice %72 {offsets = [16, 0], sizes = [8, 32], strides = [1, 1]} : vector<32x32xf32> to vector<8x32xf32>
    %cst_57 = arith.constant dense<0.000000e+00> : vector<16x32xf32>
    %133 = tpu.matmul %131, %132, %cst_57 {dimension_numbers = #tpu.dot_dimension_numbers<[1], [0], [0], [1], [0, 0, 1, 1], [], []>} : vector<16x8xf32>, vector<8x32xf32>, vector<16x32xf32> -> vector<16x32xf32>
    %134 = arith.addf %113, %133 : vector<16x32xf32>
    %135 = vector.extract_strided_slice %62 {offsets = [0, 0, 24], sizes = [2, 8, 8], strides = [1, 1, 1]} : vector<2x8x32xf32> to vector<2x8x8xf32>
    %136 = vector.extract_strided_slice %66 {offsets = [0, 0, 24], sizes = [2, 8, 8], strides = [1, 1, 1]} : vector<2x8x32xf32> to vector<2x8x8xf32>
    %137 = vector.extract_strided_slice %70 {offsets = [0, 0, 24], sizes = [2, 8, 8], strides = [1, 1, 1]} : vector<2x8x32xf32> to vector<2x8x8xf32>
    "tpu.trace_start"() <{level = 10 : i32, message = "bqd,bkd->bqk"}> : () -> ()
    %cst_58 = arith.constant dense<0.000000e+00> : vector<2x8x8xf32>
    %138 = tpu.matmul %135, %136, %cst_58 {dimension_numbers = #tpu.dot_dimension_numbers<[2], [2], [1], [1], [0, 0, 0, 1, 1, 1], [0], [0]>} : vector<2x8x8xf32>, vector<2x8x8xf32>, vector<2x8x8xf32> -> vector<2x8x8xf32>
    "tpu.trace_stop"() : () -> ()
    %cst_59 = arith.constant 0.176776692 : f32
    %139 = vector.broadcast %cst_59 : f32 to vector<2x8x8xf32>
    %140 = arith.mulf %138, %139 : vector<2x8x8xf32>
    %cst_60 = arith.constant dense<0xFF800000> : vector<2x8xf32>
    %141 = vector.multi_reduction <maximumf>, %140, %cst_60 [2] : vector<2x8x8xf32> to vector<2x8xf32>
    %142 = vector.shape_cast %141 : vector<2x8xf32> to vector<2x8x1xf32>
    %143 = vector.broadcast %142 : vector<2x8x1xf32> to vector<2x8x8xf32>
    %144 = arith.subf %140, %143 : vector<2x8x8xf32>
    %145 = math.exp %144 : vector<2x8x8xf32>
    %cst_61 = arith.constant dense<0.000000e+00> : vector<2x8xf32>
    %146 = vector.multi_reduction <add>, %145, %cst_61 [2] : vector<2x8x8xf32> to vector<2x8xf32>
    %147 = vector.shape_cast %146 : vector<2x8xf32> to vector<2x8x1xf32>
    %148 = tpu.reciprocal %147 : vector<2x8x1xf32> -> vector<2x8x1xf32>
    %149 = vector.broadcast %148 : vector<2x8x1xf32> to vector<2x8x8xf32>
    %150 = arith.mulf %145, %149 : vector<2x8x8xf32>
    "tpu.trace_start"() <{level = 10 : i32, message = "bqk,bkd->bqd"}> : () -> ()
    %cst_62 = arith.constant dense<0.000000e+00> : vector<2x8x8xf32>
    %151 = tpu.matmul %150, %137, %cst_62 {dimension_numbers = #tpu.dot_dimension_numbers<[2], [1], [1], [2], [0, 0, 0, 1, 1, 2], [0], [0]>} : vector<2x8x8xf32>, vector<2x8x8xf32>, vector<2x8x8xf32> -> vector<2x8x8xf32>
    "tpu.trace_stop"() : () -> ()
    %152 = vector.shape_cast %151 : vector<2x8x8xf32> to vector<16x8xf32>
    %153 = vector.extract_strided_slice %72 {offsets = [24, 0], sizes = [8, 32], strides = [1, 1]} : vector<32x32xf32> to vector<8x32xf32>
    %cst_63 = arith.constant dense<0.000000e+00> : vector<16x32xf32>
    %154 = tpu.matmul %152, %153, %cst_63 {dimension_numbers = #tpu.dot_dimension_numbers<[1], [0], [0], [1], [0, 0, 1, 1], [], []>} : vector<16x8xf32>, vector<8x32xf32>, vector<16x32xf32> -> vector<16x32xf32>
    %155 = arith.addf %134, %154 : vector<16x32xf32>
    %156 = arith.addf %32, %155 : vector<16x32xf32>
    %c0_64 = arith.constant 0 : index
    %c0_65 = arith.constant 0 : index
    %c0_66 = arith.constant 0 : index
    %157 = vector.load %arg12[%c0_64, %c0_65, %c0_66] : memref<2x1x32xf32, #tpu.memory_space<vmem>>, vector<1x1x32xf32>
    %158 = vector.shape_cast %157 : vector<1x1x32xf32> to vector<1x32xf32>
    %159 = vector.broadcast %158 : vector<1x32xf32> to vector<16x32xf32>
    %160 = arith.addf %156, %159 : vector<16x32xf32>
    %c0_67 = arith.constant 0 : index
    %c0_68 = arith.constant 0 : index
    %c0_69 = arith.constant 0 : index
    %161 = vector.load %arg13[%c0_67, %c0_68, %c0_69] : memref<2x1x32xf32, #tpu.memory_space<vmem>>, vector<1x1x32xf32>
    %162 = vector.shape_cast %161 : vector<1x1x32xf32> to vector<1x32xf32>
    %c0_70 = arith.constant 0 : index
    %c0_71 = arith.constant 0 : index
    %c0_72 = arith.constant 0 : index
    %163 = vector.load %arg14[%c0_70, %c0_71, %c0_72] : memref<2x1x32xf32, #tpu.memory_space<vmem>>, vector<1x1x32xf32>
    %164 = vector.shape_cast %163 : vector<1x1x32xf32> to vector<1x32xf32>
    %cst_73 = arith.constant dense<0.000000e+00> : vector<16xf32>
    %165 = vector.multi_reduction <add>, %160, %cst_73 [1] : vector<16x32xf32> to vector<16xf32>
    %166 = vector.shape_cast %165 : vector<16xf32> to vector<16x1xf32>
    %cst_74 = arith.constant 3.200000e+01 : f32
    %167 = vector.broadcast %cst_74 : f32 to vector<16x1xf32>
    %168 = arith.divf %166, %167 : vector<16x1xf32>
    %169 = vector.broadcast %168 : vector<16x1xf32> to vector<16x32xf32>
    %170 = arith.subf %160, %169 : vector<16x32xf32>
    %171 = arith.mulf %170, %170 : vector<16x32xf32>
    %cst_75 = arith.constant dense<0.000000e+00> : vector<16xf32>
    %172 = vector.multi_reduction <add>, %171, %cst_75 [1] : vector<16x32xf32> to vector<16xf32>
    %173 = vector.shape_cast %172 : vector<16xf32> to vector<16x1xf32>
    %cst_76 = arith.constant 3.200000e+01 : f32
    %174 = vector.broadcast %cst_76 : f32 to vector<16x1xf32>
    %175 = arith.divf %173, %174 : vector<16x1xf32>
    %176 = vector.broadcast %168 : vector<16x1xf32> to vector<16x32xf32>
    %177 = arith.subf %160, %176 : vector<16x32xf32>
    %cst_77 = arith.constant 9.99999974E-6 : f32
    %178 = vector.broadcast %cst_77 : f32 to vector<16x1xf32>
    %179 = arith.addf %175, %178 : vector<16x1xf32>
    %180 = math.rsqrt %179 : vector<16x1xf32>
    %181 = vector.broadcast %180 : vector<16x1xf32> to vector<16x32xf32>
    %182 = arith.mulf %177, %181 : vector<16x32xf32>
    %183 = vector.broadcast %162 : vector<1x32xf32> to vector<16x32xf32>
    %184 = arith.mulf %182, %183 : vector<16x32xf32>
    %185 = vector.broadcast %164 : vector<1x32xf32> to vector<16x32xf32>
    %186 = arith.addf %184, %185 : vector<16x32xf32>
    %c0_78 = arith.constant 0 : index
    %c0_79 = arith.constant 0 : index
    %c0_80 = arith.constant 0 : index
    %187 = vector.load %arg15[%c0_78, %c0_79, %c0_80] : memref<2x32x128xf32, #tpu.memory_space<vmem>>, vector<1x32x128xf32>
    %188 = vector.shape_cast %187 : vector<1x32x128xf32> to vector<32x128xf32>
    %cst_81 = arith.constant dense<0.000000e+00> : vector<16x128xf32>
    %189 = tpu.matmul %186, %188, %cst_81 {dimension_numbers = #tpu.dot_dimension_numbers<[1], [0], [0], [1], [0, 0, 1, 1], [], []>} : vector<16x32xf32>, vector<32x128xf32>, vector<16x128xf32> -> vector<16x128xf32>
    %c0_82 = arith.constant 0 : index
    %c0_83 = arith.constant 0 : index
    %c0_84 = arith.constant 0 : index
    %190 = vector.load %arg16[%c0_82, %c0_83, %c0_84] : memref<2x1x128xf32, #tpu.memory_space<vmem>>, vector<1x1x128xf32>
    %191 = vector.shape_cast %190 : vector<1x1x128xf32> to vector<1x128xf32>
    %192 = vector.broadcast %191 : vector<1x128xf32> to vector<16x128xf32>
    %193 = arith.addf %189, %192 : vector<16x128xf32>
    %cst_85 = arith.constant 0.000000e+00 : f32
    %194 = vector.broadcast %cst_85 : f32 to vector<16x128xf32>
    %195 = arith.maximumf %193, %194 : vector<16x128xf32>
    %c0_86 = arith.constant 0 : index
    %c0_87 = arith.constant 0 : index
    %c0_88 = arith.constant 0 : index
    %196 = vector.load %arg17[%c0_86, %c0_87, %c0_88] : memref<2x128x32xf32, #tpu.memory_space<vmem>>, vector<1x128x32xf32>
    %197 = vector.shape_cast %196 : vector<1x128x32xf32> to vector<128x32xf32>
    %cst_89 = arith.constant dense<0.000000e+00> : vector<16x32xf32>
    %198 = tpu.matmul %195, %197, %cst_89 {dimension_numbers = #tpu.dot_dimension_numbers<[1], [0], [0], [1], [0, 0, 1, 1], [], []>} : vector<16x128xf32>, vector<128x32xf32>, vector<16x32xf32> -> vector<16x32xf32>
    %199 = arith.addf %160, %198 : vector<16x32xf32>
    %c0_90 = arith.constant 0 : index
    %c0_91 = arith.constant 0 : index
    %c0_92 = arith.constant 0 : index
    %200 = vector.load %arg18[%c0_90, %c0_91, %c0_92] : memref<2x1x32xf32, #tpu.memory_space<vmem>>, vector<1x1x32xf32>
    %201 = vector.shape_cast %200 : vector<1x1x32xf32> to vector<1x32xf32>
    %202 = vector.broadcast %201 : vector<1x32xf32> to vector<16x32xf32>
    %203 = arith.addf %199, %202 : vector<16x32xf32>
    %c1 = arith.constant 1 : index
    %c0_93 = arith.constant 0 : index
    %c0_94 = arith.constant 0 : index
    %204 = vector.load %arg6[%c1, %c0_93, %c0_94] : memref<2x1x32xf32, #tpu.memory_space<vmem>>, vector<1x1x32xf32>
    %205 = vector.shape_cast %204 : vector<1x1x32xf32> to vector<1x32xf32>
    %c1_95 = arith.constant 1 : index
    %c0_96 = arith.constant 0 : index
    %c0_97 = arith.constant 0 : index
    %206 = vector.load %arg7[%c1_95, %c0_96, %c0_97] : memref<2x1x32xf32, #tpu.memory_space<vmem>>, vector<1x1x32xf32>
    %207 = vector.shape_cast %206 : vector<1x1x32xf32> to vector<1x32xf32>
    %cst_98 = arith.constant dense<0.000000e+00> : vector<16xf32>
    %208 = vector.multi_reduction <add>, %203, %cst_98 [1] : vector<16x32xf32> to vector<16xf32>
    %209 = vector.shape_cast %208 : vector<16xf32> to vector<16x1xf32>
    %cst_99 = arith.constant 3.200000e+01 : f32
    %210 = vector.broadcast %cst_99 : f32 to vector<16x1xf32>
    %211 = arith.divf %209, %210 : vector<16x1xf32>
    %212 = vector.broadcast %211 : vector<16x1xf32> to vector<16x32xf32>
    %213 = arith.subf %203, %212 : vector<16x32xf32>
    %214 = arith.mulf %213, %213 : vector<16x32xf32>
    %cst_100 = arith.constant dense<0.000000e+00> : vector<16xf32>
    %215 = vector.multi_reduction <add>, %214, %cst_100 [1] : vector<16x32xf32> to vector<16xf32>
    %216 = vector.shape_cast %215 : vector<16xf32> to vector<16x1xf32>
    %cst_101 = arith.constant 3.200000e+01 : f32
    %217 = vector.broadcast %cst_101 : f32 to vector<16x1xf32>
    %218 = arith.divf %216, %217 : vector<16x1xf32>
    %219 = vector.broadcast %211 : vector<16x1xf32> to vector<16x32xf32>
    %220 = arith.subf %203, %219 : vector<16x32xf32>
    %cst_102 = arith.constant 9.99999974E-6 : f32
    %221 = vector.broadcast %cst_102 : f32 to vector<16x1xf32>
    %222 = arith.addf %218, %221 : vector<16x1xf32>
    %223 = math.rsqrt %222 : vector<16x1xf32>
    %224 = vector.broadcast %223 : vector<16x1xf32> to vector<16x32xf32>
    %225 = arith.mulf %220, %224 : vector<16x32xf32>
    %226 = vector.broadcast %205 : vector<1x32xf32> to vector<16x32xf32>
    %227 = arith.mulf %225, %226 : vector<16x32xf32>
    %228 = vector.broadcast %207 : vector<1x32xf32> to vector<16x32xf32>
    %229 = arith.addf %227, %228 : vector<16x32xf32>
    %c1_103 = arith.constant 1 : index
    %c0_104 = arith.constant 0 : index
    %c0_105 = arith.constant 0 : index
    %230 = vector.load %arg8[%c1_103, %c0_104, %c0_105] : memref<2x32x32xf32, #tpu.memory_space<vmem>>, vector<1x32x32xf32>
    %231 = vector.shape_cast %230 : vector<1x32x32xf32> to vector<32x32xf32>
    %cst_106 = arith.constant dense<0.000000e+00> : vector<16x32xf32>
    %232 = tpu.matmul %229, %231, %cst_106 {dimension_numbers = #tpu.dot_dimension_numbers<[1], [0], [0], [1], [0, 0, 1, 1], [], []>} : vector<16x32xf32>, vector<32x32xf32>, vector<16x32xf32> -> vector<16x32xf32>
    %233 = vector.shape_cast %232 : vector<16x32xf32> to vector<2x8x32xf32>
    %c1_107 = arith.constant 1 : index
    %c0_108 = arith.constant 0 : index
    %c0_109 = arith.constant 0 : index
    %234 = vector.load %arg9[%c1_107, %c0_108, %c0_109] : memref<2x32x32xf32, #tpu.memory_space<vmem>>, vector<1x32x32xf32>
    %235 = vector.shape_cast %234 : vector<1x32x32xf32> to vector<32x32xf32>
    %cst_110 = arith.constant dense<0.000000e+00> : vector<16x32xf32>
    %236 = tpu.matmul %229, %235, %cst_110 {dimension_numbers = #tpu.dot_dimension_numbers<[1], [0], [0], [1], [0, 0, 1, 1], [], []>} : vector<16x32xf32>, vector<32x32xf32>, vector<16x32xf32> -> vector<16x32xf32>
    %237 = vector.shape_cast %236 : vector<16x32xf32> to vector<2x8x32xf32>
    %c1_111 = arith.constant 1 : index
    %c0_112 = arith.constant 0 : index
    %c0_113 = arith.constant 0 : index
    %238 = vector.load %arg10[%c1_111, %c0_112, %c0_113] : memref<2x32x32xf32, #tpu.memory_space<vmem>>, vector<1x32x32xf32>
    %239 = vector.shape_cast %238 : vector<1x32x32xf32> to vector<32x32xf32>
    %cst_114 = arith.constant dense<0.000000e+00> : vector<16x32xf32>
    %240 = tpu.matmul %229, %239, %cst_114 {dimension_numbers = #tpu.dot_dimension_numbers<[1], [0], [0], [1], [0, 0, 1, 1], [], []>} : vector<16x32xf32>, vector<32x32xf32>, vector<16x32xf32> -> vector<16x32xf32>
    %241 = vector.shape_cast %240 : vector<16x32xf32> to vector<2x8x32xf32>
    %c1_115 = arith.constant 1 : index
    %c0_116 = arith.constant 0 : index
    %c0_117 = arith.constant 0 : index
    %242 = vector.load %arg11[%c1_115, %c0_116, %c0_117] : memref<2x32x32xf32, #tpu.memory_space<vmem>>, vector<1x32x32xf32>
    %243 = vector.shape_cast %242 : vector<1x32x32xf32> to vector<32x32xf32>
    %244 = vector.extract_strided_slice %233 {offsets = [0, 0, 0], sizes = [2, 8, 8], strides = [1, 1, 1]} : vector<2x8x32xf32> to vector<2x8x8xf32>
    %245 = vector.extract_strided_slice %237 {offsets = [0, 0, 0], sizes = [2, 8, 8], strides = [1, 1, 1]} : vector<2x8x32xf32> to vector<2x8x8xf32>
    %246 = vector.extract_strided_slice %241 {offsets = [0, 0, 0], sizes = [2, 8, 8], strides = [1, 1, 1]} : vector<2x8x32xf32> to vector<2x8x8xf32>
    "tpu.trace_start"() <{level = 10 : i32, message = "bqd,bkd->bqk"}> : () -> ()
    %cst_118 = arith.constant dense<0.000000e+00> : vector<2x8x8xf32>
    %247 = tpu.matmul %244, %245, %cst_118 {dimension_numbers = #tpu.dot_dimension_numbers<[2], [2], [1], [1], [0, 0, 0, 1, 1, 1], [0], [0]>} : vector<2x8x8xf32>, vector<2x8x8xf32>, vector<2x8x8xf32> -> vector<2x8x8xf32>
    "tpu.trace_stop"() : () -> ()
    %cst_119 = arith.constant 0.176776692 : f32
    %248 = vector.broadcast %cst_119 : f32 to vector<2x8x8xf32>
    %249 = arith.mulf %247, %248 : vector<2x8x8xf32>
    %cst_120 = arith.constant dense<0xFF800000> : vector<2x8xf32>
    %250 = vector.multi_reduction <maximumf>, %249, %cst_120 [2] : vector<2x8x8xf32> to vector<2x8xf32>
    %251 = vector.shape_cast %250 : vector<2x8xf32> to vector<2x8x1xf32>
    %252 = vector.broadcast %251 : vector<2x8x1xf32> to vector<2x8x8xf32>
    %253 = arith.subf %249, %252 : vector<2x8x8xf32>
    %254 = math.exp %253 : vector<2x8x8xf32>
    %cst_121 = arith.constant dense<0.000000e+00> : vector<2x8xf32>
    %255 = vector.multi_reduction <add>, %254, %cst_121 [2] : vector<2x8x8xf32> to vector<2x8xf32>
    %256 = vector.shape_cast %255 : vector<2x8xf32> to vector<2x8x1xf32>
    %257 = tpu.reciprocal %256 : vector<2x8x1xf32> -> vector<2x8x1xf32>
    %258 = vector.broadcast %257 : vector<2x8x1xf32> to vector<2x8x8xf32>
    %259 = arith.mulf %254, %258 : vector<2x8x8xf32>
    "tpu.trace_start"() <{level = 10 : i32, message = "bqk,bkd->bqd"}> : () -> ()
    %cst_122 = arith.constant dense<0.000000e+00> : vector<2x8x8xf32>
    %260 = tpu.matmul %259, %246, %cst_122 {dimension_numbers = #tpu.dot_dimension_numbers<[2], [1], [1], [2], [0, 0, 0, 1, 1, 2], [0], [0]>} : vector<2x8x8xf32>, vector<2x8x8xf32>, vector<2x8x8xf32> -> vector<2x8x8xf32>
    "tpu.trace_stop"() : () -> ()
    %261 = vector.shape_cast %260 : vector<2x8x8xf32> to vector<16x8xf32>
    %262 = vector.extract_strided_slice %243 {offsets = [0, 0], sizes = [8, 32], strides = [1, 1]} : vector<32x32xf32> to vector<8x32xf32>
    %cst_123 = arith.constant dense<0.000000e+00> : vector<16x32xf32>
    %263 = tpu.matmul %261, %262, %cst_123 {dimension_numbers = #tpu.dot_dimension_numbers<[1], [0], [0], [1], [0, 0, 1, 1], [], []>} : vector<16x8xf32>, vector<8x32xf32>, vector<16x32xf32> -> vector<16x32xf32>
    %264 = vector.extract_strided_slice %233 {offsets = [0, 0, 8], sizes = [2, 8, 8], strides = [1, 1, 1]} : vector<2x8x32xf32> to vector<2x8x8xf32>
    %265 = vector.extract_strided_slice %237 {offsets = [0, 0, 8], sizes = [2, 8, 8], strides = [1, 1, 1]} : vector<2x8x32xf32> to vector<2x8x8xf32>
    %266 = vector.extract_strided_slice %241 {offsets = [0, 0, 8], sizes = [2, 8, 8], strides = [1, 1, 1]} : vector<2x8x32xf32> to vector<2x8x8xf32>
    "tpu.trace_start"() <{level = 10 : i32, message = "bqd,bkd->bqk"}> : () -> ()
    %cst_124 = arith.constant dense<0.000000e+00> : vector<2x8x8xf32>
    %267 = tpu.matmul %264, %265, %cst_124 {dimension_numbers = #tpu.dot_dimension_numbers<[2], [2], [1], [1], [0, 0, 0, 1, 1, 1], [0], [0]>} : vector<2x8x8xf32>, vector<2x8x8xf32>, vector<2x8x8xf32> -> vector<2x8x8xf32>
    "tpu.trace_stop"() : () -> ()
    %cst_125 = arith.constant 0.176776692 : f32
    %268 = vector.broadcast %cst_125 : f32 to vector<2x8x8xf32>
    %269 = arith.mulf %267, %268 : vector<2x8x8xf32>
    %cst_126 = arith.constant dense<0xFF800000> : vector<2x8xf32>
    %270 = vector.multi_reduction <maximumf>, %269, %cst_126 [2] : vector<2x8x8xf32> to vector<2x8xf32>
    %271 = vector.shape_cast %270 : vector<2x8xf32> to vector<2x8x1xf32>
    %272 = vector.broadcast %271 : vector<2x8x1xf32> to vector<2x8x8xf32>
    %273 = arith.subf %269, %272 : vector<2x8x8xf32>
    %274 = math.exp %273 : vector<2x8x8xf32>
    %cst_127 = arith.constant dense<0.000000e+00> : vector<2x8xf32>
    %275 = vector.multi_reduction <add>, %274, %cst_127 [2] : vector<2x8x8xf32> to vector<2x8xf32>
    %276 = vector.shape_cast %275 : vector<2x8xf32> to vector<2x8x1xf32>
    %277 = tpu.reciprocal %276 : vector<2x8x1xf32> -> vector<2x8x1xf32>
    %278 = vector.broadcast %277 : vector<2x8x1xf32> to vector<2x8x8xf32>
    %279 = arith.mulf %274, %278 : vector<2x8x8xf32>
    "tpu.trace_start"() <{level = 10 : i32, message = "bqk,bkd->bqd"}> : () -> ()
    %cst_128 = arith.constant dense<0.000000e+00> : vector<2x8x8xf32>
    %280 = tpu.matmul %279, %266, %cst_128 {dimension_numbers = #tpu.dot_dimension_numbers<[2], [1], [1], [2], [0, 0, 0, 1, 1, 2], [0], [0]>} : vector<2x8x8xf32>, vector<2x8x8xf32>, vector<2x8x8xf32> -> vector<2x8x8xf32>
    "tpu.trace_stop"() : () -> ()
    %281 = vector.shape_cast %280 : vector<2x8x8xf32> to vector<16x8xf32>
    %282 = vector.extract_strided_slice %243 {offsets = [8, 0], sizes = [8, 32], strides = [1, 1]} : vector<32x32xf32> to vector<8x32xf32>
    %cst_129 = arith.constant dense<0.000000e+00> : vector<16x32xf32>
    %283 = tpu.matmul %281, %282, %cst_129 {dimension_numbers = #tpu.dot_dimension_numbers<[1], [0], [0], [1], [0, 0, 1, 1], [], []>} : vector<16x8xf32>, vector<8x32xf32>, vector<16x32xf32> -> vector<16x32xf32>
    %284 = arith.addf %263, %283 : vector<16x32xf32>
    %285 = vector.extract_strided_slice %233 {offsets = [0, 0, 16], sizes = [2, 8, 8], strides = [1, 1, 1]} : vector<2x8x32xf32> to vector<2x8x8xf32>
    %286 = vector.extract_strided_slice %237 {offsets = [0, 0, 16], sizes = [2, 8, 8], strides = [1, 1, 1]} : vector<2x8x32xf32> to vector<2x8x8xf32>
    %287 = vector.extract_strided_slice %241 {offsets = [0, 0, 16], sizes = [2, 8, 8], strides = [1, 1, 1]} : vector<2x8x32xf32> to vector<2x8x8xf32>
    "tpu.trace_start"() <{level = 10 : i32, message = "bqd,bkd->bqk"}> : () -> ()
    %cst_130 = arith.constant dense<0.000000e+00> : vector<2x8x8xf32>
    %288 = tpu.matmul %285, %286, %cst_130 {dimension_numbers = #tpu.dot_dimension_numbers<[2], [2], [1], [1], [0, 0, 0, 1, 1, 1], [0], [0]>} : vector<2x8x8xf32>, vector<2x8x8xf32>, vector<2x8x8xf32> -> vector<2x8x8xf32>
    "tpu.trace_stop"() : () -> ()
    %cst_131 = arith.constant 0.176776692 : f32
    %289 = vector.broadcast %cst_131 : f32 to vector<2x8x8xf32>
    %290 = arith.mulf %288, %289 : vector<2x8x8xf32>
    %cst_132 = arith.constant dense<0xFF800000> : vector<2x8xf32>
    %291 = vector.multi_reduction <maximumf>, %290, %cst_132 [2] : vector<2x8x8xf32> to vector<2x8xf32>
    %292 = vector.shape_cast %291 : vector<2x8xf32> to vector<2x8x1xf32>
    %293 = vector.broadcast %292 : vector<2x8x1xf32> to vector<2x8x8xf32>
    %294 = arith.subf %290, %293 : vector<2x8x8xf32>
    %295 = math.exp %294 : vector<2x8x8xf32>
    %cst_133 = arith.constant dense<0.000000e+00> : vector<2x8xf32>
    %296 = vector.multi_reduction <add>, %295, %cst_133 [2] : vector<2x8x8xf32> to vector<2x8xf32>
    %297 = vector.shape_cast %296 : vector<2x8xf32> to vector<2x8x1xf32>
    %298 = tpu.reciprocal %297 : vector<2x8x1xf32> -> vector<2x8x1xf32>
    %299 = vector.broadcast %298 : vector<2x8x1xf32> to vector<2x8x8xf32>
    %300 = arith.mulf %295, %299 : vector<2x8x8xf32>
    "tpu.trace_start"() <{level = 10 : i32, message = "bqk,bkd->bqd"}> : () -> ()
    %cst_134 = arith.constant dense<0.000000e+00> : vector<2x8x8xf32>
    %301 = tpu.matmul %300, %287, %cst_134 {dimension_numbers = #tpu.dot_dimension_numbers<[2], [1], [1], [2], [0, 0, 0, 1, 1, 2], [0], [0]>} : vector<2x8x8xf32>, vector<2x8x8xf32>, vector<2x8x8xf32> -> vector<2x8x8xf32>
    "tpu.trace_stop"() : () -> ()
    %302 = vector.shape_cast %301 : vector<2x8x8xf32> to vector<16x8xf32>
    %303 = vector.extract_strided_slice %243 {offsets = [16, 0], sizes = [8, 32], strides = [1, 1]} : vector<32x32xf32> to vector<8x32xf32>
    %cst_135 = arith.constant dense<0.000000e+00> : vector<16x32xf32>
    %304 = tpu.matmul %302, %303, %cst_135 {dimension_numbers = #tpu.dot_dimension_numbers<[1], [0], [0], [1], [0, 0, 1, 1], [], []>} : vector<16x8xf32>, vector<8x32xf32>, vector<16x32xf32> -> vector<16x32xf32>
    %305 = arith.addf %284, %304 : vector<16x32xf32>
    %306 = vector.extract_strided_slice %233 {offsets = [0, 0, 24], sizes = [2, 8, 8], strides = [1, 1, 1]} : vector<2x8x32xf32> to vector<2x8x8xf32>
    %307 = vector.extract_strided_slice %237 {offsets = [0, 0, 24], sizes = [2, 8, 8], strides = [1, 1, 1]} : vector<2x8x32xf32> to vector<2x8x8xf32>
    %308 = vector.extract_strided_slice %241 {offsets = [0, 0, 24], sizes = [2, 8, 8], strides = [1, 1, 1]} : vector<2x8x32xf32> to vector<2x8x8xf32>
    "tpu.trace_start"() <{level = 10 : i32, message = "bqd,bkd->bqk"}> : () -> ()
    %cst_136 = arith.constant dense<0.000000e+00> : vector<2x8x8xf32>
    %309 = tpu.matmul %306, %307, %cst_136 {dimension_numbers = #tpu.dot_dimension_numbers<[2], [2], [1], [1], [0, 0, 0, 1, 1, 1], [0], [0]>} : vector<2x8x8xf32>, vector<2x8x8xf32>, vector<2x8x8xf32> -> vector<2x8x8xf32>
    "tpu.trace_stop"() : () -> ()
    %cst_137 = arith.constant 0.176776692 : f32
    %310 = vector.broadcast %cst_137 : f32 to vector<2x8x8xf32>
    %311 = arith.mulf %309, %310 : vector<2x8x8xf32>
    %cst_138 = arith.constant dense<0xFF800000> : vector<2x8xf32>
    %312 = vector.multi_reduction <maximumf>, %311, %cst_138 [2] : vector<2x8x8xf32> to vector<2x8xf32>
    %313 = vector.shape_cast %312 : vector<2x8xf32> to vector<2x8x1xf32>
    %314 = vector.broadcast %313 : vector<2x8x1xf32> to vector<2x8x8xf32>
    %315 = arith.subf %311, %314 : vector<2x8x8xf32>
    %316 = math.exp %315 : vector<2x8x8xf32>
    %cst_139 = arith.constant dense<0.000000e+00> : vector<2x8xf32>
    %317 = vector.multi_reduction <add>, %316, %cst_139 [2] : vector<2x8x8xf32> to vector<2x8xf32>
    %318 = vector.shape_cast %317 : vector<2x8xf32> to vector<2x8x1xf32>
    %319 = tpu.reciprocal %318 : vector<2x8x1xf32> -> vector<2x8x1xf32>
    %320 = vector.broadcast %319 : vector<2x8x1xf32> to vector<2x8x8xf32>
    %321 = arith.mulf %316, %320 : vector<2x8x8xf32>
    "tpu.trace_start"() <{level = 10 : i32, message = "bqk,bkd->bqd"}> : () -> ()
    %cst_140 = arith.constant dense<0.000000e+00> : vector<2x8x8xf32>
    %322 = tpu.matmul %321, %308, %cst_140 {dimension_numbers = #tpu.dot_dimension_numbers<[2], [1], [1], [2], [0, 0, 0, 1, 1, 2], [0], [0]>} : vector<2x8x8xf32>, vector<2x8x8xf32>, vector<2x8x8xf32> -> vector<2x8x8xf32>
    "tpu.trace_stop"() : () -> ()
    %323 = vector.shape_cast %322 : vector<2x8x8xf32> to vector<16x8xf32>
    %324 = vector.extract_strided_slice %243 {offsets = [24, 0], sizes = [8, 32], strides = [1, 1]} : vector<32x32xf32> to vector<8x32xf32>
    %cst_141 = arith.constant dense<0.000000e+00> : vector<16x32xf32>
    %325 = tpu.matmul %323, %324, %cst_141 {dimension_numbers = #tpu.dot_dimension_numbers<[1], [0], [0], [1], [0, 0, 1, 1], [], []>} : vector<16x8xf32>, vector<8x32xf32>, vector<16x32xf32> -> vector<16x32xf32>
    %326 = arith.addf %305, %325 : vector<16x32xf32>
    %327 = arith.addf %203, %326 : vector<16x32xf32>
    %c1_142 = arith.constant 1 : index
    %c0_143 = arith.constant 0 : index
    %c0_144 = arith.constant 0 : index
    %328 = vector.load %arg12[%c1_142, %c0_143, %c0_144] : memref<2x1x32xf32, #tpu.memory_space<vmem>>, vector<1x1x32xf32>
    %329 = vector.shape_cast %328 : vector<1x1x32xf32> to vector<1x32xf32>
    %330 = vector.broadcast %329 : vector<1x32xf32> to vector<16x32xf32>
    %331 = arith.addf %327, %330 : vector<16x32xf32>
    %c1_145 = arith.constant 1 : index
    %c0_146 = arith.constant 0 : index
    %c0_147 = arith.constant 0 : index
    %332 = vector.load %arg13[%c1_145, %c0_146, %c0_147] : memref<2x1x32xf32, #tpu.memory_space<vmem>>, vector<1x1x32xf32>
    %333 = vector.shape_cast %332 : vector<1x1x32xf32> to vector<1x32xf32>
    %c1_148 = arith.constant 1 : index
    %c0_149 = arith.constant 0 : index
    %c0_150 = arith.constant 0 : index
    %334 = vector.load %arg14[%c1_148, %c0_149, %c0_150] : memref<2x1x32xf32, #tpu.memory_space<vmem>>, vector<1x1x32xf32>
    %335 = vector.shape_cast %334 : vector<1x1x32xf32> to vector<1x32xf32>
    %cst_151 = arith.constant dense<0.000000e+00> : vector<16xf32>
    %336 = vector.multi_reduction <add>, %331, %cst_151 [1] : vector<16x32xf32> to vector<16xf32>
    %337 = vector.shape_cast %336 : vector<16xf32> to vector<16x1xf32>
    %cst_152 = arith.constant 3.200000e+01 : f32
    %338 = vector.broadcast %cst_152 : f32 to vector<16x1xf32>
    %339 = arith.divf %337, %338 : vector<16x1xf32>
    %340 = vector.broadcast %339 : vector<16x1xf32> to vector<16x32xf32>
    %341 = arith.subf %331, %340 : vector<16x32xf32>
    %342 = arith.mulf %341, %341 : vector<16x32xf32>
    %cst_153 = arith.constant dense<0.000000e+00> : vector<16xf32>
    %343 = vector.multi_reduction <add>, %342, %cst_153 [1] : vector<16x32xf32> to vector<16xf32>
    %344 = vector.shape_cast %343 : vector<16xf32> to vector<16x1xf32>
    %cst_154 = arith.constant 3.200000e+01 : f32
    %345 = vector.broadcast %cst_154 : f32 to vector<16x1xf32>
    %346 = arith.divf %344, %345 : vector<16x1xf32>
    %347 = vector.broadcast %339 : vector<16x1xf32> to vector<16x32xf32>
    %348 = arith.subf %331, %347 : vector<16x32xf32>
    %cst_155 = arith.constant 9.99999974E-6 : f32
    %349 = vector.broadcast %cst_155 : f32 to vector<16x1xf32>
    %350 = arith.addf %346, %349 : vector<16x1xf32>
    %351 = math.rsqrt %350 : vector<16x1xf32>
    %352 = vector.broadcast %351 : vector<16x1xf32> to vector<16x32xf32>
    %353 = arith.mulf %348, %352 : vector<16x32xf32>
    %354 = vector.broadcast %333 : vector<1x32xf32> to vector<16x32xf32>
    %355 = arith.mulf %353, %354 : vector<16x32xf32>
    %356 = vector.broadcast %335 : vector<1x32xf32> to vector<16x32xf32>
    %357 = arith.addf %355, %356 : vector<16x32xf32>
    %c1_156 = arith.constant 1 : index
    %c0_157 = arith.constant 0 : index
    %c0_158 = arith.constant 0 : index
    %358 = vector.load %arg15[%c1_156, %c0_157, %c0_158] : memref<2x32x128xf32, #tpu.memory_space<vmem>>, vector<1x32x128xf32>
    %359 = vector.shape_cast %358 : vector<1x32x128xf32> to vector<32x128xf32>
    %cst_159 = arith.constant dense<0.000000e+00> : vector<16x128xf32>
    %360 = tpu.matmul %357, %359, %cst_159 {dimension_numbers = #tpu.dot_dimension_numbers<[1], [0], [0], [1], [0, 0, 1, 1], [], []>} : vector<16x32xf32>, vector<32x128xf32>, vector<16x128xf32> -> vector<16x128xf32>
    %c1_160 = arith.constant 1 : index
    %c0_161 = arith.constant 0 : index
    %c0_162 = arith.constant 0 : index
    %361 = vector.load %arg16[%c1_160, %c0_161, %c0_162] : memref<2x1x128xf32, #tpu.memory_space<vmem>>, vector<1x1x128xf32>
    %362 = vector.shape_cast %361 : vector<1x1x128xf32> to vector<1x128xf32>
    %363 = vector.broadcast %362 : vector<1x128xf32> to vector<16x128xf32>
    %364 = arith.addf %360, %363 : vector<16x128xf32>
    %cst_163 = arith.constant 0.000000e+00 : f32
    %365 = vector.broadcast %cst_163 : f32 to vector<16x128xf32>
    %366 = arith.maximumf %364, %365 : vector<16x128xf32>
    %c1_164 = arith.constant 1 : index
    %c0_165 = arith.constant 0 : index
    %c0_166 = arith.constant 0 : index
    %367 = vector.load %arg17[%c1_164, %c0_165, %c0_166] : memref<2x128x32xf32, #tpu.memory_space<vmem>>, vector<1x128x32xf32>
    %368 = vector.shape_cast %367 : vector<1x128x32xf32> to vector<128x32xf32>
    %cst_167 = arith.constant dense<0.000000e+00> : vector<16x32xf32>
    %369 = tpu.matmul %366, %368, %cst_167 {dimension_numbers = #tpu.dot_dimension_numbers<[1], [0], [0], [1], [0, 0, 1, 1], [], []>} : vector<16x128xf32>, vector<128x32xf32>, vector<16x32xf32> -> vector<16x32xf32>
    %370 = arith.addf %331, %369 : vector<16x32xf32>
    %c1_168 = arith.constant 1 : index
    %c0_169 = arith.constant 0 : index
    %c0_170 = arith.constant 0 : index
    %371 = vector.load %arg18[%c1_168, %c0_169, %c0_170] : memref<2x1x32xf32, #tpu.memory_space<vmem>>, vector<1x1x32xf32>
    %372 = vector.shape_cast %371 : vector<1x1x32xf32> to vector<1x32xf32>
    %373 = vector.broadcast %372 : vector<1x32xf32> to vector<16x32xf32>
    %374 = arith.addf %370, %373 : vector<16x32xf32>
    %c0_171 = arith.constant 0 : index
    %c0_172 = arith.constant 0 : index
    %375 = vector.load %arg19[%c0_171, %c0_172] : memref<1x32xf32, #tpu.memory_space<vmem>>, vector<1x32xf32>
    %c0_173 = arith.constant 0 : index
    %c0_174 = arith.constant 0 : index
    %376 = vector.load %arg20[%c0_173, %c0_174] : memref<1x32xf32, #tpu.memory_space<vmem>>, vector<1x32xf32>
    %cst_175 = arith.constant dense<0.000000e+00> : vector<16xf32>
    %377 = vector.multi_reduction <add>, %374, %cst_175 [1] : vector<16x32xf32> to vector<16xf32>
    %378 = vector.shape_cast %377 : vector<16xf32> to vector<16x1xf32>
    %cst_176 = arith.constant 3.200000e+01 : f32
    %379 = vector.broadcast %cst_176 : f32 to vector<16x1xf32>
    %380 = arith.divf %378, %379 : vector<16x1xf32>
    %381 = vector.broadcast %380 : vector<16x1xf32> to vector<16x32xf32>
    %382 = arith.subf %374, %381 : vector<16x32xf32>
    %383 = arith.mulf %382, %382 : vector<16x32xf32>
    %cst_177 = arith.constant dense<0.000000e+00> : vector<16xf32>
    %384 = vector.multi_reduction <add>, %383, %cst_177 [1] : vector<16x32xf32> to vector<16xf32>
    %385 = vector.shape_cast %384 : vector<16xf32> to vector<16x1xf32>
    %cst_178 = arith.constant 3.200000e+01 : f32
    %386 = vector.broadcast %cst_178 : f32 to vector<16x1xf32>
    %387 = arith.divf %385, %386 : vector<16x1xf32>
    %388 = vector.broadcast %380 : vector<16x1xf32> to vector<16x32xf32>
    %389 = arith.subf %374, %388 : vector<16x32xf32>
    %cst_179 = arith.constant 9.99999974E-6 : f32
    %390 = vector.broadcast %cst_179 : f32 to vector<16x1xf32>
    %391 = arith.addf %387, %390 : vector<16x1xf32>
    %392 = math.rsqrt %391 : vector<16x1xf32>
    %393 = vector.broadcast %392 : vector<16x1xf32> to vector<16x32xf32>
    %394 = arith.mulf %389, %393 : vector<16x32xf32>
    %395 = vector.broadcast %375 : vector<1x32xf32> to vector<16x32xf32>
    %396 = arith.mulf %394, %395 : vector<16x32xf32>
    %397 = vector.broadcast %376 : vector<1x32xf32> to vector<16x32xf32>
    %398 = arith.addf %396, %397 : vector<16x32xf32>
    %399 = vector.shape_cast %398 : vector<16x32xf32> to vector<2x8x32xf32>
    %cst_180 = arith.constant dense<0.000000e+00> : vector<2x32xf32>
    %400 = vector.multi_reduction <add>, %399, %cst_180 [1] : vector<2x8x32xf32> to vector<2x32xf32>
    %c0_181 = arith.constant 0 : index
    %c0_182 = arith.constant 0 : index
    %401 = vector.load %arg21[%c0_181, %c0_182] : memref<32x128xf32, #tpu.memory_space<vmem>>, vector<32x128xf32>
    %cst_183 = arith.constant dense<0.000000e+00> : vector<2x128xf32>
    %402 = tpu.matmul %400, %401, %cst_183 {dimension_numbers = #tpu.dot_dimension_numbers<[1], [0], [0], [1], [0, 0, 1, 1], [], []>} : vector<2x32xf32>, vector<32x128xf32>, vector<2x128xf32> -> vector<2x128xf32>
    %c0_184 = arith.constant 0 : index
    %c0_185 = arith.constant 0 : index
    %403 = vector.load %arg22[%c0_184, %c0_185] : memref<1x128xf32, #tpu.memory_space<vmem>>, vector<1x128xf32>
    %404 = vector.broadcast %403 : vector<1x128xf32> to vector<2x128xf32>
    %405 = arith.addf %402, %404 : vector<2x128xf32>
    %c0_186 = arith.constant 0 : index
    %c0_187 = arith.constant 0 : index
    %406 = vector.load %arg23[%c0_186, %c0_187] : memref<2x128xf32, #tpu.memory_space<vmem>>, vector<2x128xf32>
    tpu.vector_store %arg23[%c0_186, %c0_187], %405 {strides = array<i32>} : memref<2x128xf32, #tpu.memory_space<vmem>>, vector<2x128xf32>,
    return
  }
}

</mosaic_0001>

<bundles_post_ra>
// kernel: fwd.1
= control target key start
LH: loop header
LB: loop body
LE: loop exit
PB: predicated region body
PF: predicated region fallthrough
CT: control target
= control target key end

     0   :  { %s7191_s0 = inlined_call_operand.vmem [shape: s32[16,1], index: 0, kind: input, shape index: {}]   ;;  %s7192_s1 = inlined_call_operand.vmem [shape: f32[2,6], index: 1, kind: input, shape index: {}]   ;;  %s7193_s2 = inlined_call_operand.vmem [shape: f32[11,32], index: 2, kind: input, shape index: {}]   ;;  %s7194_s3 = inlined_call_operand.hbm [shape: f32[6,32], index: 3, kind: input, shape index: {}]   ;;  %s7195_s4 = inlined_call_operand.hbm [shape: f32[1,32], index: 4, kind: input, shape index: {}]   ;;  %s7196_s5 = inlined_call_operand.hbm [shape: f32[7,32], index: 5, kind: input, shape index: {}]   ;;  %s7197_s6 = inlined_call_operand.hbm [shape: f32[2,1,32], index: 6, kind: input, shape index: {}]   ;;  %s7198_s7 = inlined_call_operand.hbm [shape: f32[2,1,32], index: 7, kind: input, shape index: {}]   ;;  %s7199_s8 = inlined_call_operand.vmem [shape: f32[2,32,32], index: 8, kind: input, shape index: {}]   ;;  %s7200_s9 = inlined_call_operand.vmem [shape: f32[2,32,32], index: 9, kind: input, shape index: {}]   ;;  %s7201_s10 = inlined_call_operand.vmem [shape: f32[2,32,32], index: 10, kind: input, shape index: {}]   ;;  %s7202_s11 = inlined_call_operand.vmem [shape: f32[2,32,32], index: 11, kind: input, shape index: {}]   ;;  %s7203_s12 = inlined_call_operand.hbm [shape: f32[2,1,32], index: 12, kind: input, shape index: {}]   ;;  %s7204_s13 = inlined_call_operand.hbm [shape: f32[2,1,32], index: 13, kind: input, shape index: {}]   ;;  %s7205_s14 = inlined_call_operand.hbm [shape: f32[2,1,32], index: 14, kind: input, shape index: {}]   ;;  %s7206_s15 = inlined_call_operand.vmem [shape: f32[2,32,128], index: 15, kind: input, shape index: {}]   ;;  %s7207_s16 = inlined_call_operand.hbm [shape: f32[2,1,128], index: 16, kind: input, shape index: {}]   ;;  %s7208_s17 = inlined_call_operand.vmem [shape: f32[2,128,32], index: 17, kind: input, shape index: {}]   ;;  %s7209_s18 = inlined_call_operand.hbm [shape: f32[2,1,32], index: 18, kind: input, shape index: {}]   ;;  %s7210_s19 = inlined_call_operand.vmem [shape: f32[1,32], index: 19, kind: input, shape index: {}]   ;;  %s7211_s20 = inlined_call_operand.hbm [shape: f32[1,32], index: 20, kind: input, shape index: {}]   ;;  %s7212_s21 = inlined_call_operand.vmem [shape: f32[32,128], index: 21, kind: input, shape index: {}]   ;;  %s7213_s22 = inlined_call_operand.hbm [shape: f32[1,128], index: 22, kind: input, shape index: {}]   ;;  %s7214_s23 = inlined_call_operand.hbm [shape: f32[2,128], index: 23, kind: output, shape index: {}]  }
   0x1   :  { %7217 = sst [smem:[#allocation31_spill]] %s7191_s0 }
   0x2   :  { %7218 = sst [smem:[#allocation32_spill]] %s7192_s1 }
   0x3   :  { %7219 = sst [smem:[#allocation33_spill]] %s7193_s2 }
   0x4   :  { %7220 = sst [smem:[#allocation34_spill]] %s7194_s3 }
   0x5   :  { %7221 = sst [smem:[#allocation35_spill]] %s7195_s4 }
   0x6   :  { %7222 = sst [smem:[#allocation36_spill]] %s7196_s5 }
   0x7   :  { %7223 = sst [smem:[#allocation37_spill]] %s7197_s6 }
   0x8   :  { %7224 = sst [smem:[#allocation38_spill]] %s7198_s7 }
   0x9   :  { %28 = vsyncpa [#allocation3], 0 }
   0xa   :  { %29 = vsyncpa [#allocation6], 0 }
   0xb   :  { %30 = vsyncpa [#allocation9], 0 }
   0xc   :  { %31 = vsyncpa [#allocation12], 0 }
   0xd   :  { %32 = vsyncpa [#allocation15], 0 }
   0xe   :  { %33 = vsyncpa [#allocation18], 0 }
   0xf   :  { %34 = vsyncpa [#allocation21], 0 }
  0x10   :  { %35 = vsyncpa [#allocation4], 0  ;;  %s6304_s4 = smov [#allocation5]   ;;  %s6305_s24 = smov [#allocation8]  }
  0x11   :  { %s58_s30 = sshll.u32 %s6304_s4, 4  ;;  %s77_s25 = sshll.u32 %s6305_s24, 4  ;;  %s59_s30 = int_to_ptr.vmem [resolvable:$true] %s58_s30  ;;  %s78_s25 = int_to_ptr.vmem [resolvable:$true] %s77_s25 }
  0x12   :  { %s6036_s5 = scalar_lea.vmem %s59_s30, 16  ;;  %s6040_s1 = scalar_lea.vmem %s59_s30, 32 }
  0x13   :  { %p6037_p0 = scmp.ne.s32.totalorder %s59_s30, %s6036_s5  ;;  %p6041_p1 = scmp.lt.s32.totalorder %s59_s30, %s59_s30 }
  0x14   :  { %p6042_p2 = scmp.lt.s32.totalorder %s6040_s1, %s6036_s5 }
  0x16   :  { %p6043_p3 = por %p6042_p2, %p6041_p1 }
  0x18   :  { %p6044_p4 = pnand %p6043_p3, %p6037_p0 }
  0x1a   :  { %6047 = shalt.err (!%p6044_p4)
}
  0x1b   :  { %s7225_s6 = sld [smem:[#allocation35_spill]]  ;;  %s6056_s27 = scalar_lea.vmem %s78_s25, 32 }
  0x1c   :  { %p6057_p5 = scmp.ne.s32.totalorder %s78_s25, %s6056_s27  ;;  %p6061_p6 = scmp.lt.s32.totalorder %s78_s25, %s78_s25 }
  0x1d   :  { %p6062_p7 = scmp.lt.s32.totalorder %s6056_s27, %s6056_s27 }
  0x1f   :  { %p6063_p8 = por %p6062_p7, %p6061_p6 }
  0x21   :  { %61 = dma.hbm_to_vmem [thread:$0]  %s7225_s6, 16, %s59_s30, [#allocation6]  }
  0x22   :  { %p6064_p9 = pnand %p6063_p8, %p6057_p5 }
  0x24   :  { %6067 = shalt.err (!%p6064_p9)
}
  0x25   :  { %s6306_s7 = smov 16   ;;  %s6307_s28 = smov 1  }
  0x26   :  { %s7226_s0 = sld [smem:[#allocation37_spill]]  ;;  %s6308_s4 = smov [#allocation11]  }
  0x27   :  { %s109_s24 = sshll.u32 %s6308_s4, 4  ;;  %s6309_s5 = smov [#allocation14]   ;;  %s110_s24 = int_to_ptr.vmem [resolvable:$true] %s109_s24 }
  0x28   :  { %s133_s30 = sshll.u32 %s6309_s5, 4  ;;  %s6076_s1 = scalar_lea.vmem %s110_s24, 32  ;;  %s134_s30 = int_to_ptr.vmem [resolvable:$true] %s133_s30 }
  0x29   :  { %p6077_p10 = scmp.ne.s32.totalorder %s110_s24, %s6076_s1  ;;  %p6081_p11 = scmp.lt.s32.totalorder %s110_s24, %s110_s24 }
  0x2a   :  { %p6082_p12 = scmp.lt.s32.totalorder %s6076_s1, %s6076_s1 }
  0x2c   :  { %83 = dma.hbm_to_vmem [thread:$0]  %s7226_s0, 32, %s78_s25, [#allocation9], %s6306_s7, %s6306_s7, %s6307_s28  }
  0x2d   :  { %p6083_p13 = por %p6082_p12, %p6081_p11 }
  0x2f   :  { %p6084_p0 = pnand %p6083_p13, %p6077_p10 }
  0x31   :  { %6087 = shalt.err (!%p6084_p0)
}
  0x32   :  { %115 = dma.hbm_to_vmem [thread:$0]  %s7203_s12, 32, %s110_s24, [#allocation12], %s6306_s7, %s6306_s7, %s6307_s28  }
  0x33   :  { %s6096_s25 = scalar_lea.vmem %s134_s30, 32  ;;  %p6101_p2 = scmp.lt.s32.totalorder %s134_s30, %s134_s30 }
  0x34   :  { %p6097_p1 = scmp.ne.s32.totalorder %s134_s30, %s6096_s25  ;;  %p6102_p3 = scmp.lt.s32.totalorder %s6096_s25, %s6096_s25 }
  0x36   :  { %p6103_p4 = por %p6102_p3, %p6101_p2 }
  0x38   :  { %p6104_p5 = pnand %p6103_p4, %p6097_p1 }
  0x3a   :  { %6107 = shalt.err (!%p6104_p5)
}
  0x3b   :  { %139 = dma.hbm_to_vmem [thread:$0]  %s7205_s14, 32, %s134_s30, [#allocation15], %s6306_s7, %s6306_s7, %s6307_s28  }
  0x3c   :  { %s6310_s29 = smov [#allocation17]   ;;  %s6311_s0 = smov [#allocation2]  }
  0x3d   :  { %s161_s3 = sshll.u32 %s6310_s29, 4  ;;  %s48_s4 = sshll.u32 %s6311_s0, 4  ;;  %s162_s3 = int_to_ptr.vmem [resolvable:$true] %s161_s3  ;;  %s49_s4 = int_to_ptr.vmem [resolvable:$true] %s48_s4 }
  0x3e   :  { %s6116_s12 = scalar_lea.vmem %s162_s3, 32  ;;  %p6121_p7 = scmp.lt.s32.totalorder %s162_s3, %s162_s3 }
  0x3f   :  { %p6117_p6 = scmp.ne.s32.totalorder %s162_s3, %s6116_s12  ;;  %p6122_p8 = scmp.lt.s32.totalorder %s6116_s12, %s6116_s12 }
  0x41   :  { %p6123_p9 = por %p6122_p8, %p6121_p7 }
  0x43   :  { %p6124_p10 = pnand %p6123_p9, %p6117_p6 }
  0x45   :  { %6127 = shalt.err (!%p6124_p10)
}
  0x46   :  { %167 = dma.hbm_to_vmem [thread:$0]  %s7209_s18, 32, %s162_s3, [#allocation18], %s6306_s7, %s6306_s7, %s6307_s28  }
  0x47   :  { %s6136_s14 = scalar_lea.vmem %s49_s4, 128  ;;  %p6141_p12 = scmp.lt.s32.totalorder %s49_s4, %s49_s4 }
  0x48   :  { %p6137_p11 = scmp.ne.s32.totalorder %s49_s4, %s6136_s14  ;;  %p6142_p13 = scmp.lt.s32.totalorder %s6136_s14, %s6136_s14 }
  0x4a   :  { %p6143_p0 = por %p6142_p13, %p6141_p12 }
  0x4c   :  { %p6144_p1 = pnand %p6143_p0, %p6137_p11 }
  0x4e   :  { %6147 = shalt.err (!%p6144_p1)
}
  0x4f   :  { %s7227_s26 = sld [smem:[#allocation34_spill]]  ;;  %s6312_s2 = smov [#allocation7]  }
  0x50   :  { %s68_s25 = sshll.u32 %s6312_s2, 4  ;;  %s6313_s6 = smov [#allocation10]   ;;  %s69_s25 = int_to_ptr.vmem [resolvable:$true] %s68_s25 }
  0x51   :  { %s89_s27 = sshll.u32 %s6313_s6, 4  ;;  %s6156_s29 = scalar_lea.vmem %s69_s25, 128  ;;  %s90_s27 = int_to_ptr.vmem [resolvable:$true] %s89_s27 }
  0x52   :  { %p6157_p2 = scmp.ne.s32.totalorder %s69_s25, %s6156_s29  ;;  %p6161_p3 = scmp.lt.s32.totalorder %s69_s25, %s69_s25 }
  0x53   :  { %p6162_p4 = scmp.lt.s32.totalorder %s6156_s29, %s6156_s29 }
  0x55   :  { %51 = dma.hbm_to_vmem [thread:$0]  %s7227_s26, 128, %s49_s4, [#allocation3]  }
  0x56   :  { %p6163_p5 = por %p6162_p4, %p6161_p3 }
  0x58   :  { %p6164_p6 = pnand %p6163_p5, %p6157_p2 }
  0x5a   :  { %6167 = shalt.err (!%p6164_p6)
}
  0x5b   :  { %s7228_s0 = sld [smem:[#allocation36_spill]]  ;;  %s6176_s12 = scalar_lea.vmem %s90_s27, 32 }
  0x5c   :  { %p6177_p7 = scmp.ne.s32.totalorder %s90_s27, %s6176_s12  ;;  %p6181_p8 = scmp.lt.s32.totalorder %s90_s27, %s90_s27 }
  0x5d   :  { %p6182_p9 = scmp.lt.s32.totalorder %s6176_s12, %s6176_s12 }
  0x5f   :  { %p6183_p10 = por %p6182_p9, %p6181_p8 }
  0x61   :  { %71 = dma.hbm_to_vmem [thread:$0]  %s7228_s0, 128, %s69_s25, [#allocation6]  }
  0x62   :  { %p6184_p11 = pnand %p6183_p10, %p6177_p7 }
  0x64   :  { %6187 = shalt.err (!%p6184_p11)
}
  0x65   :  { %s7229_s5 = sld [smem:[#allocation38_spill]]  ;;  %s6314_s14 = smov [#allocation13]  }
  0x66   :  { %s121_s30 = sshll.u32 %s6314_s14, 4  ;;  %s6315_s1 = smov [#allocation16]   ;;  %s122_s30 = int_to_ptr.vmem [resolvable:$true] %s121_s30 }
  0x67   :  { %s147_s26 = sshll.u32 %s6315_s1, 4  ;;  %s6196_s2 = scalar_lea.vmem %s122_s30, 32  ;;  %s148_s26 = int_to_ptr.vmem [resolvable:$true] %s147_s26 }
  0x68   :  { %p6197_p12 = scmp.ne.s32.totalorder %s122_s30, %s6196_s2  ;;  %p6201_p13 = scmp.lt.s32.totalorder %s122_s30, %s122_s30 }
  0x69   :  { %p6202_p0 = scmp.lt.s32.totalorder %s6196_s2, %s6196_s2 }
  0x6b   :  { %95 = dma.hbm_to_vmem [thread:$0]  %s7229_s5, 32, %s90_s27, [#allocation9], %s6306_s7, %s6306_s7, %s6307_s28  }
  0x6c   :  { %p6203_p1 = por %p6202_p0, %p6201_p13 }
  0x6e   :  { %p6204_p2 = pnand %p6203_p1, %p6197_p12 }
  0x70   :  { %6207 = shalt.err (!%p6204_p2)
}
  0x71   :  { %127 = dma.hbm_to_vmem [thread:$0]  %s7204_s13, 32, %s122_s30, [#allocation12], %s6306_s7, %s6306_s7, %s6307_s28  }
  0x72   :  { %s6216_s27 = scalar_lea.vmem %s148_s26, 32  ;;  %p6221_p4 = scmp.lt.s32.totalorder %s148_s26, %s148_s26 }
  0x73   :  { %p6217_p3 = scmp.ne.s32.totalorder %s148_s26, %s6216_s27  ;;  %p6222_p5 = scmp.lt.s32.totalorder %s6216_s27, %s6216_s27 }
  0x75   :  { %p6223_p6 = por %p6222_p5, %p6221_p4 }
  0x77   :  { %p6224_p7 = pnand %p6223_p6, %p6217_p3 }
  0x79   :  { %6227 = shalt.err (!%p6224_p7)
}
  0x7a   :  { %153 = dma.hbm_to_vmem [thread:$0]  %s7207_s16, 32, %s148_s26, [#allocation15], %s6306_s7, %s6306_s7, %s6307_s28  }
  0x7b   :  { %s6316_s3 = smov [#allocation19]   ;;  %s6317_s12 = smov [#allocation20]  }
  0x7c   :  { %s176_s0 = sshll.u32 %s6316_s3, 4  ;;  %s188_s4 = sshll.u32 %s6317_s12, 4  ;;  %s177_s0 = int_to_ptr.vmem [resolvable:$true] %s176_s0  ;;  %s189_s4 = int_to_ptr.vmem [resolvable:$true] %s188_s4 }
  0x7d   :  { %s6236_s13 = scalar_lea.vmem %s177_s0, 16  ;;  %s6240_s24 = scalar_lea.vmem %s177_s0, 32 }
  0x7e   :  { %p6237_p8 = scmp.ne.s32.totalorder %s177_s0, %s6236_s13  ;;  %p6241_p9 = scmp.lt.s32.totalorder %s177_s0, %s177_s0 }
  0x7f   :  { %p6242_p10 = scmp.lt.s32.totalorder %s6240_s24, %s6236_s13 }
  0x81   :  { %p6243_p11 = por %p6242_p10, %p6241_p9 }
  0x83   :  { %p6244_p12 = pnand %p6243_p11, %p6237_p8 }
  0x85   :  { %6247 = shalt.err (!%p6244_p12)
}
  0x86   :  { %179 = dma.hbm_to_vmem [thread:$0]  %s7211_s20, 16, %s177_s0, [#allocation18]  }
  0x87   :  { %s6256_s30 = scalar_lea.vmem %s189_s4, 16  ;;  %s6260_s16 = scalar_lea.vmem %s189_s4, 32 }
  0x88   :  { %p6257_p13 = scmp.ne.s32.totalorder %s189_s4, %s6256_s30  ;;  %p6261_p0 = scmp.lt.s32.totalorder %s189_s4, %s189_s4 }
  0x89   :  { %p6262_p1 = scmp.lt.s32.totalorder %s6260_s16, %s6256_s30 }
  0x8b   :  { %p6263_p2 = por %p6262_p1, %p6261_p0 }
  0x8d   :  { %p6264_p3 = pnand %p6263_p2, %p6257_p13 }
  0x8f   :  { %6267 = shalt.err (!%p6264_p3)
}
  0x90   :  { %191 = dma.hbm_to_vmem [thread:$0]  %s7213_s22, 16, %s189_s4, [#allocation21]  }
  0x91   :  { %6288 = dma.done.wait [#allocation3], 128  }
  0x92   :  { %6289 = vsyncadd [#allocation3], 4294967168 }
  0x93   :  { %6290 = dma.done.wait [#allocation6], 144  }
  0x94   :  { %6291 = vsyncadd [#allocation6], 4294967152 }
  0x95   :  { %6292 = dma.done.wait [#allocation9], 64  }
  0x96   :  { %6293 = vsyncadd [#allocation9], 4294967232 }
  0x97   :  { %6294 = dma.done.wait [#allocation12], 64  }
  0x98   :  { %6295 = vsyncadd [#allocation12], 4294967232 }
  0x99   :  { %6296 = dma.done.wait [#allocation15], 64  }
  0x9a   :  { %6297 = vsyncadd [#allocation15], 4294967232 }
  0x9b   :  { %6298 = dma.done.wait [#allocation18], 48  }
  0x9c   :  { %6299 = vsyncadd [#allocation18], 4294967248 }
  0x9d   :  { %6300 = dma.done.wait [#allocation21], 16  }
  0x9e   :  { %6301 = vsyncadd [#allocation21], 4294967280  ;;  %v6318_v0 = vmov 0.0   ;;  %vm6319_vm0 = vmmov 0   ;;  %v6320_v1 = vmov 0   ;;  %vm285_vm1 = vcmask 1045504  }
  0x9f   :  { %5530 = vmatprep.subr.mxu0 %v6318_v0  ;;  %5532 = vmatprep.mubr.msk.f32.mxu0 %vm6319_vm0, %v6318_v0  ;;  %vm281_vm2 = vcmask 48128   ;;  %v273_v2 = vld [vmem:[#allocation2] sm:$0x3f]  ;;  %s7230_s1 = sld [smem:[#allocation32_spill]]  ;;  %vm454_vm3 = vcmask 1042432   ;;  %v230_v12 = vlaneseq  ;;  %vm447_vm4 = vcmask 89088  }
  0xa0   :  { %5943 = vset.pattern.permute.xlu0 %v6320_v1  ;;  %5942 = vset.pattern.permute.xlu1 %v6320_v1  ;;  %s7231_s25 = sld [smem:[#allocation31_spill]]  ;;  %vm361_vm6 = vcmask 15360   ;;  %v5195_v21 = vld [vmem:[#allocation5] ss:$0 sm:$0xff]  ;;  %vm368_vm9 = vcmask 1041408   ;;  %vm541_vm12 = vcmask 1046528  }
  0xa1   :  { %5531 = vmatpush3.msk.msra.mxu0 %vm285_vm1, %v273_v2  ;;  %s7232_s3 = sld [smem:[#allocation33_spill]]  ;;  %v231_v13 = vand.u32 127, %v230_v12  ;;  %v533_v27 = vld [vmem:[#allocation7] sm:$0x7f]  ;;  %vm534_vm13 = vcmask 56320   ;;  %vm624_vm15 = vcmask 261120  }
  0xa2   :  { %v671_v53 = vld [vmem:[%s7199_s8 + $0x18] sm:$0xff]  ;;  %v670_v54 = vld [vmem:[%s7199_s8 + $0x10] sm:$0xff]  ;;  %v669_v55 = vld [vmem:[%s7199_s8 + $0x8] sm:$0xff]  ;;  %vm915_vm1 = vcmask 64512   ;;  %s6321_s24 = smov 120   ;;  %s6322_s5 = smov 112  }
  0xa3   :  { %v668_v56 = vld [vmem:[%s7199_s8] sm:$0xff]  ;;  %v756_v57 = vld [vmem:[%s7200_s9 + $0x18] sm:$0xff]  ;;  %v5207_v2 = vld [vmem:[#allocation8] ss:$0 sm:$0xff]  ;;  %s6323_s28 = smov 104  }
  0xa4   :  { %v754_v12 = vld [vmem:[%s7200_s9 + $0x8] sm:$0xff] }
  0xa5   :  { %v272_v3 = vld [vmem:[%s7230_s1] sm:$0x3] }
  0xa6   :  { %v228_v4 = vld [vmem:[%s7231_s25] sm:$0xff]  ;;  %v229_v6 = vld [vmem:[%s7231_s25 + $0x8] sm:$0xff]  ;;  %5533 = vmatmul.mubr.msk.f32.vlgmr.msra.gmra.mxu0 %vm281_vm2, %v272_v3 }
  0xa7   :  { %v5187_v5 = vadd.s32 4294967285, %v228_v4  ;;  %233 = vperm.xlu1 %5942, %v228_v4   ;;  %v5188_v7 = vadd.s32 4294967285, %v229_v6  ;;  %v360_v8 = vld [vmem:[%s7232_s3 + $0x8] sm:$0x7]  ;;  %v359_v9 = vld [vmem:[%s7232_s3] sm:$0xff]  ;;  %v5192_v10 = vadd.s32 4294967283, %v229_v6 }
  0xa8   :  { %5540 = vmatprep.subr.msk.mxu0 %vm454_vm3, %v360_v8  ;;  %v5191_v11 = vadd.s32 4294967283, %v228_v4  ;;  %v5208_v4 = vld [vmem:[#allocation10] ss:$0 sm:$0xff] }
  0xa9   :  { %247 = vperm.xlu0 %5943, %v5187_v5   ;;  %5541 = vmatpush3.msk.msra.mxu0 %vm454_vm3, %v360_v8 }
  0xaa   :  { %5542 = vmatprep.subr.mxu0 %v359_v9 }
  0xab   :  { %236 = vperm.xlu1 %5942, %v229_v6   ;;  %5543 = vmatpush3.msra.mxu0 %v359_v9 }
  0xac   :  { %5552 = vmatprep.subr.mxu0 %v671_v53 }
  0xad   :  { %250 = vperm.xlu0 %5943, %v5188_v7  }
  0xaf   :  { %264 = vperm.xlu1 %5942, %v5192_v10  }
  0xb1   :  { %261 = vperm.xlu0 %5943, %v5191_v11   ;;  %v755_v11 = vld [vmem:[%s7200_s9 + $0x10] sm:$0xff] }
 0x122   :  { %v234_v14 = vpop.permute.xlu1 %233 }
 0x123   :  { %vm238_vm5 = vcmp.eq.s32.totalorder %v234_v14, %v231_v13  ;;  %v835_v14 = vld [vmem:[%s7201_s10 + $0x18] sm:$0xff] }
 0x124   :  { %v248_v15 = vpop.permute.xlu0 %247  ;;  %v5185_v16 = vsel %vm238_vm5, 1.0, %v6318_v0 }
 0x125   :  { %vm252_vm7 = vcmp.eq.s32.totalorder %v248_v15, %v231_v13  ;;  %5544 = vmatprep.mubr.msk.f32.mxu0 %vm447_vm4, %v5185_v16  ;;  %v834_v15 = vld [vmem:[%s7201_s10 + $0x10] sm:$0xff]  ;;  %v833_v16 = vld [vmem:[%s7201_s10 + $0x8] sm:$0xff] }
 0x126   :  { %v237_v17 = vpop.permute.xlu1 %236  ;;  %v5189_v18 = vsel %vm252_vm7, 1.0, %v6318_v0 }
 0x127   :  { %vm239_vm8 = vcmp.eq.s32.totalorder %v237_v17, %v231_v13  ;;  %5537 = vmatprep.mubr.msk.f32.mxu1 %vm361_vm6, %v5189_v18  ;;  %v832_v17 = vld [vmem:[%s7201_s10] sm:$0xff] }
 0x128   :  { %v5186_v19 = vsel %vm239_vm8, 1.0, %v6318_v0  ;;  %v251_v20 = vpop.permute.xlu0 %250 }
 0x129   :  { %5545 = vmatmul.mubr.msk.f32.vlgmr.msra.gmra.mxu0 %vm447_vm4, %v5186_v19  ;;  %vm253_vm10 = vcmp.eq.s32.totalorder %v251_v20, %v231_v13 }
 0x12a   :  { %v265_v25 = vpop.permute.xlu1 %264  ;;  %v5190_v28 = vsel %vm253_vm10, 1.0, %v6318_v0  ;;  %5553 = vmatpush3.msra.mxu0 %v671_v53 }
 0x12b   :  { %vm267_vm14 = vcmp.eq.s32.totalorder %v265_v25, %v231_v13  ;;  %5554 = vmatprep.subr.mxu0 %v670_v54 }
 0x12c   :  { %v262_v22 = vpop.permute.xlu0 %261  ;;  %v5194_v30 = vsel %vm267_vm14, 1.0, %v6318_v0  ;;  %5555 = vmatpush3.msra.mxu0 %v670_v54 }
 0x12d   :  { %vm266_vm11 = vcmp.eq.s32.totalorder %v262_v22, %v231_v13  ;;  %5556 = vmatprep.subr.mxu0 %v669_v55  ;;  %v753_v13 = vld [vmem:[%s7200_s9] sm:$0xff] }
 0x12e   :  { %v5193_v29 = vsel %vm266_vm11, 1.0, %v6318_v0  ;;  %5557 = vmatpush3.msra.mxu0 %v669_v55 }
 0x12f   :  { %5558 = vmatprep.subr.mxu0 %v668_v56 }
 0x130   :  { %5559 = vmatpush3.msra.mxu0 %v668_v56 }
 0x131   :  { %5563 = vmatprep.subr.mxu0 %v756_v57 }
 0x166   :  { %v355_v23 = vpop.f32.mrf.mxu0 }
 0x167   :  { %v356_v24 = vadd.f32 %v5195_v21, %v355_v23 }
 0x168   :  { %v5534_v26 = vpop.f32.mrf.mxu0 }
 0x169   :  { %5535 = vmatprep.subr.msk.mxu1 %vm368_vm9, %v356_v24 }
 0x16a   :  { %5536 = vmatpush3.msk.msra.mxu1 %vm368_vm9, %v356_v24 }
 0x16b   :  { %5538 = vmatmul.mubr.msk.f32.vlgmr.msra.gmra.mxu1 %vm361_vm6, %v5190_v28  ;;  %5547 = vmatprep.subr.msk.mxu1 %vm541_vm12, %v533_v27 }
 0x16c   :  { %5548 = vmatpush3.msk.msra.mxu1 %vm541_vm12, %v533_v27  ;;  %5549 = vmatprep.mubr.msk.f32.mxu1 %vm534_vm13, %v5193_v29 }
 0x16d   :  { %5585 = vmatprep.subr.mxu1 %v6318_v0 }
 0x16f   :  { %5550 = vmatmul.mubr.msk.f32.vlgmr.msra.gmra.mxu1 %vm534_vm13, %v5194_v30 }
 0x170   :  { %5587 = vmatprep.mubr.msk.f32.mxu1 %vm6319_vm0, %v6318_v0 }
 0x1e9   :  { %v5546_v31 = vpop.f32.mrf.mxu0 }
 0x1eb   :  { %v524_v35 = vpop.f32.mrf.mxu0 }
 0x22b   :  { %v5539_v32 = vpop.f32.mrf.mxu1 }
 0x22c   :  { %v530_v34 = vadd.f32 %v5546_v31, %v5539_v32 }
 0x22d   :  { %v438_v33 = vpop.f32.mrf.mxu1 }
 0x22e   :  { %v525_v37 = vadd.f32 %v524_v35, %v438_v33 }
 0x22f   :  { %v5551_v36 = vpop.f32.mrf.mxu1 }
 0x230   :  { %v6531_v38 = vadd.f32 %v5551_v36, %v530_v34 }
 0x231   :  { %v611_v39 = vpop.f32.mrf.mxu1 }
 0x232   :  { %v6533_v40 = vadd.f32 %v611_v39, %v525_v37  ;;  %v628_v41 = vsel %vm624_vm15, %v6531_v38, 0.0 }
 0x233   :  { %629 = vadd.xlane.f32.xlu1 %v628_v41 }
 0x234   :  { %v625_v42 = vsel %vm624_vm15, %v6533_v40, 0.0 }
 0x235   :  { %626 = vadd.xlane.f32.xlu0 %v625_v42 }
 0x2bc   :  { %v630_v43 = vpop.xlane.xlu1 %629 }
 0x2bd   :  { %v633_v44 = vmul.f32 0.03125, %v630_v43 }
 0x2be   :  { %v627_v45 = vpop.xlane.xlu0 %626 }
 0x2bf   :  { %v632_v46 = vmul.f32 0.03125, %v627_v45  ;;  %v635_v47 = vsub.f32 %v6531_v38, %v633_v44 }
 0x2c1   :  { %v634_v48 = vsub.f32 %v6533_v40, %v632_v46  ;;  %v637_v51 = vmul.f32 %v635_v47, %v635_v47 }
 0x2c3   :  { %v636_v49 = vmul.f32 %v634_v48, %v634_v48  ;;  %v641_v52 = vsel %vm624_vm15, %v637_v51, 0.0 }
 0x2c5   :  { %v638_v50 = vsel %vm624_vm15, %v636_v49, 0.0 }
 0x2c6   :  { %639 = vadd.xlane.f32.xlu0 %v638_v50 }
 0x2ca   :  { %642 = vadd.xlane.f32.xlu0 %v641_v52 }
 0x34f   :  { %v640_v58 = vpop.xlane.xlu0 %639 }
 0x350   :  { %v644_v59 = vmul.f32 0.03125, %v640_v58 }
 0x352   :  { %v646_v60 = vadd.f32 1e-05, %v644_v59 }
 0x353   :  { %v643_v61 = vpop.xlane.xlu0 %642 }
 0x354   :  { %5944 = vrsqrt.f32 %v646_v60  ;;  %v645_v62 = vmul.f32 0.03125, %v643_v61 }
 0x356   :  { %v647_v63 = vadd.f32 1e-05, %v645_v62 }
 0x358   :  { %5946 = vrsqrt.f32 %v647_v63 }
 0x361   :  { %v5945_v1 = vpop.eup %5944 }
 0x362   :  { %v650_v3 = vmul.f32 %v5945_v1, %v634_v48 }
 0x364   :  { %v658_v5 = vmul.f32 %v5207_v2, %v650_v3 }
 0x365   :  { %v5947_v6 = vpop.eup %5946 }
 0x366   :  { %v651_v7 = vmul.f32 %v5947_v6, %v635_v47  ;;  %v666_v8 = vadd.f32 %v5208_v4, %v658_v5 }
 0x368   :  { %v659_v9 = vmul.f32 %v5207_v2, %v651_v7  ;;  %5560 = vmatprep.mubr.msk.f32.mxu0 %vm624_vm15, %v666_v8 }
 0x36a   :  { %v667_v10 = vadd.f32 %v5208_v4, %v659_v9 }
 0x36c   :  { %5561 = vmatmul.mubr.msk.f32.vlgmr.msra.gmra.mxu0 %vm624_vm15, %v667_v10 }
 0x36d   :  { %5564 = vmatpush3.msra.mxu0 %v756_v57  ;;  %5571 = vmatprep.mubr.msk.f32.mxu0 %vm624_vm15, %v666_v8 }
 0x36e   :  { %5565 = vmatprep.subr.mxu0 %v755_v11 }
 0x36f   :  { %5566 = vmatpush3.msra.mxu0 %v755_v11 }
 0x370   :  { %5567 = vmatprep.subr.mxu0 %v754_v12 }
 0x371   :  { %5568 = vmatpush3.msra.mxu0 %v754_v12 }
 0x372   :  { %5569 = vmatprep.subr.mxu0 %v753_v13 }
 0x373   :  { %5570 = vmatpush3.msra.mxu0 %v753_v13 }
 0x374   :  { %5572 = vmatmul.mubr.msk.f32.vlgmr.msra.gmra.mxu0 %vm624_vm15, %v667_v10  ;;  %5574 = vmatprep.subr.mxu0 %v835_v14 }
 0x375   :  { %5575 = vmatpush3.msra.mxu0 %v835_v14  ;;  %5582 = vmatprep.mubr.msk.f32.mxu0 %vm624_vm15, %v666_v8 }
 0x376   :  { %5576 = vmatprep.subr.mxu0 %v834_v15 }
 0x377   :  { %5577 = vmatpush3.msra.mxu0 %v834_v15 }
 0x378   :  { %5578 = vmatprep.subr.mxu0 %v833_v16 }
 0x379   :  { %5579 = vmatpush3.msra.mxu0 %v833_v16  ;;  %v911_v16 = vld [vmem:[%s7202_s11] sm:$0xff] }
 0x37a   :  { %5580 = vmatprep.subr.mxu0 %v832_v17 }
 0x37b   :  { %5581 = vmatpush3.msra.mxu0 %v832_v17 }
 0x37c   :  { %5583 = vmatmul.mubr.msk.f32.vlgmr.msra.gmra.mxu0 %vm624_vm15, %v667_v10  ;;  %5595 = vmatprep.subr.mxu0 %v6318_v0 }
 0x37d   :  { %5597 = vmatprep.mubr.msk.f32.mxu0 %vm6319_vm0, %v6318_v0 }
 0x42c   :  { %v6588_v18 = vpop.f32.mrf.mxu0 }
 0x42e   :  { %v6590_v19 = vpop.f32.mrf.mxu0 }
 0x434   :  { %v6592_v20 = vpop.f32.mrf.mxu0 }
 0x436   :  { %v6594_v21 = vpop.f32.mrf.mxu0 }
 0x437   :  { %5586 = vmatpush3.xpose.msk.msra.mxu1 %vm915_vm1, %v6594_v21 }
 0x438   :  { %5590 = vmatprep.subr.mxu1 %v6318_v0 }
 0x43a   :  { %5588 = vmatmul.mubr.msk.f32.vlgmr.msra.gmra.mxu1 %vm915_vm1, %v6590_v19 }
 0x43b   :  { %5591 = vmatpush3.xpose.msk.msra.mxu1 %vm915_vm1, %v6592_v20  ;;  %5592 = vmatprep.mubr.msk.f32.mxu1 %vm6319_vm0, %v6318_v0 }
 0x43c   :  { %v6605_v22 = vpop.f32.mrf.mxu0  ;;  %5600 = vmatprep.subr.mxu1 %v6318_v0 }
 0x43e   :  { %v6608_v23 = vpop.f32.mrf.mxu0  ;;  %5593 = vmatmul.mubr.msk.f32.vlgmr.msra.gmra.mxu1 %vm915_vm1, %v6588_v18 }
 0x43f   :  { %5596 = vmatpush3.msra.mxu0 %v6608_v23  ;;  %5601 = vmatpush3.msra.mxu1 %v6605_v22 }
 0x440   :  { %5605 = vmatprep.subr.mxu0 %v6318_v0  ;;  %5602 = vmatprep.mubr.msk.f32.mxu1 %vm6319_vm0, %v6318_v0 }
 0x441   :  { %5610 = vmatprep.subr.mxu1 %v6318_v0 }
 0x4fa   :  { %v988_v24 = vpop.f32.mrf.mxu1 }
 0x4fb   :  { %v1068_v25 = vmul.f32 0.17677669, %v988_v24 }
 0x4fc   :  { %v5589_v26 = vpop.f32.mrf.mxu1 }
 0x4fd   :  { %v1070_v27 = vsel %vm915_vm1, %v1068_v25, -inf }
 0x4fe   :  { %1071 = vmax.xlane.f32.xlu1 %v1070_v27  ;;  %v1064_v28 = vpop.f32.mrf.mxu1 }
 0x4ff   :  { %v1069_v29 = vmul.f32 0.17677669, %v1064_v28 }
 0x500   :  { %v5594_v30 = vpop.f32.mrf.mxu1 }
 0x501   :  { %v1073_v31 = vsel %vm915_vm1, %v1069_v29, -inf }
 0x502   :  { %1074 = vmax.xlane.f32.xlu0 %v1073_v31  ;;  %v912_v31 = vld [vmem:[%s7202_s11 + $0x8] sm:$0xff] }
 0x50f   :  { %1240 = vrot.lane.b32.xlu1 %v6594_v21, %s6321_s24 }
 0x587   :  { %v1072_v32 = vpop.xlane.xlu1 %1071 }
 0x588   :  { %v1076_v33 = vsub.f32 %v1068_v25, %v1072_v32 }
 0x58a   :  { %v1078_v34 = vmul.f32 1.442695, %v1076_v33 }
 0x58b   :  { %v1075_v35 = vpop.xlane.xlu0 %1074  ;;  %v1241_v44 = vpop.permute.xlu1 %1240 }
 0x58c   :  { %5948 = vpow2.f32 %v1078_v34  ;;  %v1077_v36 = vsub.f32 %v1069_v29, %v1075_v35 }
 0x58e   :  { %v1080_v37 = vmul.f32 1.442695, %v1077_v36 }
 0x590   :  { %5950 = vpow2.f32 %v1080_v37 }
 0x599   :  { %v5949_v39 = vpop.eup %5948 }
 0x59a   :  { %v1082_v41 = vsel %vm915_vm1, %v5949_v39, 0.0 }
 0x59b   :  { %1083 = vadd.xlane.f32.xlu1 %v1082_v41 }
 0x59d   :  { %v5951_v42 = vpop.eup %5950 }
 0x59e   :  { %v1085_v43 = vsel %vm915_vm1, %v5951_v42, 0.0 }
 0x59f   :  { %1086 = vadd.xlane.f32.xlu0 %v1085_v43 }
 0x5ac   :  { %1238 = vrot.lane.b32.xlu1 %v6590_v19, %s6321_s24 }
 0x5b0   :  { %1316 = vrot.lane.b32.xlu1 %v6588_v18, %s6321_s24 }
 0x5b5   :  { %1318 = vrot.lane.b32.xlu0 %v6592_v20, %s6321_s24 }
 0x624   :  { %v1084_v45 = vpop.xlane.xlu1 %1083 }
 0x625   :  { %5952 = vrcp.f32 %v1084_v45 }
 0x628   :  { %v1087_v46 = vpop.xlane.xlu0 %1086  ;;  %v1239_v50 = vpop.permute.xlu1 %1238 }
 0x629   :  { %5954 = vrcp.f32 %v1087_v46 }
 0x62c   :  { %v1319_v52 = vpop.permute.xlu0 %1318  ;;  %v1317_v53 = vpop.permute.xlu1 %1316 }
 0x632   :  { %v5953_v47 = vpop.eup %5952 }
 0x633   :  { %v1090_v48 = vmul.f32 %v5953_v47, %v5949_v39 }
 0x635   :  { %5598 = vmatmul.mubr.msk.f32.vlgmr.msra.gmra.mxu0 %vm915_vm1, %v1090_v48 }
 0x636   :  { %v5955_v49 = vpop.eup %5954  ;;  %5606 = vmatpush3.xpose.msk.msra.mxu0 %vm915_vm1, %v1241_v44  ;;  %5607 = vmatprep.mubr.msk.f32.mxu0 %vm6319_vm0, %v6318_v0 }
 0x637   :  { %v1091_v51 = vmul.f32 %v5955_v49, %v5951_v42  ;;  %5615 = vmatprep.subr.mxu0 %v6318_v0 }
 0x639   :  { %5603 = vmatmul.mubr.msk.f32.vlgmr.msra.gmra.mxu1 %vm915_vm1, %v1091_v51  ;;  %5608 = vmatmul.mubr.msk.f32.vlgmr.msra.gmra.mxu0 %vm915_vm1, %v1239_v50 }
 0x63a   :  { %5611 = vmatpush3.xpose.msk.msra.mxu1 %vm915_vm1, %v1319_v52  ;;  %5612 = vmatprep.mubr.msk.f32.mxu1 %vm6319_vm0, %v6318_v0 }
 0x63b   :  { %5620 = vmatprep.subr.mxu1 %v6318_v0  ;;  %5617 = vmatprep.mubr.msk.f32.mxu0 %vm6319_vm0, %v6318_v0 }
 0x63d   :  { %5613 = vmatmul.mubr.msk.f32.vlgmr.msra.gmra.mxu1 %vm915_vm1, %v1317_v53 }
 0x63e   :  { %5622 = vmatprep.mubr.msk.f32.mxu1 %vm6319_vm0, %v6318_v0 }
 0x6f5   :  { %v1161_v54 = vpop.f32.mrf.mxu0 }
 0x6f7   :  { %v5599_v55 = vpop.f32.mrf.mxu0 }
 0x6f9   :  { %v1234_v56 = vpop.f32.mrf.mxu1  ;;  %v1312_v57 = vpop.f32.mrf.mxu0 }
 0x6fa   :  { %v1394_v58 = vmul.f32 0.17677669, %v1312_v57 }
 0x6fb   :  { %v5604_v59 = vpop.f32.mrf.mxu1  ;;  %v5609_v60 = vpop.f32.mrf.mxu0 }
 0x6fc   :  { %v1396_v61 = vsel %vm915_vm1, %v1394_v58, -inf }
 0x6fd   :  { %v1390_v62 = vpop.f32.mrf.mxu1  ;;  %1397 = vmax.xlane.f32.xlu0 %v1396_v61 }
 0x6fe   :  { %v1395_v63 = vmul.f32 0.17677669, %v1390_v62 }
 0x6ff   :  { %v5614_v1 = vpop.f32.mrf.mxu1 }
 0x700   :  { %v1399_v2 = vsel %vm915_vm1, %v1395_v63, -inf }
 0x701   :  { %1400 = vmax.xlane.f32.xlu1 %v1399_v2 }
 0x712   :  { %1419 = vrot.lane.b32.xlu1 %v6608_v23, %s6321_s24 }
 0x716   :  { %1736 = vrot.lane.b32.xlu1 %v6594_v21, %s6322_s5 }
 0x71a   :  { %1814 = vrot.lane.b32.xlu1 %v6592_v20, %s6322_s5 }
 0x71e   :  { %1812 = vrot.lane.b32.xlu1 %v6588_v18, %s6322_s5 }
 0x786   :  { %v1398_v3 = vpop.xlane.xlu0 %1397 }
 0x787   :  { %v1402_v4 = vsub.f32 %v1394_v58, %v1398_v3 }
 0x789   :  { %v1404_v5 = vmul.f32 1.442695, %v1402_v4  ;;  %v913_v4 = vld [vmem:[%s7202_s11 + $0x10] sm:$0xff] }
 0x78a   :  { %v1401_v6 = vpop.xlane.xlu1 %1400 }
 0x78b   :  { %5956 = vpow2.f32 %v1404_v5  ;;  %v1403_v7 = vsub.f32 %v1395_v63, %v1401_v6 }
 0x78d   :  { %v1406_v8 = vmul.f32 1.442695, %v1403_v7 }
 0x78e   :  { %v1420_v9 = vpop.permute.xlu1 %1419 }
 0x78f   :  { %5958 = vpow2.f32 %v1406_v8  ;;  %5616 = vmatpush3.msra.mxu0 %v1420_v9 }
 0x790   :  { %5625 = vmatprep.subr.mxu0 %v912_v31 }
 0x792   :  { %v1737_v26 = vpop.permute.xlu1 %1736 }
 0x796   :  { %v1815_v29 = vpop.permute.xlu1 %1814 }
 0x798   :  { %v5957_v10 = vpop.eup %5956 }
 0x799   :  { %v1408_v11 = vsel %vm915_vm1, %v5957_v10, 0.0 }
 0x79a   :  { %1409 = vadd.xlane.f32.xlu0 %v1408_v11  ;;  %v1813_v30 = vpop.permute.xlu1 %1812 }
 0x79c   :  { %v5959_v12 = vpop.eup %5958 }
 0x79d   :  { %v1411_v13 = vsel %vm915_vm1, %v5959_v12, 0.0 }
 0x79e   :  { %1412 = vadd.xlane.f32.xlu0 %v1411_v13 }
 0x7b4   :  { %1496 = vrot.lane.b32.xlu0 %v6605_v22, %s6321_s24 }
 0x7b8   :  { %1734 = vrot.lane.b32.xlu0 %v6590_v19, %s6322_s5 }
 0x823   :  { %v1410_v14 = vpop.xlane.xlu0 %1409 }
 0x824   :  { %5960 = vrcp.f32 %v1410_v14 }
 0x827   :  { %v1413_v15 = vpop.xlane.xlu0 %1412 }
 0x828   :  { %5962 = vrcp.f32 %v1413_v15 }
 0x82b   :  { %v1497_v17 = vpop.permute.xlu0 %1496 }
 0x82c   :  { %5621 = vmatpush3.msra.mxu1 %v1497_v17 }
 0x82d   :  { %5630 = vmatprep.subr.mxu1 %v911_v16 }
 0x82f   :  { %v1735_v36 = vpop.permute.xlu0 %1734 }
 0x831   :  { %v5961_v24 = vpop.eup %5960 }
 0x832   :  { %v1416_v25 = vmul.f32 %v5961_v24, %v5957_v10 }
 0x834   :  { %5618 = vmatmul.mubr.msk.f32.vlgmr.msra.gmra.mxu0 %vm915_vm1, %v1416_v25 }
 0x835   :  { %v5963_v27 = vpop.eup %5962  ;;  %5626 = vmatpush3.msra.mxu0 %v912_v31 }
 0x836   :  { %v1417_v28 = vmul.f32 %v5963_v27, %v5959_v12  ;;  %5635 = vmatprep.subr.mxu0 %v6318_v0 }
 0x838   :  { %5623 = vmatmul.mubr.msk.f32.vlgmr.msra.gmra.mxu1 %vm915_vm1, %v1417_v28 }
 0x839   :  { %5632 = vmatprep.mubr.msk.f32.mxu1 %vm915_vm1, %v1161_v54  ;;  %5631 = vmatpush3.msra.mxu1 %v911_v16 }
 0x83a   :  { %5640 = vmatprep.subr.mxu1 %v6318_v0 }
 0x83c   :  { %5633 = vmatmul.mubr.msk.f32.vlgmr.msra.gmra.mxu1 %vm915_vm1, %v1234_v56 }
 0x83d   :  { %5641 = vmatpush3.xpose.msk.msra.mxu1 %vm915_vm1, %v1815_v29  ;;  %5642 = vmatprep.mubr.msk.f32.mxu1 %vm6319_vm0, %v6318_v0 }
 0x83e   :  { %5650 = vmatprep.subr.mxu1 %v6318_v0 }
 0x840   :  { %5643 = vmatmul.mubr.msk.f32.vlgmr.msra.gmra.mxu1 %vm915_vm1, %v1813_v30 }
 0x841   :  { %5652 = vmatprep.mubr.msk.f32.mxu1 %vm6319_vm0, %v6318_v0 }
 0x8f4   :  { %v1491_v32 = vpop.f32.mrf.mxu0 }
 0x8f5   :  { %5627 = vmatprep.mubr.msk.f32.mxu0 %vm915_vm1, %v1491_v32 }
 0x8f6   :  { %v5619_v33 = vpop.f32.mrf.mxu0 }
 0x8f8   :  { %v1568_v34 = vpop.f32.mrf.mxu1 }
 0x8f9   :  { %5628 = vmatmul.mubr.msk.f32.vlgmr.msra.gmra.mxu0 %vm915_vm1, %v1568_v34 }
 0x8fa   :  { %5636 = vmatpush3.xpose.msk.msra.mxu0 %vm915_vm1, %v1737_v26  ;;  %v5624_v35 = vpop.f32.mrf.mxu1  ;;  %5637 = vmatprep.mubr.msk.f32.mxu0 %vm6319_vm0, %v6318_v0 }
 0x8fb   :  { %5645 = vmatprep.subr.mxu0 %v6318_v0 }
 0x8fc   :  { %v6687_v37 = vpop.f32.mrf.mxu1 }
 0x8fd   :  { %5638 = vmatmul.mubr.msk.f32.vlgmr.msra.gmra.mxu0 %vm915_vm1, %v1735_v36 }
 0x8fe   :  { %v6690_v39 = vpop.f32.mrf.mxu1  ;;  %5647 = vmatprep.mubr.msk.f32.mxu0 %vm6319_vm0, %v6318_v0 }
 0x900   :  { %v1886_v41 = vpop.f32.mrf.mxu1 }
 0x901   :  { %v1891_v42 = vmul.f32 0.17677669, %v1886_v41 }
 0x902   :  { %v5644_v43 = vpop.f32.mrf.mxu1 }
 0x903   :  { %v1895_v44 = vsel %vm915_vm1, %v1891_v42, -inf }
 0x904   :  { %1896 = vmax.xlane.f32.xlu1 %v1895_v44 }
 0x915   :  { %1914 = vrot.lane.b32.xlu1 %v6608_v23, %s6322_s5 }
 0x919   :  { %2151 = vrot.lane.b32.xlu1 %v6594_v21, %s6323_s28 }
 0x91d   :  { %2229 = vrot.lane.b32.xlu1 %v6592_v20, %s6323_s28 }
 0x921   :  { %2227 = vrot.lane.b32.xlu1 %v6588_v18, %s6323_s28 }
 0x98d   :  { %v1897_v45 = vpop.xlane.xlu1 %1896 }
 0x98e   :  { %v1899_v47 = vsub.f32 %v1891_v42, %v1897_v45 }
 0x990   :  { %v1902_v48 = vmul.f32 1.442695, %v1899_v47 }
 0x991   :  { %v1915_v46 = vpop.permute.xlu1 %1914 }
 0x992   :  { %5646 = vmatpush3.msra.mxu0 %v1915_v46  ;;  %5964 = vpow2.f32 %v1902_v48 }
 0x993   :  { %5655 = vmatprep.subr.mxu0 %v913_v4 }
 0x995   :  { %v2152_v1 = vpop.permute.xlu1 %2151 }
 0x999   :  { %v2230_v11 = vpop.permute.xlu1 %2229 }
 0x99d   :  { %v2228_v14 = vpop.permute.xlu1 %2227 }
 0x99f   :  { %v5965_v54 = vpop.eup %5964 }
 0x9a0   :  { %v1907_v20 = vsel %vm915_vm1, %v5965_v54, 0.0 }
 0x9b9   :  { %v6703_v49 = vpop.f32.mrf.mxu0 }
 0x9ba   :  { %v1731_v26 = vadd.f32 %v6687_v37, %v6703_v49 }
 0x9bb   :  { %v6705_v50 = vpop.f32.mrf.mxu0 }
 0x9bc   :  { %v1726_v28 = vadd.f32 %v6690_v39, %v6705_v50 }
 0x9bd   :  { %v1808_v51 = vpop.f32.mrf.mxu0 }
 0x9be   :  { %v1890_v52 = vmul.f32 0.17677669, %v1808_v51 }
 0x9bf   :  { %v5639_v53 = vpop.f32.mrf.mxu0 }
 0x9c0   :  { %v1892_v21 = vsel %vm915_vm1, %v1890_v52, -inf }
 0x9c1   :  { %1893 = vmax.xlane.f32.xlu0 %v1892_v21 }
 0x9c5   :  { %1908 = vadd.xlane.f32.xlu0 %v1907_v20  ;;  %v5247_v20 = vld [vmem:[#allocation11] ss:$0 sm:$0xff] }
 0xa4a   :  { %v1894_v18 = vpop.xlane.xlu0 %1893 }
 0xa4b   :  { %v1898_v55 = vsub.f32 %v1890_v52, %v1894_v18 }
 0xa4d   :  { %v1900_v56 = vmul.f32 1.442695, %v1898_v55 }
 0xa4e   :  { %v1909_v59 = vpop.xlane.xlu0 %1908 }
 0xa4f   :  { %5966 = vpow2.f32 %v1900_v56 }
 0xa50   :  { %5968 = vrcp.f32 %v1909_v59 }
 0xa5c   :  { %v5967_v57 = vpop.eup %5966 }
 0xa5d   :  { %v1904_v58 = vsel %vm915_vm1, %v5967_v57, 0.0  ;;  %v5969_v61 = vpop.eup %5968 }
 0xa5e   :  { %1905 = vadd.xlane.f32.xlu0 %v1904_v58  ;;  %v1913_v63 = vmul.f32 %v5969_v61, %v5965_v54 }
 0xa74   :  { %1990 = vrot.lane.b32.xlu0 %v6605_v22, %s6322_s5 }
 0xa78   :  { %2149 = vrot.lane.b32.xlu0 %v6590_v19, %s6323_s28 }
 0xae7   :  { %v1906_v60 = vpop.xlane.xlu0 %1905 }
 0xae8   :  { %5970 = vrcp.f32 %v1906_v60 }
 0xaeb   :  { %v1991_v62 = vpop.permute.xlu0 %1990 }
 0xaec   :  { %5651 = vmatpush3.msra.mxu1 %v1991_v62 }
 0xaed   :  { %5653 = vmatmul.mubr.msk.f32.vlgmr.msra.gmra.mxu1 %vm915_vm1, %v1913_v63  ;;  %5660 = vmatprep.subr.mxu1 %v6318_v0 }
 0xaee   :  { %5661 = vmatpush3.xpose.msk.msra.mxu1 %vm915_vm1, %v2152_v1  ;;  %5662 = vmatprep.mubr.msk.f32.mxu1 %vm6319_vm0, %v6318_v0 }
 0xaef   :  { %v2150_v2 = vpop.permute.xlu0 %2149  ;;  %5670 = vmatprep.subr.mxu1 %v6318_v0 }
 0xaf1   :  { %5663 = vmatmul.mubr.msk.f32.vlgmr.msra.gmra.mxu1 %vm915_vm1, %v2150_v2 }
 0xaf2   :  { %5672 = vmatprep.mubr.msk.f32.mxu1 %vm6319_vm0, %v6318_v0 }
 0xaf5   :  { %v5971_v19 = vpop.eup %5970 }
 0xaf6   :  { %v1912_v3 = vmul.f32 %v5971_v19, %v5967_v57 }
 0xaf8   :  { %5648 = vmatmul.mubr.msk.f32.vlgmr.msra.gmra.mxu0 %vm915_vm1, %v1912_v3 }
 0xaf9   :  { %5656 = vmatpush3.msra.mxu0 %v913_v4 }
 0xafa   :  { %5665 = vmatprep.subr.mxu0 %v6318_v0 }
 0xbad   :  { %v2062_v5 = vpop.f32.mrf.mxu1 }
 0xbaf   :  { %v5654_v6 = vpop.f32.mrf.mxu1 }
 0xbb0   :  { %v2622_v6 = vld [vmem:[%s7206_s15 + $0x18] sm:$0xff] }
 0xbb1   :  { %v2223_v7 = vpop.f32.mrf.mxu1 }
 0xbb2   :  { %v2305_v8 = vmul.f32 0.17677669, %v2223_v7  ;;  %v2621_v7 = vld [vmem:[%s7206_s15 + $0x10] sm:$0xff] }
 0xbb3   :  { %v5664_v9 = vpop.f32.mrf.mxu1 }
 0xbb4   :  { %v2307_v10 = vsel %vm915_vm1, %v2305_v8, -inf  ;;  %v2619_v9 = vld [vmem:[%s7206_s15] sm:$0xff] }
 0xbb5   :  { %2308 = vmax.xlane.f32.xlu0 %v2307_v10  ;;  %v2728_v10 = vld [vmem:[%s7208_s17 + $0x78] sm:$0xff] }
 0xbb8   :  { %v1986_v12 = vpop.f32.mrf.mxu0 }
 0xbb9   :  { %5657 = vmatprep.mubr.msk.f32.mxu0 %vm915_vm1, %v1986_v12  ;;  %v2726_v12 = vld [vmem:[%s7208_s17 + $0x68] sm:$0xff] }
 0xbba   :  { %v5649_v13 = vpop.f32.mrf.mxu0  ;;  %5658 = vmatmul.mubr.msk.f32.vlgmr.msra.gmra.mxu0 %vm915_vm1, %v2062_v5 }
 0xbbb   :  { %5666 = vmatpush3.xpose.msk.msra.mxu0 %vm915_vm1, %v2230_v11  ;;  %5667 = vmatprep.mubr.msk.f32.mxu0 %vm6319_vm0, %v6318_v0  ;;  %v2727_v11 = vld [vmem:[%s7208_s17 + $0x70] sm:$0xff]  ;;  %v2725_v13 = vld [vmem:[%s7208_s17 + $0x60] sm:$0xff] }
 0xbbc   :  { %5675 = vmatprep.subr.mxu0 %v6318_v0 }
 0xbbe   :  { %5668 = vmatmul.mubr.msk.f32.vlgmr.msra.gmra.mxu0 %vm915_vm1, %v2228_v14  ;;  %v2724_v14 = vld [vmem:[%s7208_s17 + $0x58] sm:$0xff] }
 0xbbf   :  { %5677 = vmatprep.mubr.msk.f32.mxu0 %vm6319_vm0, %v6318_v0 }
 0xc3e   :  { %v2309_v15 = vpop.xlane.xlu0 %2308 }
 0xc3f   :  { %v2313_v16 = vsub.f32 %v2305_v8, %v2309_v15  ;;  %v2620_v8 = vld [vmem:[%s7206_s15 + $0x8] sm:$0xff]  ;;  %v2723_v15 = vld [vmem:[%s7208_s17 + $0x50] sm:$0xff] }
 0xc41   :  { %v2315_v17 = vmul.f32 1.442695, %v2313_v16  ;;  %v2722_v16 = vld [vmem:[%s7208_s17 + $0x48] sm:$0xff] }
 0xc43   :  { %5972 = vpow2.f32 %v2315_v17  ;;  %v2721_v17 = vld [vmem:[%s7208_s17 + $0x40] sm:$0xff] }
 0xc50   :  { %v5973_v24 = vpop.eup %5972 }
 0xc51   :  { %v2319_v25 = vsel %vm915_vm1, %v5973_v24, 0.0 }
 0xc52   :  { %2320 = vadd.xlane.f32.xlu0 %v2319_v25  ;;  %v2719_v25 = vld [vmem:[%s7208_s17 + $0x30] sm:$0xff] }
 0xc7a   :  { %v5659_v27 = vpop.f32.mrf.mxu0 }
 0xc7b   :  { %v2148_v29 = vadd.f32 %v5659_v27, %v1731_v26  ;;  %v2718_v26 = vld [vmem:[%s7208_s17 + $0x28] sm:$0xff]  ;;  %v2717_v27 = vld [vmem:[%s7208_s17 + $0x20] sm:$0xff] }
 0xc7c   :  { %v2138_v30 = vpop.f32.mrf.mxu0 }
 0xc7d   :  { %v2147_v31 = vadd.f32 %v2138_v30, %v1726_v28 }
 0xc7e   :  { %v2301_v32 = vpop.f32.mrf.mxu0 }
 0xc7f   :  { %v2306_v33 = vmul.f32 0.17677669, %v2301_v32 }
 0xc80   :  { %v5669_v34 = vpop.f32.mrf.mxu0 }
 0xc81   :  { %v2310_v35 = vsel %vm915_vm1, %v2306_v33, -inf }
 0xc82   :  { %2311 = vmax.xlane.f32.xlu1 %v2310_v35  ;;  %v5248_v35 = vld [vmem:[#allocation13] ss:$0 sm:$0xff] }
 0xc93   :  { %2329 = vrot.lane.b32.xlu1 %v6608_v23, %s6323_s28  ;;  %v914_v23 = vld [vmem:[%s7202_s11 + $0x18] sm:$0xff] }
 0xcdb   :  { %v2321_v36 = vpop.xlane.xlu0 %2320 }
 0xcdc   :  { %5974 = vrcp.f32 %v2321_v36 }
 0xce9   :  { %v5975_v37 = vpop.eup %5974 }
 0xcea   :  { %v2327_v39 = vmul.f32 %v5975_v37, %v5973_v24  ;;  %v2720_v24 = vld [vmem:[%s7208_s17 + $0x38] sm:$0xff] }
 0xd0b   :  { %v2312_v41 = vpop.xlane.xlu1 %2311 }
 0xd0c   :  { %v2314_v42 = vsub.f32 %v2306_v33, %v2312_v41 }
 0xd0e   :  { %v2317_v43 = vmul.f32 1.442695, %v2314_v42 }
 0xd0f   :  { %v2330_v44 = vpop.permute.xlu1 %2329 }
 0xd10   :  { %5976 = vpow2.f32 %v2317_v43  ;;  %5671 = vmatpush3.msra.mxu1 %v2330_v44  ;;  %v5249_v43 = vld [vmem:[#allocation14] ss:$0 sm:$0xff] }
 0xd11   :  { %5673 = vmatmul.mubr.msk.f32.vlgmr.msra.gmra.mxu1 %vm915_vm1, %v2327_v39  ;;  %5680 = vmatprep.subr.mxu1 %v914_v23 }
 0xd12   :  { %5681 = vmatpush3.msra.mxu1 %v914_v23  ;;  %v2715_v23 = vld [vmem:[%s7208_s17 + $0x10] sm:$0xff] }
 0xd13   :  { %5696 = vmatprep.subr.mxu1 %v2728_v10 }
 0xd1d   :  { %v5977_v45 = vpop.eup %5976 }
 0xd1e   :  { %v2322_v46 = vsel %vm915_vm1, %v5977_v45, 0.0 }
 0xd1f   :  { %2323 = vadd.xlane.f32.xlu0 %v2322_v46  ;;  %v2716_v46 = vld [vmem:[%s7208_s17 + $0x18] sm:$0xff] }
 0xd35   :  { %2405 = vrot.lane.b32.xlu0 %v6605_v22, %s6323_s28 }
 0xda8   :  { %v2324_v47 = vpop.xlane.xlu0 %2323 }
 0xda9   :  { %5978 = vrcp.f32 %v2324_v47  ;;  %v2714_v47 = vld [vmem:[%s7208_s17 + $0x8] sm:$0xff] }
 0xdac   :  { %v2406_v48 = vpop.permute.xlu0 %2405 }
 0xdad   :  { %5676 = vmatpush3.msra.mxu0 %v2406_v48  ;;  %v2713_v48 = vld [vmem:[%s7208_s17] sm:$0xff] }
 0xdae   :  { %5685 = vmatprep.subr.mxu0 %v2622_v6 }
 0xdb6   :  { %v5979_v49 = vpop.eup %5978 }
 0xdb7   :  { %v2328_v50 = vmul.f32 %v5979_v49, %v5977_v45  ;;  %v5250_v49 = vld [vmem:[#allocation16] ss:$0 sm:$0xff] }
 0xdb9   :  { %5678 = vmatmul.mubr.msk.f32.vlgmr.msra.gmra.mxu0 %vm915_vm1, %v2328_v50 }
 0xdba   :  { %5686 = vmatpush3.msra.mxu0 %v2622_v6  ;;  %v5258_v6 = vld [vmem:[%s7199_s8 + $0x30] sm:$0xff] }
 0xdbb   :  { %5687 = vmatprep.subr.mxu0 %v2621_v7 }
 0xdbc   :  { %5688 = vmatpush3.msra.mxu0 %v2621_v7  ;;  %v5257_v7 = vld [vmem:[%s7199_s8 + $0x28] sm:$0xff] }
 0xdbd   :  { %5689 = vmatprep.subr.mxu0 %v2620_v8 }
 0xdbe   :  { %5690 = vmatpush3.msra.mxu0 %v2620_v8  ;;  %v5256_v8 = vld [vmem:[%s7199_s8 + $0x20] sm:$0xff] }
 0xdbf   :  { %5691 = vmatprep.subr.mxu0 %v2619_v9 }
 0xdc0   :  { %5692 = vmatpush3.msra.mxu0 %v2619_v9  ;;  %v5265_v9 = vld [vmem:[%s7200_s9 + $0x38] sm:$0xff] }
 0xdd1   :  { %v2401_v51 = vpop.f32.mrf.mxu1 }
 0xdd2   :  { %5682 = vmatprep.mubr.msk.f32.mxu1 %vm915_vm1, %v2401_v51 }
 0xdd3   :  { %v5674_v52 = vpop.f32.mrf.mxu1 }
 0xe79   :  { %v2477_v53 = vpop.f32.mrf.mxu0 }
 0xe7a   :  { %5683 = vmatmul.mubr.msk.f32.vlgmr.msra.gmra.mxu1 %vm915_vm1, %v2477_v53 }
 0xe7b   :  { %v5679_v22 = vpop.f32.mrf.mxu0  ;;  %5697 = vmatpush3.msra.mxu1 %v2728_v10 }
 0xe7c   :  { %5698 = vmatprep.subr.mxu1 %v2727_v11 }
 0xe7d   :  { %5699 = vmatpush3.msra.mxu1 %v2727_v11 }
 0xe7e   :  { %5700 = vmatprep.subr.mxu1 %v2726_v12 }
 0xe7f   :  { %5701 = vmatpush3.msra.mxu1 %v2726_v12 }
 0xe80   :  { %5702 = vmatprep.subr.mxu1 %v2725_v13 }
 0xe81   :  { %5703 = vmatpush3.msra.mxu1 %v2725_v13 }
 0xe82   :  { %5704 = vmatprep.subr.mxu1 %v2724_v14 }
 0xe83   :  { %5705 = vmatpush3.msra.mxu1 %v2724_v14 }
 0xe84   :  { %5706 = vmatprep.subr.mxu1 %v2723_v15 }
 0xe85   :  { %5707 = vmatpush3.msra.mxu1 %v2723_v15 }
 0xe86   :  { %5708 = vmatprep.subr.mxu1 %v2722_v16 }
 0xe87   :  { %5709 = vmatpush3.msra.mxu1 %v2722_v16 }
 0xe88   :  { %5710 = vmatprep.subr.mxu1 %v2721_v17 }
 0xe89   :  { %5711 = vmatpush3.msra.mxu1 %v2721_v17  ;;  %v5254_v17 = vld [vmem:[#allocation8 + $0x1] ss:$0 sm:$0xff] }
 0xe8a   :  { %5712 = vmatprep.subr.mxu1 %v2720_v24 }
 0xe8b   :  { %5713 = vmatpush3.msra.mxu1 %v2720_v24 }
 0xe8c   :  { %5714 = vmatprep.subr.mxu1 %v2719_v25 }
 0xe8d   :  { %5715 = vmatpush3.msra.mxu1 %v2719_v25 }
 0xe8e   :  { %5716 = vmatprep.subr.mxu1 %v2718_v26 }
 0xe8f   :  { %5717 = vmatpush3.msra.mxu1 %v2718_v26 }
 0xe90   :  { %5718 = vmatprep.subr.mxu1 %v2717_v27 }
 0xe91   :  { %5719 = vmatpush3.msra.mxu1 %v2717_v27 }
 0xe92   :  { %5720 = vmatprep.subr.mxu1 %v2716_v46 }
 0xe93   :  { %5721 = vmatpush3.msra.mxu1 %v2716_v46 }
 0xe94   :  { %5722 = vmatprep.subr.mxu1 %v2715_v23 }
 0xe95   :  { %5723 = vmatpush3.msra.mxu1 %v2715_v23 }
 0xe96   :  { %5724 = vmatprep.subr.mxu1 %v2714_v47 }
 0xe97   :  { %5725 = vmatpush3.msra.mxu1 %v2714_v47 }
 0xe98   :  { %5726 = vmatprep.subr.mxu1 %v2713_v48 }
 0xe99   :  { %5727 = vmatpush3.msra.mxu1 %v2713_v48 }
 0xe9a   :  { %5769 = vmatprep.subr.mxu1 %v6318_v0 }
 0xf3a   :  { %v5684_v21 = vpop.f32.mrf.mxu1 }
 0xf3b   :  { %v2563_v54 = vadd.f32 %v5684_v21, %v2148_v29 }
 0xf3c   :  { %v2553_v18 = vpop.f32.mrf.mxu1 }
 0xf3d   :  { %v2565_v55 = vadd.f32 %v2563_v54, %v6531_v38  ;;  %v2562_v56 = vadd.f32 %v2553_v18, %v2147_v31 }
 0xf3f   :  { %v6757_v57 = vadd.f32 %v5247_v20, %v2565_v55  ;;  %v2564_v58 = vadd.f32 %v2562_v56, %v6533_v40 }
 0xf41   :  { %v6760_v59 = vadd.f32 %v5247_v20, %v2564_v58  ;;  %v2580_v60 = vsel %vm624_vm15, %v6757_v57, 0.0  ;;  %v5253_v20 = vld [vmem:[#allocation17] ss:$0 sm:$0xff] }
 0xf42   :  { %2581 = vadd.xlane.f32.xlu0 %v2580_v60 }
 0xf43   :  { %v2577_v61 = vsel %vm624_vm15, %v6760_v59, 0.0 }
 0xf44   :  { %2578 = vadd.xlane.f32.xlu1 %v2577_v61 }
 0xfcb   :  { %v2582_v62 = vpop.xlane.xlu0 %2581 }
 0xfcc   :  { %v2584_v63 = vmul.f32 0.03125, %v2582_v62 }
 0xfcd   :  { %v2579_v1 = vpop.xlane.xlu1 %2578 }
 0xfce   :  { %v6767_v38 = vsub.f32 %v6757_v57, %v2584_v63  ;;  %v2583_v2 = vmul.f32 0.03125, %v2579_v1 }
 0xfd0   :  { %v6770_v19 = vsub.f32 %v6760_v59, %v2583_v2  ;;  %v2588_v40 = vmul.f32 %v6767_v38, %v6767_v38 }
 0xfd2   :  { %v2592_v3 = vsel %vm624_vm15, %v2588_v40, 0.0  ;;  %v2587_v4 = vmul.f32 %v6770_v19, %v6770_v19 }
 0xfd3   :  { %2593 = vadd.xlane.f32.xlu0 %v2592_v3 }
 0xfd4   :  { %v2589_v5 = vsel %vm624_vm15, %v2587_v4, 0.0 }
 0xfd5   :  { %2590 = vadd.xlane.f32.xlu1 %v2589_v5  ;;  %v5259_v5 = vld [vmem:[%s7199_s8 + $0x38] sm:$0xff] }
 0xfd6   :  { %5731 = vmatprep.subr.mxu0 %v5259_v5 }
0x105c   :  { %v2594_v28 = vpop.xlane.xlu0 %2593 }
0x105d   :  { %v2596_v29 = vmul.f32 0.03125, %v2594_v28  ;;  %v5255_v28 = vld [vmem:[#allocation10 + $0x1] ss:$0 sm:$0xff] }
0x105e   :  { %v2591_v30 = vpop.xlane.xlu1 %2590 }
0x105f   :  { %v2598_v31 = vadd.f32 1e-05, %v2596_v29  ;;  %v2595_v32 = vmul.f32 0.03125, %v2591_v30 }
0x1061   :  { %5980 = vrsqrt.f32 %v2598_v31  ;;  %v2597_v33 = vadd.f32 1e-05, %v2595_v32  ;;  %v5264_v32 = vld [vmem:[%s7200_s9 + $0x30] sm:$0xff] }
0x1063   :  { %5982 = vrsqrt.f32 %v2597_v33  ;;  %v5263_v33 = vld [vmem:[%s7200_s9 + $0x28] sm:$0xff] }
0x106e   :  { %v5981_v34 = vpop.eup %5980 }
0x106f   :  { %v2602_v36 = vmul.f32 %v5981_v34, %v6767_v38  ;;  %v5262_v34 = vld [vmem:[%s7200_s9 + $0x20] sm:$0xff] }
0x1070   :  { %v5983_v41 = vpop.eup %5982 }
0x1071   :  { %v2601_v37 = vmul.f32 %v5983_v41, %v6770_v19  ;;  %v2610_v42 = vmul.f32 %v5248_v35, %v2602_v36  ;;  %v5270_v36 = vld [vmem:[%s7201_s10 + $0x30] sm:$0xff]  ;;  %v5269_v41 = vld [vmem:[%s7201_s10 + $0x28] sm:$0xff] }
0x1073   :  { %v2609_v44 = vmul.f32 %v5248_v35, %v2601_v37  ;;  %v2618_v45 = vadd.f32 %v5249_v43, %v2610_v42  ;;  %v5271_v35 = vld [vmem:[%s7201_s10 + $0x38] sm:$0xff]  ;;  %v5268_v37 = vld [vmem:[%s7201_s10 + $0x20] sm:$0xff] }
0x1075   :  { %v2617_v39 = vadd.f32 %v5249_v43, %v2609_v44 }
0x1077   :  { %5693 = vmatprep.mubr.msk.f32.mxu0 %vm624_vm15, %v2617_v39 }
0x1078   :  { %5694 = vmatmul.mubr.msk.f32.vlgmr.msra.gmra.mxu0 %vm624_vm15, %v2618_v45 }
0x1079   :  { %5732 = vmatpush3.msra.mxu0 %v5259_v5 }
0x107a   :  { %5733 = vmatprep.subr.mxu0 %v5258_v6 }
0x107b   :  { %5734 = vmatpush3.msra.mxu0 %v5258_v6 }
0x107c   :  { %5735 = vmatprep.subr.mxu0 %v5257_v7 }
0x107d   :  { %5736 = vmatpush3.msra.mxu0 %v5257_v7 }
0x107e   :  { %5737 = vmatprep.subr.mxu0 %v5256_v8 }
0x107f   :  { %5738 = vmatpush3.msra.mxu0 %v5256_v8 }
0x1080   :  { %5742 = vmatprep.subr.mxu0 %v5265_v9 }
0x1138   :  { %v5695_v50 = vpop.f32.mrf.mxu0 }
0x1139   :  { %v2708_v51 = vadd.f32 %v5695_v50, %v5250_v49 }
0x113a   :  { %v2702_v52 = vpop.f32.mrf.mxu0 }
0x113b   :  { %v2703_v53 = vadd.f32 %v5250_v49, %v2702_v52  ;;  %v2712_v21 = vmax.f32 %v2708_v51, 0.0 }
0x113d   :  { %v2711_v22 = vmax.f32 %v2703_v53, 0.0 }
0x113f   :  { %5728 = vmatprep.mubr.f32.mxu1 %v2711_v22 }
0x1140   :  { %5729 = vmatmul.mubr.f32.vlgmr.msra.gmra.mxu1 %v2712_v21 }
0x1141   :  { %5771 = vmatprep.mubr.msk.f32.mxu1 %vm6319_vm0, %v6318_v0 }
0x1200   :  { %v5730_v54 = vpop.f32.mrf.mxu1 }
0x1201   :  { %v2805_v18 = vadd.f32 %v5730_v54, %v6757_v57 }
0x1202   :  { %v2795_v55 = vpop.f32.mrf.mxu1 }
0x1203   :  { %v6846_v56 = vadd.f32 %v5253_v20, %v2805_v18  ;;  %v2804_v58 = vadd.f32 %v2795_v55, %v6760_v59 }
0x1205   :  { %v6849_v60 = vadd.f32 %v5253_v20, %v2804_v58  ;;  %v2822_v61 = vsel %vm624_vm15, %v6846_v56, 0.0 }
0x1206   :  { %2823 = vadd.xlane.f32.xlu0 %v2822_v61 }
0x1207   :  { %v2819_v62 = vsel %vm624_vm15, %v6849_v60, 0.0 }
0x1208   :  { %2820 = vadd.xlane.f32.xlu1 %v2819_v62 }
0x128f   :  { %v2824_v63 = vpop.xlane.xlu0 %2823 }
0x1290   :  { %v2826_v1 = vmul.f32 0.03125, %v2824_v63 }
0x1291   :  { %v2821_v38 = vpop.xlane.xlu1 %2820 }
0x1292   :  { %v2828_v57 = vsub.f32 %v6846_v56, %v2826_v1  ;;  %v2825_v2 = vmul.f32 0.03125, %v2821_v38 }
0x1294   :  { %v2827_v19 = vsub.f32 %v6849_v60, %v2825_v2  ;;  %v2830_v40 = vmul.f32 %v2828_v57, %v2828_v57 }
0x1296   :  { %v2834_v59 = vsel %vm624_vm15, %v2830_v40, 0.0  ;;  %v2829_v3 = vmul.f32 %v2827_v19, %v2827_v19 }
0x1297   :  { %2835 = vadd.xlane.f32.xlu0 %v2834_v59 }
0x1298   :  { %v2831_v4 = vsel %vm624_vm15, %v2829_v3, 0.0 }
0x1299   :  { %2832 = vadd.xlane.f32.xlu1 %v2831_v4 }
0x1320   :  { %v2836_v10 = vpop.xlane.xlu0 %2835 }
0x1321   :  { %v2838_v11 = vmul.f32 0.03125, %v2836_v10 }
0x1322   :  { %v2833_v12 = vpop.xlane.xlu1 %2832 }
0x1323   :  { %v2840_v13 = vadd.f32 1e-05, %v2838_v11  ;;  %v2837_v14 = vmul.f32 0.03125, %v2833_v12 }
0x1325   :  { %5984 = vrsqrt.f32 %v2840_v13  ;;  %v2839_v15 = vadd.f32 1e-05, %v2837_v14 }
0x1327   :  { %5986 = vrsqrt.f32 %v2839_v15 }
0x1332   :  { %v5985_v16 = vpop.eup %5984 }
0x1333   :  { %v2844_v24 = vmul.f32 %v5985_v16, %v2828_v57 }
0x1334   :  { %v5987_v25 = vpop.eup %5986 }
0x1335   :  { %v2843_v26 = vmul.f32 %v5987_v25, %v2827_v19  ;;  %v2852_v27 = vmul.f32 %v5254_v17, %v2844_v24 }
0x1337   :  { %v2851_v29 = vmul.f32 %v5254_v17, %v2843_v26  ;;  %v2860_v31 = vadd.f32 %v5255_v28, %v2852_v27 }
0x1339   :  { %v2859_v30 = vadd.f32 %v5255_v28, %v2851_v29 }
0x133b   :  { %5739 = vmatprep.mubr.msk.f32.mxu0 %vm624_vm15, %v2859_v30 }
0x133c   :  { %5740 = vmatmul.mubr.msk.f32.vlgmr.msra.gmra.mxu0 %vm624_vm15, %v2860_v31 }
0x133d   :  { %5743 = vmatpush3.msra.mxu0 %v5265_v9  ;;  %5750 = vmatprep.mubr.msk.f32.mxu0 %vm624_vm15, %v2859_v30 }
0x133e   :  { %5744 = vmatprep.subr.mxu0 %v5264_v32 }
0x133f   :  { %5745 = vmatpush3.msra.mxu0 %v5264_v32 }
0x1340   :  { %5746 = vmatprep.subr.mxu0 %v5263_v33 }
0x1341   :  { %5747 = vmatpush3.msra.mxu0 %v5263_v33 }
0x1342   :  { %5748 = vmatprep.subr.mxu0 %v5262_v34 }
0x1343   :  { %5749 = vmatpush3.msra.mxu0 %v5262_v34 }
0x1344   :  { %5751 = vmatmul.mubr.msk.f32.vlgmr.msra.gmra.mxu0 %vm624_vm15, %v2860_v31  ;;  %5753 = vmatprep.subr.mxu0 %v5271_v35 }
0x1345   :  { %5754 = vmatpush3.msra.mxu0 %v5271_v35  ;;  %5761 = vmatprep.mubr.msk.f32.mxu0 %vm624_vm15, %v2859_v30 }
0x1346   :  { %5755 = vmatprep.subr.mxu0 %v5270_v36 }
0x1347   :  { %5756 = vmatpush3.msra.mxu0 %v5270_v36 }
0x1348   :  { %5757 = vmatprep.subr.mxu0 %v5269_v41 }
0x1349   :  { %5758 = vmatpush3.msra.mxu0 %v5269_v41  ;;  %v5274_v41 = vld [vmem:[%s7202_s11 + $0x20] sm:$0xff] }
0x134a   :  { %5759 = vmatprep.subr.mxu0 %v5268_v37 }
0x134b   :  { %5760 = vmatpush3.msra.mxu0 %v5268_v37 }
0x134c   :  { %5762 = vmatmul.mubr.msk.f32.vlgmr.msra.gmra.mxu0 %vm624_vm15, %v2860_v31  ;;  %5764 = vmatprep.subr.mxu0 %v6318_v0 }
0x134d   :  { %5766 = vmatprep.mubr.msk.f32.mxu0 %vm6319_vm0, %v6318_v0 }
0x13fc   :  { %v6904_v42 = vpop.f32.mrf.mxu0 }
0x13fe   :  { %v6906_v43 = vpop.f32.mrf.mxu0 }
0x1404   :  { %v6908_v44 = vpop.f32.mrf.mxu0 }
0x1405   :  { %5770 = vmatpush3.xpose.msk.msra.mxu1 %vm915_vm1, %v6908_v44 }
0x1406   :  { %v6912_v39 = vpop.f32.mrf.mxu0  ;;  %5779 = vmatprep.subr.mxu1 %v6318_v0 }
0x1407   :  { %5765 = vmatpush3.xpose.msk.msra.mxu0 %vm915_vm1, %v6912_v39 }
0x1408   :  { %5772 = vmatmul.mubr.msk.f32.vlgmr.msra.gmra.mxu1 %vm915_vm1, %v6904_v42  ;;  %5774 = vmatprep.subr.mxu0 %v6318_v0 }
0x1409   :  { %5781 = vmatprep.mubr.msk.f32.mxu1 %vm6319_vm0, %v6318_v0 }
0x140a   :  { %5767 = vmatmul.mubr.msk.f32.vlgmr.msra.gmra.mxu0 %vm915_vm1, %v6906_v43 }
0x140b   :  { %5776 = vmatprep.mubr.msk.f32.mxu0 %vm6319_vm0, %v6318_v0 }
0x140c   :  { %v6926_v45 = vpop.f32.mrf.mxu0 }
0x140d   :  { %5780 = vmatpush3.msra.mxu1 %v6926_v45 }
0x140e   :  { %v6929_v46 = vpop.f32.mrf.mxu0  ;;  %5789 = vmatprep.subr.mxu1 %v6318_v0 }
0x140f   :  { %5775 = vmatpush3.msra.mxu0 %v6929_v46 }
0x1410   :  { %5784 = vmatprep.subr.mxu0 %v6318_v0 }
0x14c8   :  { %v3260_v23 = vpop.f32.mrf.mxu1 }
0x14c9   :  { %v3265_v47 = vmul.f32 0.17677669, %v3260_v23 }
0x14ca   :  { %v3184_v48 = vpop.f32.mrf.mxu0  ;;  %v5773_v49 = vpop.f32.mrf.mxu1 }
0x14cb   :  { %v3264_v50 = vmul.f32 0.17677669, %v3184_v48  ;;  %v3269_v51 = vsel %vm915_vm1, %v3265_v47, -inf }
0x14cc   :  { %3270 = vmax.xlane.f32.xlu0 %v3269_v51  ;;  %v5768_v52 = vpop.f32.mrf.mxu0 }
0x14cd   :  { %v3266_v53 = vsel %vm915_vm1, %v3264_v50, -inf }
0x14ce   :  { %3267 = vmax.xlane.f32.xlu1 %v3266_v53  ;;  %v5275_v53 = vld [vmem:[%s7202_s11 + $0x28] sm:$0xff] }
0x14df   :  { %3436 = vrot.lane.b32.xlu1 %v6912_v39, %s6321_s24 }
0x14e3   :  { %3434 = vrot.lane.b32.xlu1 %v6906_v43, %s6321_s24 }
0x1555   :  { %v3271_v22 = vpop.xlane.xlu0 %3270 }
0x1556   :  { %v3273_v21 = vsub.f32 %v3265_v47, %v3271_v22 }
0x1557   :  { %v3268_v54 = vpop.xlane.xlu1 %3267 }
0x1558   :  { %v3276_v20 = vmul.f32 1.442695, %v3273_v21  ;;  %v3272_v18 = vsub.f32 %v3264_v50, %v3268_v54 }
0x155a   :  { %5988 = vpow2.f32 %v3276_v20  ;;  %v3274_v55 = vmul.f32 1.442695, %v3272_v18 }
0x155b   :  { %v3437_v1 = vpop.permute.xlu1 %3436 }
0x155c   :  { %5990 = vpow2.f32 %v3274_v55 }
0x155f   :  { %v3435_v38 = vpop.permute.xlu1 %3434 }
0x1567   :  { %v5989_v58 = vpop.eup %5988 }
0x1568   :  { %v3281_v61 = vsel %vm915_vm1, %v5989_v58, 0.0 }
0x1569   :  { %v5991_v62 = vpop.eup %5990  ;;  %3282 = vadd.xlane.f32.xlu0 %v3281_v61 }
0x156a   :  { %v3278_v63 = vsel %vm915_vm1, %v5991_v62, 0.0 }
0x156b   :  { %3279 = vadd.xlane.f32.xlu1 %v3278_v63 }
0x157c   :  { %3512 = vrot.lane.b32.xlu1 %v6904_v42, %s6321_s24 }
0x157f   :  { %3514 = vrot.lane.b32.xlu0 %v6908_v44, %s6321_s24 }
0x15f2   :  { %v3283_v57 = vpop.xlane.xlu0 %3282 }
0x15f3   :  { %5992 = vrcp.f32 %v3283_v57 }
0x15f4   :  { %v3280_v2 = vpop.xlane.xlu1 %3279 }
0x15f5   :  { %5994 = vrcp.f32 %v3280_v2 }
0x15f6   :  { %v3515_v3 = vpop.permute.xlu0 %3514 }
0x15f8   :  { %v3513_v5 = vpop.permute.xlu1 %3512 }
0x1600   :  { %v5993_v19 = vpop.eup %5992 }
0x1601   :  { %v3287_v40 = vmul.f32 %v5993_v19, %v5989_v58 }
0x1602   :  { %v5995_v59 = vpop.eup %5994 }
0x1603   :  { %5782 = vmatmul.mubr.msk.f32.vlgmr.msra.gmra.mxu1 %vm915_vm1, %v3287_v40  ;;  %v3286_v4 = vmul.f32 %v5995_v59, %v5991_v62 }
0x1604   :  { %5790 = vmatpush3.xpose.msk.msra.mxu1 %vm915_vm1, %v3515_v3  ;;  %5791 = vmatprep.mubr.msk.f32.mxu1 %vm6319_vm0, %v6318_v0 }
0x1605   :  { %5777 = vmatmul.mubr.msk.f32.vlgmr.msra.gmra.mxu0 %vm915_vm1, %v3286_v4  ;;  %5799 = vmatprep.subr.mxu1 %v6318_v0 }
0x1606   :  { %5785 = vmatpush3.xpose.msk.msra.mxu0 %vm915_vm1, %v3437_v1  ;;  %5786 = vmatprep.mubr.msk.f32.mxu0 %vm6319_vm0, %v6318_v0 }
0x1607   :  { %5792 = vmatmul.mubr.msk.f32.vlgmr.msra.gmra.mxu1 %vm915_vm1, %v3513_v5  ;;  %5794 = vmatprep.subr.mxu0 %v6318_v0 }
0x1608   :  { %5801 = vmatprep.mubr.msk.f32.mxu1 %vm6319_vm0, %v6318_v0 }
0x1609   :  { %5787 = vmatmul.mubr.msk.f32.vlgmr.msra.gmra.mxu0 %vm915_vm1, %v3435_v38 }
0x160a   :  { %5796 = vmatprep.mubr.msk.f32.mxu0 %vm6319_vm0, %v6318_v0 }
0x16c3   :  { %v3430_v6 = vpop.f32.mrf.mxu1 }
0x16c5   :  { %v3357_v7 = vpop.f32.mrf.mxu0  ;;  %v5783_v8 = vpop.f32.mrf.mxu1 }
0x16c7   :  { %v5778_v9 = vpop.f32.mrf.mxu0  ;;  %v3586_v10 = vpop.f32.mrf.mxu1 }
0x16c8   :  { %v3591_v11 = vmul.f32 0.17677669, %v3586_v10 }
0x16c9   :  { %v3508_v12 = vpop.f32.mrf.mxu0  ;;  %v5793_v13 = vpop.f32.mrf.mxu1 }
0x16ca   :  { %v3590_v14 = vmul.f32 0.17677669, %v3508_v12  ;;  %v3595_v15 = vsel %vm915_vm1, %v3591_v11, -inf }
0x16cb   :  { %3596 = vmax.xlane.f32.xlu1 %v3595_v15  ;;  %v5788_v16 = vpop.f32.mrf.mxu0 }
0x16cc   :  { %v3592_v17 = vsel %vm915_vm1, %v3590_v14, -inf }
0x16cd   :  { %3593 = vmax.xlane.f32.xlu0 %v3592_v17 }
0x16dc   :  { %3615 = vrot.lane.b32.xlu1 %v6929_v46, %s6321_s24 }
0x16e0   :  { %3932 = vrot.lane.b32.xlu1 %v6912_v39, %s6322_s5 }
0x16e4   :  { %4010 = vrot.lane.b32.xlu1 %v6908_v44, %s6322_s5 }
0x16e8   :  { %4008 = vrot.lane.b32.xlu1 %v6904_v42, %s6322_s5 }
0x1754   :  { %v3597_v24 = vpop.xlane.xlu1 %3596 }
0x1755   :  { %v3599_v25 = vsub.f32 %v3591_v11, %v3597_v24 }
0x1756   :  { %v3594_v26 = vpop.xlane.xlu0 %3593 }
0x1757   :  { %v3602_v27 = vmul.f32 1.442695, %v3599_v25  ;;  %v3598_v28 = vsub.f32 %v3590_v14, %v3594_v26  ;;  %v5276_v25 = vld [vmem:[%s7202_s11 + $0x30] sm:$0xff] }
0x1758   :  { %v3616_v29 = vpop.permute.xlu1 %3615 }
0x1759   :  { %5996 = vpow2.f32 %v3602_v27  ;;  %v3600_v30 = vmul.f32 1.442695, %v3598_v28  ;;  %5795 = vmatpush3.msra.mxu0 %v3616_v29 }
0x175a   :  { %5804 = vmatprep.subr.mxu0 %v5275_v53 }
0x175b   :  { %5998 = vpow2.f32 %v3600_v30 }
0x175c   :  { %v3933_v23 = vpop.permute.xlu1 %3932 }
0x1760   :  { %v4011_v50 = vpop.permute.xlu1 %4010 }
0x1764   :  { %v4009_v52 = vpop.permute.xlu1 %4008 }
0x1766   :  { %v5997_v31 = vpop.eup %5996 }
0x1767   :  { %v3607_v32 = vsel %vm915_vm1, %v5997_v31, 0.0 }
0x1768   :  { %v5999_v33 = vpop.eup %5998  ;;  %3608 = vadd.xlane.f32.xlu0 %v3607_v32 }
0x1769   :  { %v3604_v34 = vsel %vm915_vm1, %v5999_v33, 0.0 }
0x176c   :  { %3605 = vadd.xlane.f32.xlu0 %v3604_v34 }
0x1782   :  { %3692 = vrot.lane.b32.xlu0 %v6926_v45, %s6321_s24 }
0x1786   :  { %3930 = vrot.lane.b32.xlu0 %v6906_v43, %s6322_s5 }
0x17f1   :  { %v3609_v35 = vpop.xlane.xlu0 %3608 }
0x17f2   :  { %6000 = vrcp.f32 %v3609_v35 }
0x17f5   :  { %v3606_v36 = vpop.xlane.xlu0 %3605 }
0x17f6   :  { %6002 = vrcp.f32 %v3606_v36 }
0x17f9   :  { %v3693_v37 = vpop.permute.xlu0 %3692 }
0x17fa   :  { %5800 = vmatpush3.msra.mxu1 %v3693_v37 }
0x17fb   :  { %5809 = vmatprep.subr.mxu1 %v5274_v41 }
0x17fd   :  { %v3931_v61 = vpop.permute.xlu0 %3930 }
0x17ff   :  { %v6001_v47 = vpop.eup %6000 }
0x1800   :  { %v3613_v48 = vmul.f32 %v6001_v47, %v5997_v31 }
0x1802   :  { %5802 = vmatmul.mubr.msk.f32.vlgmr.msra.gmra.mxu1 %vm915_vm1, %v3613_v48 }
0x1803   :  { %v6003_v49 = vpop.eup %6002  ;;  %5811 = vmatprep.mubr.msk.f32.mxu1 %vm915_vm1, %v3357_v7  ;;  %5810 = vmatpush3.msra.mxu1 %v5274_v41 }
0x1804   :  { %5819 = vmatprep.subr.mxu1 %v6318_v0  ;;  %v3612_v51 = vmul.f32 %v6003_v49, %v5999_v33 }
0x1806   :  { %5797 = vmatmul.mubr.msk.f32.vlgmr.msra.gmra.mxu0 %vm915_vm1, %v3612_v51  ;;  %5812 = vmatmul.mubr.msk.f32.vlgmr.msra.gmra.mxu1 %vm915_vm1, %v3430_v6 }
0x1807   :  { %5820 = vmatpush3.xpose.msk.msra.mxu1 %vm915_vm1, %v4011_v50  ;;  %5821 = vmatprep.mubr.msk.f32.mxu1 %vm6319_vm0, %v6318_v0 }
0x1808   :  { %5829 = vmatprep.subr.mxu1 %v6318_v0  ;;  %5805 = vmatpush3.msra.mxu0 %v5275_v53 }
0x1809   :  { %5814 = vmatprep.subr.mxu0 %v6318_v0 }
0x180a   :  { %5822 = vmatmul.mubr.msk.f32.vlgmr.msra.gmra.mxu1 %vm915_vm1, %v4009_v52 }
0x180b   :  { %5831 = vmatprep.mubr.msk.f32.mxu1 %vm6319_vm0, %v6318_v0 }
0x18c2   :  { %v3764_v22 = vpop.f32.mrf.mxu1 }
0x18c4   :  { %v5803_v21 = vpop.f32.mrf.mxu1 }
0x18c6   :  { %v3687_v54 = vpop.f32.mrf.mxu0  ;;  %v6997_v20 = vpop.f32.mrf.mxu1 }
0x18c7   :  { %5806 = vmatprep.mubr.msk.f32.mxu0 %vm915_vm1, %v3687_v54 }
0x18c8   :  { %v5798_v18 = vpop.f32.mrf.mxu0  ;;  %5807 = vmatmul.mubr.msk.f32.vlgmr.msra.gmra.mxu0 %vm915_vm1, %v3764_v22  ;;  %v7001_v55 = vpop.f32.mrf.mxu1 }
0x18c9   :  { %5815 = vmatpush3.xpose.msk.msra.mxu0 %vm915_vm1, %v3933_v23  ;;  %5816 = vmatprep.mubr.msk.f32.mxu0 %vm6319_vm0, %v6318_v0 }
0x18ca   :  { %v4082_v58 = vpop.f32.mrf.mxu1  ;;  %5824 = vmatprep.subr.mxu0 %v6318_v0 }
0x18cb   :  { %v4087_v62 = vmul.f32 0.17677669, %v4082_v58 }
0x18cc   :  { %5817 = vmatmul.mubr.msk.f32.vlgmr.msra.gmra.mxu0 %vm915_vm1, %v3931_v61  ;;  %v5823_v63 = vpop.f32.mrf.mxu1 }
0x18cd   :  { %v4091_v1 = vsel %vm915_vm1, %v4087_v62, -inf  ;;  %5826 = vmatprep.mubr.msk.f32.mxu0 %vm6319_vm0, %v6318_v0 }
0x18ce   :  { %4092 = vmax.xlane.f32.xlu1 %v4091_v1 }
0x18df   :  { %4110 = vrot.lane.b32.xlu1 %v6929_v46, %s6322_s5 }
0x18e3   :  { %4347 = vrot.lane.b32.xlu1 %v6912_v39, %s6323_s28 }
0x18e7   :  { %4425 = vrot.lane.b32.xlu1 %v6908_v44, %s6323_s28 }
0x18eb   :  { %4423 = vrot.lane.b32.xlu1 %v6904_v42, %s6323_s28 }
0x1957   :  { %v4093_v38 = vpop.xlane.xlu1 %4092 }
0x1958   :  { %v4095_v2 = vsub.f32 %v4087_v62, %v4093_v38 }
0x195a   :  { %v4098_v19 = vmul.f32 1.442695, %v4095_v2 }
0x195b   :  { %v4111_v57 = vpop.permute.xlu1 %4110 }
0x195c   :  { %5825 = vmatpush3.msra.mxu0 %v4111_v57  ;;  %6004 = vpow2.f32 %v4098_v19 }
0x195d   :  { %5834 = vmatprep.subr.mxu0 %v5276_v25 }
0x195f   :  { %v4348_v16 = vpop.permute.xlu1 %4347 }
0x1963   :  { %v4426_v32 = vpop.permute.xlu1 %4425 }
0x1967   :  { %v4424_v35 = vpop.permute.xlu1 %4423 }
0x1969   :  { %v6005_v6 = vpop.eup %6004 }
0x196a   :  { %v4103_v44 = vsel %vm915_vm1, %v6005_v6, 0.0 }
0x1988   :  { %v7019_v40 = vpop.f32.mrf.mxu0 }
0x1989   :  { %v3927_v48 = vadd.f32 %v6997_v20, %v7019_v40 }
0x198a   :  { %v7021_v59 = vpop.f32.mrf.mxu0 }
0x198b   :  { %v3922_v50 = vadd.f32 %v7001_v55, %v7021_v59 }
0x198c   :  { %v4004_v3 = vpop.f32.mrf.mxu0 }
0x198d   :  { %v4086_v4 = vmul.f32 0.17677669, %v4004_v3 }
0x198e   :  { %v5818_v5 = vpop.f32.mrf.mxu0 }
0x198f   :  { %v4088_v39 = vsel %vm915_vm1, %v4086_v4, -inf }
0x1990   :  { %4089 = vmax.xlane.f32.xlu0 %v4088_v39 }
0x1994   :  { %4104 = vadd.xlane.f32.xlu0 %v4103_v44  ;;  %v5310_v44 = vld [vmem:[#allocation11 + $0x1] ss:$0 sm:$0xff] }
0x1a19   :  { %v4090_v42 = vpop.xlane.xlu0 %4089 }
0x1a1a   :  { %v4094_v7 = vsub.f32 %v4086_v4, %v4090_v42 }
0x1a1c   :  { %v4096_v8 = vmul.f32 1.442695, %v4094_v7 }
0x1a1d   :  { %v4105_v11 = vpop.xlane.xlu0 %4104 }
0x1a1e   :  { %6006 = vpow2.f32 %v4096_v8 }
0x1a1f   :  { %6008 = vrcp.f32 %v4105_v11 }
0x1a2b   :  { %v6007_v9 = vpop.eup %6006 }
0x1a2c   :  { %v4100_v10 = vsel %vm915_vm1, %v6007_v9, 0.0  ;;  %v6009_v13 = vpop.eup %6008 }
0x1a2d   :  { %4101 = vadd.xlane.f32.xlu0 %v4100_v10  ;;  %v4109_v15 = vmul.f32 %v6009_v13, %v6005_v6 }
0x1a43   :  { %4186 = vrot.lane.b32.xlu0 %v6926_v45, %s6322_s5 }
0x1a47   :  { %4345 = vrot.lane.b32.xlu0 %v6906_v43, %s6323_s28 }
0x1ab6   :  { %v4102_v12 = vpop.xlane.xlu0 %4101 }
0x1ab7   :  { %6010 = vrcp.f32 %v4102_v12 }
0x1aba   :  { %v4187_v14 = vpop.permute.xlu0 %4186 }
0x1abb   :  { %5830 = vmatpush3.msra.mxu1 %v4187_v14 }
0x1abc   :  { %5832 = vmatmul.mubr.msk.f32.vlgmr.msra.gmra.mxu1 %vm915_vm1, %v4109_v15  ;;  %5839 = vmatprep.subr.mxu1 %v6318_v0 }
0x1abd   :  { %5840 = vmatpush3.xpose.msk.msra.mxu1 %vm915_vm1, %v4348_v16  ;;  %5841 = vmatprep.mubr.msk.f32.mxu1 %vm6319_vm0, %v6318_v0 }
0x1abe   :  { %v4346_v17 = vpop.permute.xlu0 %4345  ;;  %5849 = vmatprep.subr.mxu1 %v6318_v0 }
0x1ac0   :  { %5842 = vmatmul.mubr.msk.f32.vlgmr.msra.gmra.mxu1 %vm915_vm1, %v4346_v17 }
0x1ac1   :  { %5851 = vmatprep.mubr.msk.f32.mxu1 %vm6319_vm0, %v6318_v0 }
0x1ac4   :  { %v6011_v43 = vpop.eup %6010 }
0x1ac5   :  { %v4108_v24 = vmul.f32 %v6011_v43, %v6007_v9 }
0x1ac7   :  { %5827 = vmatmul.mubr.msk.f32.vlgmr.msra.gmra.mxu0 %vm915_vm1, %v4108_v24 }
0x1ac8   :  { %5835 = vmatpush3.msra.mxu0 %v5276_v25 }
0x1ac9   :  { %5844 = vmatprep.subr.mxu0 %v6318_v0 }
0x1b7c   :  { %v4258_v26 = vpop.f32.mrf.mxu1 }
0x1b7e   :  { %v5833_v27 = vpop.f32.mrf.mxu1 }
0x1b7f   :  { %v5316_v27 = vld [vmem:[%s7206_s15 + $0x38] sm:$0xff] }
0x1b80   :  { %v4419_v28 = vpop.f32.mrf.mxu1 }
0x1b81   :  { %v4501_v29 = vmul.f32 0.17677669, %v4419_v28  ;;  %v5315_v28 = vld [vmem:[%s7206_s15 + $0x30] sm:$0xff] }
0x1b82   :  { %v5843_v30 = vpop.f32.mrf.mxu1 }
0x1b83   :  { %v4503_v31 = vsel %vm915_vm1, %v4501_v29, -inf  ;;  %v5313_v30 = vld [vmem:[%s7206_s15 + $0x20] sm:$0xff] }
0x1b84   :  { %4504 = vmax.xlane.f32.xlu0 %v4503_v31  ;;  %v5335_v31 = vld [vmem:[%s7208_s17 + $0xf8] sm:$0xff] }
0x1b87   :  { %v4182_v33 = vpop.f32.mrf.mxu0 }
0x1b88   :  { %5836 = vmatprep.mubr.msk.f32.mxu0 %vm915_vm1, %v4182_v33  ;;  %v5333_v33 = vld [vmem:[%s7208_s17 + $0xe8] sm:$0xff] }
0x1b89   :  { %v5828_v34 = vpop.f32.mrf.mxu0  ;;  %5837 = vmatmul.mubr.msk.f32.vlgmr.msra.gmra.mxu0 %vm915_vm1, %v4258_v26 }
0x1b8a   :  { %5845 = vmatpush3.xpose.msk.msra.mxu0 %vm915_vm1, %v4426_v32  ;;  %5846 = vmatprep.mubr.msk.f32.mxu0 %vm6319_vm0, %v6318_v0  ;;  %v5334_v32 = vld [vmem:[%s7208_s17 + $0xf0] sm:$0xff]  ;;  %v5332_v34 = vld [vmem:[%s7208_s17 + $0xe0] sm:$0xff] }
0x1b8b   :  { %5854 = vmatprep.subr.mxu0 %v6318_v0 }
0x1b8d   :  { %5847 = vmatmul.mubr.msk.f32.vlgmr.msra.gmra.mxu0 %vm915_vm1, %v4424_v35  ;;  %v5331_v35 = vld [vmem:[%s7208_s17 + $0xd8] sm:$0xff] }
0x1b8e   :  { %5856 = vmatprep.mubr.msk.f32.mxu0 %vm6319_vm0, %v6318_v0 }
0x1c0d   :  { %v4505_v36 = vpop.xlane.xlu0 %4504 }
0x1c0e   :  { %v4509_v41 = vsub.f32 %v4501_v29, %v4505_v36  ;;  %v5314_v29 = vld [vmem:[%s7206_s15 + $0x28] sm:$0xff]  ;;  %v5330_v36 = vld [vmem:[%s7208_s17 + $0xd0] sm:$0xff] }
0x1c10   :  { %v4511_v37 = vmul.f32 1.442695, %v4509_v41  ;;  %v5329_v41 = vld [vmem:[%s7208_s17 + $0xc8] sm:$0xff] }
0x1c12   :  { %6012 = vpow2.f32 %v4511_v37  ;;  %v5328_v37 = vld [vmem:[%s7208_s17 + $0xc0] sm:$0xff] }
0x1c1f   :  { %v6013_v23 = vpop.eup %6012 }
0x1c20   :  { %v4515_v47 = vsel %vm915_vm1, %v6013_v23, 0.0 }
0x1c21   :  { %4516 = vadd.xlane.f32.xlu0 %v4515_v47  ;;  %v5326_v47 = vld [vmem:[%s7208_s17 + $0xb0] sm:$0xff] }
0x1c49   :  { %v5838_v49 = vpop.f32.mrf.mxu0 }
0x1c4a   :  { %v4344_v51 = vadd.f32 %v5838_v49, %v3927_v48  ;;  %v5325_v48 = vld [vmem:[%s7208_s17 + $0xa8] sm:$0xff]  ;;  %v5324_v49 = vld [vmem:[%s7208_s17 + $0xa0] sm:$0xff] }
0x1c4b   :  { %v4334_v52 = vpop.f32.mrf.mxu0 }
0x1c4c   :  { %v4343_v53 = vadd.f32 %v4334_v52, %v3922_v50 }
0x1c4d   :  { %v4497_v22 = vpop.f32.mrf.mxu0 }
0x1c4e   :  { %v4502_v21 = vmul.f32 0.17677669, %v4497_v22 }
0x1c4f   :  { %v5848_v54 = vpop.f32.mrf.mxu0 }
0x1c50   :  { %v4506_v18 = vsel %vm915_vm1, %v4502_v21, -inf }
0x1c51   :  { %4507 = vmax.xlane.f32.xlu1 %v4506_v18  ;;  %v5311_v18 = vld [vmem:[#allocation13 + $0x1] ss:$0 sm:$0xff] }
0x1c62   :  { %4525 = vrot.lane.b32.xlu1 %v6929_v46, %s6323_s28  ;;  %v5277_v46 = vld [vmem:[%s7202_s11 + $0x38] sm:$0xff] }
0x1caa   :  { %v4517_v58 = vpop.xlane.xlu0 %4516 }
0x1cab   :  { %6014 = vrcp.f32 %v4517_v58 }
0x1cb8   :  { %v6015_v20 = vpop.eup %6014 }
0x1cb9   :  { %v4523_v55 = vmul.f32 %v6015_v20, %v6013_v23  ;;  %v5327_v23 = vld [vmem:[%s7208_s17 + $0xb8] sm:$0xff] }
0x1cda   :  { %v4508_v61 = vpop.xlane.xlu1 %4507 }
0x1cdb   :  { %v4510_v62 = vsub.f32 %v4502_v21, %v4508_v61 }
0x1cdd   :  { %v4513_v63 = vmul.f32 1.442695, %v4510_v62 }
0x1cde   :  { %v4526_v1 = vpop.permute.xlu1 %4525 }
0x1cdf   :  { %6016 = vpow2.f32 %v4513_v63  ;;  %5850 = vmatpush3.msra.mxu1 %v4526_v1  ;;  %v5312_v63 = vld [vmem:[#allocation14 + $0x1] ss:$0 sm:$0xff] }
0x1ce0   :  { %5852 = vmatmul.mubr.msk.f32.vlgmr.msra.gmra.mxu1 %vm915_vm1, %v4523_v55  ;;  %5859 = vmatprep.subr.mxu1 %v5277_v46 }
0x1ce1   :  { %5860 = vmatpush3.msra.mxu1 %v5277_v46  ;;  %v5322_v46 = vld [vmem:[%s7208_s17 + $0x90] sm:$0xff] }
0x1ce2   :  { %5875 = vmatprep.subr.mxu1 %v5335_v31 }
0x1cec   :  { %v6017_v38 = vpop.eup %6016 }
0x1ced   :  { %v4518_v57 = vsel %vm915_vm1, %v6017_v38, 0.0 }
0x1cee   :  { %4519 = vadd.xlane.f32.xlu0 %v4518_v57  ;;  %v5323_v57 = vld [vmem:[%s7208_s17 + $0x98] sm:$0xff] }
0x1d04   :  { %4601 = vrot.lane.b32.xlu0 %v6926_v45, %s6323_s28 }
0x1d77   :  { %v4520_v2 = vpop.xlane.xlu0 %4519 }
0x1d78   :  { %6018 = vrcp.f32 %v4520_v2  ;;  %v5321_v2 = vld [vmem:[%s7208_s17 + $0x88] sm:$0xff] }
0x1d7b   :  { %v4602_v19 = vpop.permute.xlu0 %4601 }
0x1d7c   :  { %5855 = vmatpush3.msra.mxu0 %v4602_v19  ;;  %v5320_v19 = vld [vmem:[%s7208_s17 + $0x80] sm:$0xff] }
0x1d7d   :  { %5864 = vmatprep.subr.mxu0 %v5316_v27 }
0x1d85   :  { %v6019_v40 = vpop.eup %6018 }
0x1d86   :  { %v4524_v59 = vmul.f32 %v6019_v40, %v6017_v38  ;;  %v5317_v40 = vld [vmem:[#allocation16 + $0x1] ss:$0 sm:$0xff] }
0x1d88   :  { %5857 = vmatmul.mubr.msk.f32.vlgmr.msra.gmra.mxu0 %vm915_vm1, %v4524_v59 }
0x1d89   :  { %5865 = vmatpush3.msra.mxu0 %v5316_v27  ;;  %v5078_v27 = vld [vmem:[%s7212_s21 + $0x10] sm:$0xff] }
0x1d8a   :  { %5866 = vmatprep.subr.mxu0 %v5315_v28 }
0x1d8b   :  { %5867 = vmatpush3.msra.mxu0 %v5315_v28  ;;  %v5077_v28 = vld [vmem:[%s7212_s21 + $0x8] sm:$0xff] }
0x1d8c   :  { %5868 = vmatprep.subr.mxu0 %v5314_v29 }
0x1d8d   :  { %5869 = vmatpush3.msra.mxu0 %v5314_v29  ;;  %v5076_v29 = vld [vmem:[%s7212_s21] sm:$0xff] }
0x1d8e   :  { %5870 = vmatprep.subr.mxu0 %v5313_v30 }
0x1d8f   :  { %5871 = vmatpush3.msra.mxu0 %v5313_v30 }
0x1d90   :  { %5910 = vmatprep.subr.mxu0 %v6318_v0 }
0x1da0   :  { %v4597_v3 = vpop.f32.mrf.mxu1 }
0x1da1   :  { %5861 = vmatprep.mubr.msk.f32.mxu1 %vm915_vm1, %v4597_v3 }
0x1da2   :  { %v5853_v4 = vpop.f32.mrf.mxu1 }
0x1e48   :  { %v4673_v5 = vpop.f32.mrf.mxu0 }
0x1e49   :  { %5862 = vmatmul.mubr.msk.f32.vlgmr.msra.gmra.mxu1 %vm915_vm1, %v4673_v5 }
0x1e4a   :  { %v5858_v45 = vpop.f32.mrf.mxu0  ;;  %5876 = vmatpush3.msra.mxu1 %v5335_v31 }
0x1e4b   :  { %5877 = vmatprep.subr.mxu1 %v5334_v32 }
0x1e4c   :  { %5878 = vmatpush3.msra.mxu1 %v5334_v32 }
0x1e4d   :  { %5879 = vmatprep.subr.mxu1 %v5333_v33 }
0x1e4e   :  { %5880 = vmatpush3.msra.mxu1 %v5333_v33 }
0x1e4f   :  { %5881 = vmatprep.subr.mxu1 %v5332_v34 }
0x1e50   :  { %5882 = vmatpush3.msra.mxu1 %v5332_v34 }
0x1e51   :  { %5883 = vmatprep.subr.mxu1 %v5331_v35 }
0x1e52   :  { %5884 = vmatpush3.msra.mxu1 %v5331_v35 }
0x1e53   :  { %5885 = vmatprep.subr.mxu1 %v5330_v36 }
0x1e54   :  { %5886 = vmatpush3.msra.mxu1 %v5330_v36 }
0x1e55   :  { %5887 = vmatprep.subr.mxu1 %v5329_v41 }
0x1e56   :  { %5888 = vmatpush3.msra.mxu1 %v5329_v41  ;;  %v5337_v41 = vld [vmem:[%s7210_s19] ss:$0 sm:$0xff]  ;;  %s6324_s19 = smov [#allocation22]  }
0x1e57   :  { %5889 = vmatprep.subr.mxu1 %v5328_v37 }
0x1e58   :  { %5890 = vmatpush3.msra.mxu1 %v5328_v37 }
0x1e59   :  { %5891 = vmatprep.subr.mxu1 %v5327_v23 }
0x1e5a   :  { %5892 = vmatpush3.msra.mxu1 %v5327_v23 }
0x1e5b   :  { %5893 = vmatprep.subr.mxu1 %v5326_v47 }
0x1e5c   :  { %5894 = vmatpush3.msra.mxu1 %v5326_v47  ;;  %v5338_v47 = vld [vmem:[#allocation19] ss:$0 sm:$0xff] }
0x1e5d   :  { %5895 = vmatprep.subr.mxu1 %v5325_v48 }
0x1e5e   :  { %5896 = vmatpush3.msra.mxu1 %v5325_v48 }
0x1e5f   :  { %5897 = vmatprep.subr.mxu1 %v5324_v49 }
0x1e60   :  { %5898 = vmatpush3.msra.mxu1 %v5324_v49 }
0x1e61   :  { %5899 = vmatprep.subr.mxu1 %v5323_v57 }
0x1e62   :  { %5900 = vmatpush3.msra.mxu1 %v5323_v57 }
0x1e63   :  { %5901 = vmatprep.subr.mxu1 %v5322_v46 }
0x1e64   :  { %5902 = vmatpush3.msra.mxu1 %v5322_v46  ;;  %v5339_v46 = vld [vmem:[#allocation20] ss:$0 sm:$0xff] }
0x1e65   :  { %5903 = vmatprep.subr.mxu1 %v5321_v2 }
0x1e66   :  { %5904 = vmatpush3.msra.mxu1 %v5321_v2 }
0x1e67   :  { %5905 = vmatprep.subr.mxu1 %v5320_v19 }
0x1e68   :  { %5906 = vmatpush3.msra.mxu1 %v5320_v19 }
0x1f09   :  { %v5863_v39 = vpop.f32.mrf.mxu1 }
0x1f0a   :  { %v4759_v6 = vadd.f32 %v5863_v39, %v4344_v51 }
0x1f0b   :  { %v4749_v42 = vpop.f32.mrf.mxu1 }
0x1f0c   :  { %v4761_v7 = vadd.f32 %v4759_v6, %v6846_v56  ;;  %v4758_v8 = vadd.f32 %v4749_v42, %v4343_v53 }
0x1f0e   :  { %v7073_v9 = vadd.f32 %v5310_v44, %v4761_v7  ;;  %v4760_v10 = vadd.f32 %v4758_v8, %v6849_v60 }
0x1f10   :  { %v7076_v11 = vadd.f32 %v5310_v44, %v4760_v10  ;;  %v4779_v12 = vsel %vm624_vm15, %v7073_v9, 0.0  ;;  %v5336_v44 = vld [vmem:[#allocation17 + $0x1] ss:$0 sm:$0xff] }
0x1f11   :  { %4780 = vadd.xlane.f32.xlu0 %v4779_v12 }
0x1f12   :  { %v4776_v13 = vsel %vm624_vm15, %v7076_v11, 0.0 }
0x1f13   :  { %4777 = vadd.xlane.f32.xlu1 %v4776_v13 }
0x1f9a   :  { %v4781_v14 = vpop.xlane.xlu0 %4780 }
0x1f9b   :  { %v4783_v15 = vmul.f32 0.03125, %v4781_v14 }
0x1f9c   :  { %v4778_v16 = vpop.xlane.xlu1 %4777 }
0x1f9d   :  { %v7083_v56 = vsub.f32 %v7073_v9, %v4783_v15  ;;  %v4782_v17 = vmul.f32 0.03125, %v4778_v16 }
0x1f9f   :  { %v7086_v43 = vsub.f32 %v7076_v11, %v4782_v17  ;;  %v4787_v60 = vmul.f32 %v7083_v56, %v7083_v56 }
0x1fa1   :  { %v4791_v24 = vsel %vm624_vm15, %v4787_v60, 0.0  ;;  %v4786_v25 = vmul.f32 %v7086_v43, %v7086_v43 }
0x1fa2   :  { %4792 = vadd.xlane.f32.xlu0 %v4791_v24 }
0x1fa3   :  { %v4788_v26 = vsel %vm624_vm15, %v4786_v25, 0.0 }
0x1fa4   :  { %4789 = vadd.xlane.f32.xlu1 %v4788_v26  ;;  %v5079_v26 = vld [vmem:[%s7212_s21 + $0x18] sm:$0xff]  ;;  %s5170_s21 = sshll.u32 %s6324_s19, 4  ;;  %s5171_s21 = int_to_ptr.vmem [resolvable:$true] %s5170_s21 }
0x1fa5   :  { %s6268_s3 = scalar_lea.vmem %s5171_s21, 32  ;;  %p6273_p5 = scmp.lt.s32.totalorder %s5171_s21, %s5171_s21 }
0x1fa6   :  { %p6269_p4 = scmp.ne.s32.totalorder %s5171_s21, %s6268_s3  ;;  %p6274_p6 = scmp.lt.s32.totalorder %s6268_s3, %s6268_s3 }
0x1fa8   :  { %p6275_p7 = por %p6274_p6, %p6273_p5 }
0x1faa   :  { %p6276_p8 = pnand %p6275_p7, %p6269_p4 }
0x202b   :  { %v4793_v50 = vpop.xlane.xlu0 %4792 }
0x202c   :  { %v4795_v51 = vmul.f32 0.03125, %v4793_v50 }
0x202d   :  { %v4790_v52 = vpop.xlane.xlu1 %4789 }
0x202e   :  { %v4797_v53 = vadd.f32 1e-05, %v4795_v51  ;;  %v4794_v22 = vmul.f32 0.03125, %v4790_v52 }
0x2030   :  { %6020 = vrsqrt.f32 %v4797_v53  ;;  %v4796_v21 = vadd.f32 1e-05, %v4794_v22 }
0x2032   :  { %6022 = vrsqrt.f32 %v4796_v21 }
0x203d   :  { %v6021_v54 = vpop.eup %6020 }
0x203e   :  { %v4801_v58 = vmul.f32 %v6021_v54, %v7083_v56 }
0x203f   :  { %v6023_v61 = vpop.eup %6022 }
0x2040   :  { %v4800_v20 = vmul.f32 %v6023_v61, %v7086_v43  ;;  %v4809_v62 = vmul.f32 %v5311_v18, %v4801_v58 }
0x2042   :  { %v4808_v1 = vmul.f32 %v5311_v18, %v4800_v20  ;;  %v4817_v38 = vadd.f32 %v5312_v63, %v4809_v62 }
0x2044   :  { %v4816_v55 = vadd.f32 %v5312_v63, %v4808_v1 }
0x2046   :  { %5872 = vmatprep.mubr.msk.f32.mxu0 %vm624_vm15, %v4816_v55 }
0x2047   :  { %5873 = vmatmul.mubr.msk.f32.vlgmr.msra.gmra.mxu0 %vm624_vm15, %v4817_v38 }
0x2048   :  { %5918 = vmatprep.mubr.msk.f32.mxu0 %vm6319_vm0, %v6318_v0  ;;  %5911 = vmatpush3.msra.mxu0 %v5079_v26  ;;  %vm5089_vm0 = vcmask 1041409  }
0x2049   :  { %5912 = vmatprep.subr.mxu0 %v6318_v0 }
0x204a   :  { %5913 = vmatpush3.msra.mxu0 %v5078_v27 }
0x204b   :  { %5914 = vmatprep.subr.mxu0 %v6318_v0 }
0x204c   :  { %5915 = vmatpush3.msra.mxu0 %v5077_v28 }
0x204d   :  { %5916 = vmatprep.subr.mxu0 %v6318_v0 }
0x204e   :  { %5917 = vmatpush3.msra.mxu0 %v5076_v29 }
0x2107   :  { %v5874_v59 = vpop.f32.mrf.mxu0 }
0x2108   :  { %v4909_v3 = vadd.f32 %v5874_v59, %v5317_v40 }
0x2109   :  { %v4903_v4 = vpop.f32.mrf.mxu0 }
0x210a   :  { %v4904_v5 = vadd.f32 %v5317_v40, %v4903_v4  ;;  %v4913_v39 = vmax.f32 %v4909_v3, 0.0 }
0x210c   :  { %v4912_v45 = vmax.f32 %v4904_v5, 0.0 }
0x210e   :  { %5907 = vmatprep.mubr.f32.mxu1 %v4912_v45 }
0x210f   :  { %5908 = vmatmul.mubr.f32.vlgmr.msra.gmra.mxu1 %v4913_v39 }
0x21cf   :  { %v5909_v6 = vpop.f32.mrf.mxu1 }
0x21d0   :  { %v5007_v42 = vadd.f32 %v5909_v6, %v7073_v9 }
0x21d1   :  { %v4997_v7 = vpop.f32.mrf.mxu1 }
0x21d2   :  { %v5006_v8 = vadd.f32 %v4997_v7, %v7076_v11  ;;  %v5017_v10 = vadd.f32 %v5336_v44, %v5007_v42 }
0x21d4   :  { %v5023_v12 = vsel %vm624_vm15, %v5017_v10, 0.0  ;;  %v5016_v13 = vadd.f32 %v5336_v44, %v5006_v8 }
0x21d5   :  { %5024 = vadd.xlane.f32.xlu0 %v5023_v12 }
0x21d6   :  { %v5020_v14 = vsel %vm624_vm15, %v5016_v13, 0.0 }
0x21d7   :  { %5021 = vadd.xlane.f32.xlu1 %v5020_v14 }
0x225e   :  { %v5025_v15 = vpop.xlane.xlu0 %5024 }
0x225f   :  { %v5027_v16 = vmul.f32 0.03125, %v5025_v15 }
0x2260   :  { %v5022_v56 = vpop.xlane.xlu1 %5021 }
0x2261   :  { %v5029_v17 = vsub.f32 %v5017_v10, %v5027_v16  ;;  %v5026_v43 = vmul.f32 0.03125, %v5022_v56 }
0x2263   :  { %v5028_v60 = vsub.f32 %v5016_v13, %v5026_v43  ;;  %v5031_v24 = vmul.f32 %v5029_v17, %v5029_v17 }
0x2265   :  { %v5035_v9 = vsel %vm624_vm15, %v5031_v24, 0.0  ;;  %v5030_v25 = vmul.f32 %v5028_v60, %v5028_v60 }
0x2266   :  { %5036 = vadd.xlane.f32.xlu0 %v5035_v9 }
0x2267   :  { %v5032_v11 = vsel %vm624_vm15, %v5030_v25, 0.0 }
0x2268   :  { %5033 = vadd.xlane.f32.xlu1 %v5032_v11 }
0x22ef   :  { %v5037_v30 = vpop.xlane.xlu0 %5036 }
0x22f0   :  { %v5039_v31 = vmul.f32 0.03125, %v5037_v30 }
0x22f1   :  { %v5034_v32 = vpop.xlane.xlu1 %5033 }
0x22f2   :  { %v5041_v33 = vadd.f32 1e-05, %v5039_v31  ;;  %v5038_v34 = vmul.f32 0.03125, %v5034_v32 }
0x22f4   :  { %6024 = vrsqrt.f32 %v5041_v33  ;;  %v5040_v35 = vadd.f32 1e-05, %v5038_v34 }
0x22f6   :  { %6026 = vrsqrt.f32 %v5040_v35 }
0x2301   :  { %v6025_v36 = vpop.eup %6024 }
0x2302   :  { %v5045_v37 = vmul.f32 %v6025_v36, %v5029_v17 }
0x2303   :  { %v6027_v23 = vpop.eup %6026 }
0x2304   :  { %v5053_v48 = vmul.f32 %v5337_v41, %v5045_v37  ;;  %v5044_v49 = vmul.f32 %v6027_v23, %v5028_v60 }
0x2306   :  { %v5052_v0 = vmul.f32 %v5337_v41, %v5044_v49  ;;  %v5061_v50 = vadd.f32 %v5338_v47, %v5053_v48 }
0x2308   :  { %v5060_v51 = vadd.f32 %v5338_v47, %v5052_v0  ;;  %v5069_v52 = vsel %vm624_vm15, %v5061_v50, 0.0 }
0x2309   :  { %v5070_v53 = vrot.slane %v5069_v52, 4 }
0x230a   :  { %v5062_v22 = vsel %vm624_vm15, %v5060_v51, 0.0 }
0x230b   :  { %v5063_v21 = vrot.slane %v5062_v22, 4  ;;  %v5071_v54 = vadd.f32 %v5070_v53, %v5069_v52 }
0x230d   :  { %v5064_v18 = vadd.f32 %v5063_v21, %v5062_v22  ;;  %v5072_v58 = vrot.slane %v5071_v54, 2 }
0x230f   :  { %v5065_v61 = vrot.slane %v5064_v18, 2  ;;  %v5073_v20 = vadd.f32 %v5072_v58, %v5071_v54 }
0x2311   :  { %v5066_v62 = vadd.f32 %v5065_v61, %v5064_v18  ;;  %v5074_v63 = vrot.slane %v5073_v20, 1 }
0x2313   :  { %v5067_v1 = vrot.slane %v5066_v62, 1  ;;  %v5075_v38 = vadd.f32 %v5074_v63, %v5073_v20 }
0x2315   :  { %v5068_v55 = vadd.f32 %v5067_v1, %v5066_v62 }
0x2317   :  { %v5090_v57 = vsel %vm5089_vm0, %v5075_v38, %v5068_v55 }
0x2318   :  { %5919 = vmatmul.mubr.msk.f32.vlgmr.msra.gmra.mxu0 %vm624_vm15, %v5090_v57 }
0x23d8   :  { %v5159_v2 = vpop.f32.mrf.mxu0 }
0x23d9   :  { %v5160_v19 = vadd.f32 %v5339_v46, %v5159_v2 }
0x23da   :  { %v5920_v40 = vpop.f32.mrf.mxu0 }
0x23db   :  { %5163 = vst [vmem:[#allocation22] sm:$0x3] %v5160_v19 }
0x23dc   :  { %6279 = shalt.err (!%p6276_p8)
}
0x23dd   :  { %5173 = dma.vmem_to_hbm [thread:$0]  %s5171_s21, 32, %s7214_s23, [#allocation4]  }
0x23de   :  { %6302 = dma.done.wait [#allocation4], 32  }
0x23df   :  { %6303 = vsyncadd [#allocation4], 4294967264 }
0x23e0   :  { %5177 = vsyncpa [#allocation3], 1 }
0x23e1   :  { %5178 = vsyncpa [#allocation6], 1 }
0x23e2   :  { %5179 = vsyncpa [#allocation9], 1 }
0x23e3   :  { %5180 = vsyncpa [#allocation12], 1 }
0x23e4   :  { %5181 = vsyncpa [#allocation15], 1 }
0x23e5   :  { %5182 = vsyncpa [#allocation18], 1 }
0x23e6   :  { %5183 = vsyncpa [#allocation21], 1 }
0x23e7   :  { %5184 = vsyncpa [#allocation4], 1 }

</bundles_post_ra>
